<compile_context>
chip_gen: v6e
topology: v6e:2x2x1
jax: 0.10.0
libtpu: 0.0.40
codegen_flags: <defaults>
</compile_context>

<pallas_src>
import jax
import jax.numpy as jnp
from jax.experimental import pallas as pl
from jax.experimental.pallas import tpu as pltpu

FEATURE_DIM = 1024  # module's declared feature_dim for encoder='resnet18'


def _choose_tiling(hw):
    """Pick an HW tile (multiple of 128) and VMEM budget sized for this TPU generation."""
    try:
        vmem_cap = pltpu.get_tpu_info().vmem_capacity_bytes
    except Exception:
        vmem_cap = 64 * 1024 * 1024
    if vmem_cap >= 100 * 1024 * 1024:        # v5e / v6e: 128 MiB physical VMEM
        desired, vmem_limit = 2048, 64 * 1024 * 1024
    else:                                     # v7x: 64 MiB physical VMEM
        desired, vmem_limit = 1024, 32 * 1024 * 1024
    hw128 = ((hw + 127) // 128) * 128
    tile = min(desired, hw128)
    hw_pad = ((hw + tile - 1) // tile) * tile
    return tile, hw_pad, vmem_limit


def _make_encoder_kernel(batch, tile_hw, hw_valid, padded):
    """Streaming encoder: per-tile 1x1 conv + ReLU + sum-pool, all matmuls on the MXU."""
    inv_hw = 1.0 / float(hw_valid)

    def kernel(img_ref, w_ref, b_ref, feat_ref, acc_ref):
        t = pl.program_id(1)

        @pl.when(t == 0)
        def _init():
            acc_ref[...] = jnp.zeros_like(acc_ref)

        w = w_ref[...]                      # (3, F)  bf16, lane-dense F
        bias = b_ref[...]                   # (1, F)  f32

        # Pooling row-vector; the padding validity mask is folded in here so padded
        # lanes never contribute (even though relu(bias) != 0 there) and no per-element
        # jnp.where is needed.
        if padded:
            pos = t * tile_hw + jax.lax.broadcasted_iota(jnp.int32, (1, tile_hw), 1)
            pool = (pos < hw_valid).astype(jnp.float32)      # (1, tile_hw)
        else:
            pool = jnp.ones((1, tile_hw), jnp.float32)

        for b in range(batch):              # small static unroll (B is tiny)
            xb = img_ref[0, b, :, :]        # (3, tile_hw) bf16, HW in lanes
            # 1x1 conv on the MXU: contract the 3 input channels (K=3, f32 accumulate).
            h = jax.lax.dot_general(
                xb, w, (((0,), (0,)), ((), ())),
                preferred_element_type=jnp.float32)          # (tile_hw, F)
            h = jnp.maximum(h + bias, 0.0)                   # bias + ReLU (VPU only)
            # Sum-pool over the HW tile on the MXU (no XLU cross-lane reduction).
            pooled = jax.lax.dot_general(
                pool, h, (((1,), (0,)), ((), ())),
                preferred_element_type=jnp.float32)          # (1, F)
            acc_ref[b:b + 1, :] = acc_ref[b:b + 1, :] + pooled

        @pl.when(t == pl.num_programs(1) - 1)
        def _finalize():
            # Global average pool: one multiply by precomputed 1/HW at the very end.
            feat_ref[0] = (acc_ref[...] * inv_hw).astype(feat_ref.dtype)

    return kernel


def _encode_pair(imgs, w_enc, b_enc, hw_valid, tile_hw, hw_pad, vmem_limit):
    """imgs: (2, B, 3, hw_pad) -> pooled per-image features (2, B, F), lane-dense F."""
    n_img, batch, _, _ = imgs.shape
    feature_dim = w_enc.shape[1]
    n_tiles = hw_pad // tile_hw
    kernel = _make_encoder_kernel(batch, tile_hw, hw_valid, hw_pad != hw_valid)

    return pl.pallas_call(
        kernel,
        out_shape=jax.ShapeDtypeStruct((n_img, batch, feature_dim), jnp.float32),
        grid_spec=pltpu.PrefetchScalarGridSpec(
            num_scalar_prefetch=0,
            grid=(n_img, n_tiles),            # reduction (tiles) axis innermost
            in_specs=[
                pl.BlockSpec((1, batch, 3, tile_hw), lambda n, t: (n, 0, 0, t)),
                pl.BlockSpec((3, feature_dim), lambda n, t: (0, 0)),
                pl.BlockSpec((1, feature_dim), lambda n, t: (0, 0)),
            ],
            out_specs=pl.BlockSpec((1, batch, feature_dim), lambda n, t: (n, 0, 0)),
            scratch_shapes=[pltpu.VMEM((batch, feature_dim), jnp.float32)],
        ),
        compiler_params=pltpu.CompilerParams(
            dimension_semantics=("parallel", "arbitrary"),
            vmem_limit_bytes=vmem_limit,
        ),
    )(imgs, w_enc, b_enc)


def _head_kernel(feat_ref, w1a_ref, w1b_ref, b1_ref, w2_ref, b2_ref,
                 wh_ref, bh_ref, out_ref):
    """fc1 (split, no concat) + ReLU, fc2 + ReLU, fused translation/rotation heads."""
    f1 = feat_ref[0]                                        # (B, F)
    f2 = feat_ref[1]                                        # (B, F)
    x = jnp.dot(f1, w1a_ref[...], preferred_element_type=jnp.float32)
    x = x + jnp.dot(f2, w1b_ref[...], preferred_element_type=jnp.float32)
    x = jnp.maximum(x + b1_ref[...], 0.0)
    x = jnp.dot(x, w2_ref[...], preferred_element_type=jnp.float32) + b2_ref[...]
    x = jnp.maximum(x, 0.0)
    out_ref[...] = jnp.dot(x, wh_ref[...], preferred_element_type=jnp.float32) + bh_ref[...]


def posenet_forward(img1, img2, params):
    """img1, img2: [B, 3, H, W] (NCHW like PyTorch). Returns (translation[B,3], rotation[B,3])."""
    batch, chan, height, width = img1.shape
    assert chan == 3
    hw = height * width

    tile_hw, hw_pad, vmem_limit = _choose_tiling(hw)

    # Channel-first flattened layout (pure reshape) stacked into one buffer so the
    # image grid axis can shard across TensorCores; bf16 halves HBM/DMA bytes while
    # the MXU accumulates in f32.
    img_dtype = jnp.bfloat16
    stacked = jnp.stack(
        [img1.reshape(batch, 3, hw), img2.reshape(batch, 3, hw)], axis=0
    ).astype(img_dtype)
    if hw_pad != hw:
        # Single padded-buffer build (one copy); the kernel's pooling mask ignores pads.
        buf = jnp.zeros((2, batch, 3, hw_pad), img_dtype)
        imgs = jax.lax.dynamic_update_slice(buf, stacked, (0, 0, 0, 0))
    else:
        imgs = stacked

    feats = _encode_pair(imgs, params["w_enc"].astype(img_dtype), params["b_enc"],
                         hw, tile_hw, hw_pad, vmem_limit)    # (2, B, F), no transpose

    vmem = pl.BlockSpec(memory_space=pltpu.MemorySpace.VMEM)
    out = pl.pallas_call(
        _head_kernel,
        out_shape=jax.ShapeDtypeStruct((batch, 128), jnp.float32),
        in_specs=[vmem] * 8,
        out_specs=vmem,
    )(feats, params["w1a"], params["w1b"], params["b1"],
      params["w2"], params["b2"], params["wh"], params["bh"])

    return out[:, 0:3], out[:, 3:6]


def init_params(key, feature_dim=FEATURE_DIM):
    """Deterministic init mirroring PoseNet._init_weights (linear weights stored (in, out))."""
    ks = jax.random.split(key, 5)

    def kaiming(k, fan_in, fan_out):            # kaiming_normal_, nonlinearity='relu', fan_in
        std = (2.0 / fan_in) ** 0.5
        return std * jax.random.normal(k, (fan_in, fan_out), jnp.float32)

    def xavier(k, fan_in, fan_out):             # xavier_normal_
        std = (2.0 / (fan_in + fan_out)) ** 0.5
        return std * jax.random.normal(k, (fan_in, fan_out), jnp.float32)

    w1 = kaiming(ks[1], feature_dim * 2, 256)
    wt = xavier(ks[3], 128, 3)
    wr = xavier(ks[4], 128, 3)
    bt = jnp.zeros((1, 3), jnp.float32)
    br = jnp.zeros((1, 3), jnp.float32)

    # Fused, lane-padded head weight/bias built ONCE here (not per forward call).
    wh = jnp.zeros((128, 128), jnp.float32).at[:, 0:3].set(wt).at[:, 3:6].set(wr)
    bh = jnp.zeros((1, 128), jnp.float32).at[:, 0:3].set(bt).at[:, 3:6].set(br)

    return {
        # synthetic encoder stand-in: 1x1 conv weight stored (in=3, out=F) -> lane-dense F
        "w_enc": kaiming(ks[0], 3, feature_dim),                    # (3, F)
        "b_enc": jnp.zeros((1, feature_dim), jnp.float32),          # (1, F)
        # fc1: Linear(feature_dim*2, 256), kaiming-normal, bias 0 (pre-split halves)
        "w1": w1, "w1a": w1[:feature_dim], "w1b": w1[feature_dim:],
        "b1": jnp.zeros((1, 256), jnp.float32),
        # fc2: Linear(256, 128), kaiming-normal, bias 0
        "w2": kaiming(ks[2], 256, 128),
        "b2": jnp.zeros((1, 128), jnp.float32),
        # translation / rotation heads: Linear(128, 3), xavier-normal, bias 0
        "wt": wt, "bt": bt, "wr": wr, "br": br,
        # fused heads
        "wh": wh, "bh": bh,
    }


def _posenet_reference(img1, img2, params):
    """Pure-JAX f32 reference of the same forward (same synthetic encoder stand-in)."""
    def encode(img):
        b = img.shape[0]
        x = img.reshape(b, 3, -1).astype(jnp.float32)                  # (B, 3, HW)
        h = jnp.einsum("cf,bcp->bpf", params["w_enc"], x)              # (B, HW, F)
        h = jnp.maximum(h + params["b_enc"][0][None, None, :], 0.0)
        return jnp.mean(h, axis=1)                                     # (B, F)

    f1, f2 = encode(img1), encode(img2)
    combined = jnp.concatenate([f1, f2], axis=-1)
    x = jnp.maximum(combined @ params["w1"] + params["b1"], 0.0)
    x = jnp.maximum(x @ params["w2"] + params["b2"], 0.0)
    return x @ params["wt"] + params["bt"], x @ params["wr"] + params["br"]


if __name__ == "__main__":
    key = jax.random.PRNGKey(0)
    k_img1, k_img2, k_params = jax.random.split(key, 3)

    B, C, H, W = 2, 3, 16, 16
    img1 = jax.random.normal(k_img1, (B, C, H, W), jnp.float32)
    img2 = jax.random.normal(k_img2, (B, C, H, W), jnp.float32)
    params = init_params(k_params)

    translation, rotation = jax.jit(posenet_forward)(img1, img2, params)
    jax.block_until_ready((translation, rotation))

    assert translation.shape == (B, 3) and rotation.shape == (B, 3)
    assert translation.dtype == jnp.float32 and rotation.dtype == jnp.float32

    t_ref, r_ref = _posenet_reference(img1, img2, params)
    assert jnp.allclose(translation, t_ref, rtol=2e-2, atol=2e-2)
    assert jnp.allclose(rotation, r_ref, rtol=2e-2, atol=2e-2)

    print("KERNEL_OK")
</pallas_src>

<mosaic_0001>
module attributes {stable_mosaic.version = 11 : i64} {
  func.func @_head_kernel(%arg0: memref<2x2x1024xf32, #tpu.memory_space<vmem>>, %arg1: memref<1024x256xf32, #tpu.memory_space<vmem>>, %arg2: memref<1024x256xf32, #tpu.memory_space<vmem>>, %arg3: memref<1x256xf32, #tpu.memory_space<vmem>>, %arg4: memref<256x128xf32, #tpu.memory_space<vmem>>, %arg5: memref<1x128xf32, #tpu.memory_space<vmem>>, %arg6: memref<128x128xf32, #tpu.memory_space<vmem>>, %arg7: memref<1x128xf32, #tpu.memory_space<vmem>>, %arg8: memref<2x128xf32, #tpu.memory_space<vmem>>) attributes {dimension_semantics = [], scalar_prefetch = 0 : i64, scratch_operands = 0 : i64, tpu.core_type = #tpu.core_type<tc>} {
    %c0 = arith.constant 0 : index
    %c0_0 = arith.constant 0 : index
    %c0_1 = arith.constant 0 : index
    %0 = vector.load %arg0[%c0, %c0_0, %c0_1] : memref<2x2x1024xf32, #tpu.memory_space<vmem>>, vector<1x2x1024xf32>
    %1 = vector.shape_cast %0 : vector<1x2x1024xf32> to vector<2x1024xf32>
    %c1 = arith.constant 1 : index
    %c0_2 = arith.constant 0 : index
    %c0_3 = arith.constant 0 : index
    %2 = vector.load %arg0[%c1, %c0_2, %c0_3] : memref<2x2x1024xf32, #tpu.memory_space<vmem>>, vector<1x2x1024xf32>
    %3 = vector.shape_cast %2 : vector<1x2x1024xf32> to vector<2x1024xf32>
    %c0_4 = arith.constant 0 : index
    %c0_5 = arith.constant 0 : index
    %4 = vector.load %arg1[%c0_4, %c0_5] : memref<1024x256xf32, #tpu.memory_space<vmem>>, vector<1024x256xf32>
    %cst = arith.constant dense<0.000000e+00> : vector<2x256xf32>
    %5 = tpu.matmul %1, %4, %cst {dimension_numbers = #tpu.dot_dimension_numbers<[1], [0], [0], [1], [0, 0, 1, 1], [], []>} : vector<2x1024xf32>, vector<1024x256xf32>, vector<2x256xf32> -> vector<2x256xf32>
    %c0_6 = arith.constant 0 : index
    %c0_7 = arith.constant 0 : index
    %6 = vector.load %arg2[%c0_6, %c0_7] : memref<1024x256xf32, #tpu.memory_space<vmem>>, vector<1024x256xf32>
    %cst_8 = arith.constant dense<0.000000e+00> : vector<2x256xf32>
    %7 = tpu.matmul %3, %6, %cst_8 {dimension_numbers = #tpu.dot_dimension_numbers<[1], [0], [0], [1], [0, 0, 1, 1], [], []>} : vector<2x1024xf32>, vector<1024x256xf32>, vector<2x256xf32> -> vector<2x256xf32>
    %8 = arith.addf %5, %7 : vector<2x256xf32>
    %c0_9 = arith.constant 0 : index
    %c0_10 = arith.constant 0 : index
    %9 = vector.load %arg3[%c0_9, %c0_10] : memref<1x256xf32, #tpu.memory_space<vmem>>, vector<1x256xf32>
    %10 = vector.broadcast %9 : vector<1x256xf32> to vector<2x256xf32>
    %11 = arith.addf %8, %10 : vector<2x256xf32>
    %cst_11 = arith.constant 0.000000e+00 : f32
    %12 = vector.broadcast %cst_11 : f32 to vector<2x256xf32>
    %13 = arith.maximumf %11, %12 : vector<2x256xf32>
    %c0_12 = arith.constant 0 : index
    %c0_13 = arith.constant 0 : index
    %14 = vector.load %arg4[%c0_12, %c0_13] : memref<256x128xf32, #tpu.memory_space<vmem>>, vector<256x128xf32>
    %cst_14 = arith.constant dense<0.000000e+00> : vector<2x128xf32>
    %15 = tpu.matmul %13, %14, %cst_14 {dimension_numbers = #tpu.dot_dimension_numbers<[1], [0], [0], [1], [0, 0, 1, 1], [], []>} : vector<2x256xf32>, vector<256x128xf32>, vector<2x128xf32> -> vector<2x128xf32>
    %c0_15 = arith.constant 0 : index
    %c0_16 = arith.constant 0 : index
    %16 = vector.load %arg5[%c0_15, %c0_16] : memref<1x128xf32, #tpu.memory_space<vmem>>, vector<1x128xf32>
    %17 = vector.broadcast %16 : vector<1x128xf32> to vector<2x128xf32>
    %18 = arith.addf %15, %17 : vector<2x128xf32>
    %cst_17 = arith.constant 0.000000e+00 : f32
    %19 = vector.broadcast %cst_17 : f32 to vector<2x128xf32>
    %20 = arith.maximumf %18, %19 : vector<2x128xf32>
    %c0_18 = arith.constant 0 : index
    %c0_19 = arith.constant 0 : index
    %21 = vector.load %arg6[%c0_18, %c0_19] : memref<128x128xf32, #tpu.memory_space<vmem>>, vector<128x128xf32>
    %cst_20 = arith.constant dense<0.000000e+00> : vector<2x128xf32>
    %22 = tpu.matmul %20, %21, %cst_20 {dimension_numbers = #tpu.dot_dimension_numbers<[1], [0], [0], [1], [0, 0, 1, 1], [], []>} : vector<2x128xf32>, vector<128x128xf32>, vector<2x128xf32> -> vector<2x128xf32>
    %c0_21 = arith.constant 0 : index
    %c0_22 = arith.constant 0 : index
    %23 = vector.load %arg7[%c0_21, %c0_22] : memref<1x128xf32, #tpu.memory_space<vmem>>, vector<1x128xf32>
    %24 = vector.broadcast %23 : vector<1x128xf32> to vector<2x128xf32>
    %25 = arith.addf %22, %24 : vector<2x128xf32>
    %c0_23 = arith.constant 0 : index
    %c0_24 = arith.constant 0 : index
    %26 = vector.load %arg8[%c0_23, %c0_24] : memref<2x128xf32, #tpu.memory_space<vmem>>, vector<2x128xf32>
    tpu.vector_store %arg8[%c0_23, %c0_24], %25 {strides = array<i32>} : memref<2x128xf32, #tpu.memory_space<vmem>>, vector<2x128xf32>,
    return
  }
}

module attributes {stable_mosaic.version = 11 : i64} {
  func.func @kernel(%arg0: i32, %arg1: i32, %arg2: memref<1x2x3x256xbf16, #tpu.memory_space<vmem>>, %arg3: memref<3x1024xbf16, #tpu.memory_space<vmem>>, %arg4: memref<1x1024xf32, #tpu.memory_space<vmem>>, %arg5: memref<1x2x1024xf32, #tpu.memory_space<vmem>>, %arg6: memref<2x1024xf32, #tpu.memory_space<vmem>>) attributes {dimension_semantics = [#tpu.dimension_semantics<parallel>, #tpu.dimension_semantics<arbitrary>], iteration_bounds = array<i64: 2, 1>, scalar_prefetch = 0 : i64, scratch_operands = 1 : i64, tpu.core_type = #tpu.core_type<tc>, window_params = [{transform_indices = @transform_0, window_bounds = array<i64: 1, 2, 3, 256>}, {pipeline_mode = #tpu.pipeline_mode<synchronous>, transform_indices = @transform_1, window_bounds = array<i64: 3, 1024>}, {pipeline_mode = #tpu.pipeline_mode<synchronous>, transform_indices = @transform_2, window_bounds = array<i64: 1, 1024>}, {transform_indices = @transform_3, window_bounds = array<i64: 1, 2, 1024>}]} {
    %c0_i32 = arith.constant 0 : i32
    %0 = arith.cmpi eq, %arg1, %c0_i32 : i32
    %1 = arith.extui %0 : i1 to i32
    %c0_i32_0 = arith.constant 0 : i32
    %2 = arith.cmpi ne, %1, %c0_i32_0 : i32
    scf.if %2 {
      %cst_27 = arith.constant 0.000000e+00 : f32
      %31 = vector.broadcast %cst_27 : f32 to vector<2x1024xf32>
      %c0_28 = arith.constant 0 : index
      %c0_29 = arith.constant 0 : index
      %32 = vector.load %arg6[%c0_28, %c0_29] : memref<2x1024xf32, #tpu.memory_space<vmem>>, vector<2x1024xf32>
      tpu.vector_store %arg6[%c0_28, %c0_29], %31 {strides = array<i32>} : memref<2x1024xf32, #tpu.memory_space<vmem>>, vector<2x1024xf32>,
    } else {
    }
    %c0 = arith.constant 0 : index
    %c0_1 = arith.constant 0 : index
    %3 = vector.load %arg3[%c0, %c0_1] : memref<3x1024xbf16, #tpu.memory_space<vmem>>, vector<3x1024xbf16>
    %c0_2 = arith.constant 0 : index
    %c0_3 = arith.constant 0 : index
    %4 = vector.load %arg4[%c0_2, %c0_3] : memref<1x1024xf32, #tpu.memory_space<vmem>>, vector<1x1024xf32>
    %cst = arith.constant 1.000000e+00 : f32
    %5 = vector.broadcast %cst : f32 to vector<1x256xf32>
    %c0_4 = arith.constant 0 : index
    %c0_5 = arith.constant 0 : index
    %c0_6 = arith.constant 0 : index
    %c0_7 = arith.constant 0 : index
    %6 = vector.load %arg2[%c0_4, %c0_5, %c0_6, %c0_7] : memref<1x2x3x256xbf16, #tpu.memory_space<vmem>>, vector<1x1x3x256xbf16>
    %7 = vector.shape_cast %6 : vector<1x1x3x256xbf16> to vector<3x256xbf16>
    %cst_8 = arith.constant dense<0.000000e+00> : vector<256x1024xf32>
    %8 = tpu.matmul %7, %3, %cst_8 {dimension_numbers = #tpu.dot_dimension_numbers<[0], [0], [1], [1], [0, 1, 1, 1], [], []>} : vector<3x256xbf16>, vector<3x1024xbf16>, vector<256x1024xf32> -> vector<256x1024xf32>
    %9 = vector.broadcast %4 : vector<1x1024xf32> to vector<256x1024xf32>
    %10 = arith.addf %8, %9 : vector<256x1024xf32>
    %cst_9 = arith.constant 0.000000e+00 : f32
    %11 = vector.broadcast %cst_9 : f32 to vector<256x1024xf32>
    %12 = arith.maximumf %10, %11 : vector<256x1024xf32>
    %cst_10 = arith.constant dense<0.000000e+00> : vector<1x1024xf32>
    %13 = tpu.matmul %5, %12, %cst_10 {dimension_numbers = #tpu.dot_dimension_numbers<[1], [0], [0], [1], [0, 0, 1, 1], [], []>} : vector<1x256xf32>, vector<256x1024xf32>, vector<1x1024xf32> -> vector<1x1024xf32>
    %c0_11 = arith.constant 0 : index
    %c0_12 = arith.constant 0 : index
    %14 = vector.load %arg6[%c0_11, %c0_12] : memref<2x1024xf32, #tpu.memory_space<vmem>>, vector<1x1024xf32>
    %15 = arith.addf %14, %13 : vector<1x1024xf32>
    %c0_13 = arith.constant 0 : index
    %c0_14 = arith.constant 0 : index
    %16 = vector.load %arg6[%c0_13, %c0_14] : memref<2x1024xf32, #tpu.memory_space<vmem>>, vector<1x1024xf32>
    tpu.vector_store %arg6[%c0_13, %c0_14], %15 {strides = array<i32>} : memref<2x1024xf32, #tpu.memory_space<vmem>>, vector<1x1024xf32>,
    %c0_15 = arith.constant 0 : index
    %c1 = arith.constant 1 : index
    %c0_16 = arith.constant 0 : index
    %c0_17 = arith.constant 0 : index
    %17 = vector.load %arg2[%c0_15, %c1, %c0_16, %c0_17] : memref<1x2x3x256xbf16, #tpu.memory_space<vmem>>, vector<1x1x3x256xbf16>
    %18 = vector.shape_cast %17 : vector<1x1x3x256xbf16> to vector<3x256xbf16>
    %cst_18 = arith.constant dense<0.000000e+00> : vector<256x1024xf32>
    %19 = tpu.matmul %18, %3, %cst_18 {dimension_numbers = #tpu.dot_dimension_numbers<[0], [0], [1], [1], [0, 1, 1, 1], [], []>} : vector<3x256xbf16>, vector<3x1024xbf16>, vector<256x1024xf32> -> vector<256x1024xf32>
    %20 = vector.broadcast %4 : vector<1x1024xf32> to vector<256x1024xf32>
    %21 = arith.addf %19, %20 : vector<256x1024xf32>
    %cst_19 = arith.constant 0.000000e+00 : f32
    %22 = vector.broadcast %cst_19 : f32 to vector<256x1024xf32>
    %23 = arith.maximumf %21, %22 : vector<256x1024xf32>
    %cst_20 = arith.constant dense<0.000000e+00> : vector<1x1024xf32>
    %24 = tpu.matmul %5, %23, %cst_20 {dimension_numbers = #tpu.dot_dimension_numbers<[1], [0], [0], [1], [0, 0, 1, 1], [], []>} : vector<1x256xf32>, vector<256x1024xf32>, vector<1x1024xf32> -> vector<1x1024xf32>
    %c1_21 = arith.constant 1 : index
    %c0_22 = arith.constant 0 : index
    %25 = vector.load %arg6[%c1_21, %c0_22] : memref<2x1024xf32, #tpu.memory_space<vmem>>, vector<1x1024xf32>
    %26 = arith.addf %25, %24 : vector<1x1024xf32>
    %c1_23 = arith.constant 1 : index
    %c0_24 = arith.constant 0 : index
    %27 = vector.load %arg6[%c1_23, %c0_24] : memref<2x1024xf32, #tpu.memory_space<vmem>>, vector<1x1024xf32>
    tpu.vector_store %arg6[%c1_23, %c0_24], %26 {strides = array<i32>} : memref<2x1024xf32, #tpu.memory_space<vmem>>, vector<1x1024xf32>,
    %c0_i32_25 = arith.constant 0 : i32
    %28 = arith.cmpi eq, %arg1, %c0_i32_25 : i32
    %29 = arith.extui %28 : i1 to i32
    %c0_i32_26 = arith.constant 0 : i32
    %30 = arith.cmpi ne, %29, %c0_i32_26 : i32
    scf.if %30 {
      %c0_27 = arith.constant 0 : index
      %c0_28 = arith.constant 0 : index
      %31 = vector.load %arg6[%c0_27, %c0_28] : memref<2x1024xf32, #tpu.memory_space<vmem>>, vector<2x1024xf32>
      %cst_29 = arith.constant 3.906250e-03 : f32
      %32 = vector.broadcast %cst_29 : f32 to vector<2x1024xf32>
      %33 = arith.mulf %31, %32 : vector<2x1024xf32>
      %c0_30 = arith.constant 0 : index
      %c0_31 = arith.constant 0 : index
      %c0_32 = arith.constant 0 : index
      %34 = vector.load %arg5[%c0_30, %c0_31, %c0_32] : memref<1x2x1024xf32, #tpu.memory_space<vmem>>, vector<1x2x1024xf32>
      %35 = vector.shape_cast %34 : vector<1x2x1024xf32> to vector<2x1024xf32>
      %36 = vector.shape_cast %33 : vector<2x1024xf32> to vector<1x2x1024xf32>
      tpu.vector_store %arg5[%c0_30, %c0_31, %c0_32], %36 {strides = array<i32>} : memref<1x2x1024xf32, #tpu.memory_space<vmem>>, vector<1x2x1024xf32>,
    } else {
    }
    return
  }
  func.func @transform_0(%arg0: i32, %arg1: i32) -> (i32, i32, i32, i32) {
    %c0_i32 = arith.constant 0 : i32
    %c0_i32_0 = arith.constant 0 : i32
    %c0_i32_1 = arith.constant 0 : i32
    return %arg0, %c0_i32, %c0_i32_0, %arg1 : i32, i32, i32, i32
  }
  func.func @transform_1(%arg0: i32, %arg1: i32) -> (i32, i32) {
    %c0_i32 = arith.constant 0 : i32
    %c0_i32_0 = arith.constant 0 : i32
    %c0_i32_1 = arith.constant 0 : i32
    return %c0_i32, %c0_i32_0 : i32, i32
  }
  func.func @transform_2(%arg0: i32, %arg1: i32) -> (i32, i32) {
    %c0_i32 = arith.constant 0 : i32
    %c0_i32_0 = arith.constant 0 : i32
    %c0_i32_1 = arith.constant 0 : i32
    return %c0_i32, %c0_i32_0 : i32, i32
  }
  func.func @transform_3(%arg0: i32, %arg1: i32) -> (i32, i32, i32) {
    %c0_i32 = arith.constant 0 : i32
    %c0_i32_0 = arith.constant 0 : i32
    %c0_i32_1 = arith.constant 0 : i32
    return %arg0, %c0_i32, %c0_i32_0 : i32, i32, i32
  }
}

</mosaic_0001>

<bundles_post_ra>
// kernel: posenet_forward.3
= control target key start
LH: loop header
LB: loop body
LE: loop exit
PB: predicated region body
PF: predicated region fallthrough
CT: control target
= control target key end

     0   :  { %13 = vsyncpa [#allocation3], 0  ;;  %s1860_s0 = inlined_call_operand.vmem [shape: f32[2,2,1024], index: 0, kind: input, shape index: {}]   ;;  %s1861_s1 = inlined_call_operand.hbm [shape: f32[1024,256], index: 1, kind: input, shape index: {}]   ;;  %s1862_s2 = inlined_call_operand.hbm [shape: f32[1024,256], index: 2, kind: input, shape index: {}]   ;;  %s1863_s3 = inlined_call_operand.vmem [shape: f32[1,256], index: 3, kind: input, shape index: {}]   ;;  %s1864_s4 = inlined_call_operand.vmem [shape: f32[256,128], index: 4, kind: input, shape index: {}]   ;;  %s1865_s5 = inlined_call_operand.vmem [shape: f32[1,128], index: 5, kind: input, shape index: {}]   ;;  %s1866_s6 = inlined_call_operand.vmem [shape: f32[128,128], index: 6, kind: input, shape index: {}]   ;;  %s1867_s7 = inlined_call_operand.vmem [shape: f32[1,128], index: 7, kind: input, shape index: {}]   ;;  %s1868_s8 = inlined_call_operand.vmem [shape: f32[2,128], index: 8, kind: output, shape index: {}]  }
   0x1   :  { %14 = vsyncpa [#allocation5], 0  ;;  %s1602_s27 = smov [#allocation2]  }
   0x2   :  { %s22_s28 = sshll.u32 %s1602_s27, 4  ;;  %s23_s28 = int_to_ptr.vmem [resolvable:$true] %s22_s28 }
   0x3   :  { %s1566_s29 = scalar_lea.vmem %s23_s28, 32768  ;;  %p1571_p1 = scmp.lt.s32.totalorder %s23_s28, %s23_s28 }
   0x4   :  { %p1567_p0 = scmp.ne.s32.totalorder %s23_s28, %s1566_s29  ;;  %p1572_p2 = scmp.lt.s32.totalorder %s1566_s29, %s1566_s29 }
   0x6   :  { %p1573_p3 = por %p1572_p2, %p1571_p1 }
   0x8   :  { %p1574_p4 = pnand %p1573_p3, %p1567_p0 }
   0xa   :  { %1577 = shalt.err (!%p1574_p4)
}
   0xb   :  { %s1603_s30 = smov 256   ;;  %s1604_s9 = smov 16  }
   0xc   :  { %28 = dma.hbm_to_vmem [thread:$0]  %s1861_s1, 32768, %s23_s28, [#allocation3], %s1603_s30, %s1603_s30, %s1604_s9  }
   0xd   :  { %s1605_s12 = smov [#allocation4]  }
   0xe   :  { %s34_s13 = sshll.u32 %s1605_s12, 4  ;;  %s35_s13 = int_to_ptr.vmem [resolvable:$true] %s34_s13 }
   0xf   :  { %s1586_s14 = scalar_lea.vmem %s35_s13, 32768  ;;  %p1591_p6 = scmp.lt.s32.totalorder %s35_s13, %s35_s13 }
  0x10   :  { %p1587_p5 = scmp.ne.s32.totalorder %s35_s13, %s1586_s14  ;;  %p1592_p7 = scmp.lt.s32.totalorder %s1586_s14, %s1586_s14 }
  0x12   :  { %p1593_p8 = por %p1592_p7, %p1591_p6 }
  0x14   :  { %p1594_p9 = pnand %p1593_p8, %p1587_p5 }
  0x16   :  { %1597 = shalt.err (!%p1594_p9)
}
  0x17   :  { %40 = dma.hbm_to_vmem [thread:$0]  %s1862_s2, 32768, %s35_s13, [#allocation5], %s1603_s30, %s1603_s30, %s1604_s9  }
  0x18   :  { %1598 = dma.done.wait [#allocation3], 32768  }
  0x19   :  { %1599 = vsyncadd [#allocation3], 4294934528 }
  0x1a   :  { %1600 = dma.done.wait [#allocation5], 32768  }
  0x1b   :  { %1601 = vsyncadd [#allocation5], 4294934528  ;;  %v349_v0 = vld [vmem:[#allocation4 + $0xf8] sm:$0xff]  ;;  %v348_v2 = vld [vmem:[#allocation4 + $0xf0] sm:$0xff]  ;;  %vm1608_vm0 = vmmov 0  }
  0x1c   :  { %v413_v1 = vld [vmem:[#allocation4 + $0x2f8] sm:$0xff]  ;;  %618 = vmatprep.subr.mxu0 %v349_v0  ;;  %v412_v3 = vld [vmem:[#allocation4 + $0x2f0] sm:$0xff]  ;;  %v347_v4 = vld [vmem:[#allocation4 + $0xe8] sm:$0xff] }
  0x1d   :  { %689 = vmatprep.subr.mxu1 %v413_v1  ;;  %v411_v5 = vld [vmem:[#allocation4 + $0x2e8] sm:$0xff]  ;;  %619 = vmatpush1.msra.mxu0 %v348_v2  ;;  %v346_v6 = vld [vmem:[#allocation4 + $0xe0] sm:$0xff]  ;;  %v345_v8 = vld [vmem:[#allocation4 + $0xd8] sm:$0xff] }
  0x1e   :  { %690 = vmatpush1.msra.mxu1 %v412_v3  ;;  %v410_v7 = vld [vmem:[#allocation4 + $0x2e0] sm:$0xff]  ;;  %620 = vmatprep.subr.mxu0 %v347_v4  ;;  %v409_v9 = vld [vmem:[#allocation4 + $0x2d8] sm:$0xff]  ;;  %v344_v10 = vld [vmem:[#allocation4 + $0xd0] sm:$0xff] }
  0x1f   :  { %691 = vmatprep.subr.mxu1 %v411_v5  ;;  %v408_v11 = vld [vmem:[#allocation4 + $0x2d0] sm:$0xff]  ;;  %621 = vmatpush1.msra.mxu0 %v346_v6  ;;  %v343_v12 = vld [vmem:[#allocation4 + $0xc8] sm:$0xff]  ;;  %v342_v14 = vld [vmem:[#allocation4 + $0xc0] sm:$0xff] }
  0x20   :  { %692 = vmatpush1.msra.mxu1 %v410_v7  ;;  %v407_v13 = vld [vmem:[#allocation4 + $0x2c8] sm:$0xff]  ;;  %622 = vmatprep.subr.mxu0 %v345_v8  ;;  %v406_v15 = vld [vmem:[#allocation4 + $0x2c0] sm:$0xff]  ;;  %v341_v16 = vld [vmem:[#allocation4 + $0xb8] sm:$0xff] }
  0x21   :  { %693 = vmatprep.subr.mxu1 %v409_v9  ;;  %623 = vmatpush1.msra.mxu0 %v344_v10  ;;  %v405_v17 = vld [vmem:[#allocation4 + $0x2b8] sm:$0xff]  ;;  %v340_v18 = vld [vmem:[#allocation4 + $0xb0] sm:$0xff]  ;;  %v339_v20 = vld [vmem:[#allocation4 + $0xa8] sm:$0xff] }
  0x22   :  { %694 = vmatpush1.msra.mxu1 %v408_v11  ;;  %624 = vmatprep.subr.mxu0 %v343_v12  ;;  %v404_v19 = vld [vmem:[#allocation4 + $0x2b0] sm:$0xff]  ;;  %v403_v21 = vld [vmem:[#allocation4 + $0x2a8] sm:$0xff]  ;;  %v338_v22 = vld [vmem:[#allocation4 + $0xa0] sm:$0xff] }
  0x23   :  { %695 = vmatprep.subr.mxu1 %v407_v13  ;;  %625 = vmatpush1.msra.mxu0 %v342_v14  ;;  %v402_v23 = vld [vmem:[#allocation4 + $0x2a0] sm:$0xff]  ;;  %v337_v24 = vld [vmem:[#allocation4 + $0x98] sm:$0xff]  ;;  %v336_v26 = vld [vmem:[#allocation4 + $0x90] sm:$0xff] }
  0x24   :  { %696 = vmatpush1.msra.mxu1 %v406_v15  ;;  %626 = vmatprep.subr.mxu0 %v341_v16  ;;  %v401_v25 = vld [vmem:[#allocation4 + $0x298] sm:$0xff]  ;;  %v400_v27 = vld [vmem:[#allocation4 + $0x290] sm:$0xff]  ;;  %v335_v28 = vld [vmem:[#allocation4 + $0x88] sm:$0xff] }
  0x25   :  { %697 = vmatprep.subr.mxu1 %v405_v17  ;;  %627 = vmatpush1.msra.mxu0 %v340_v18  ;;  %v399_v29 = vld [vmem:[#allocation4 + $0x288] sm:$0xff]  ;;  %v334_v30 = vld [vmem:[#allocation4 + $0x80] sm:$0xff]  ;;  %v333_v32 = vld [vmem:[#allocation4 + $0x78] sm:$0xff] }
  0x26   :  { %698 = vmatpush1.msra.mxu1 %v404_v19  ;;  %628 = vmatprep.subr.mxu0 %v339_v20  ;;  %v398_v31 = vld [vmem:[#allocation4 + $0x280] sm:$0xff]  ;;  %v397_v33 = vld [vmem:[#allocation4 + $0x278] sm:$0xff]  ;;  %v332_v34 = vld [vmem:[#allocation4 + $0x70] sm:$0xff] }
  0x27   :  { %699 = vmatprep.subr.mxu1 %v403_v21  ;;  %629 = vmatpush1.msra.mxu0 %v338_v22  ;;  %v396_v35 = vld [vmem:[#allocation4 + $0x270] sm:$0xff]  ;;  %v331_v36 = vld [vmem:[#allocation4 + $0x68] sm:$0xff]  ;;  %v330_v38 = vld [vmem:[#allocation4 + $0x60] sm:$0xff] }
  0x28   :  { %700 = vmatpush1.msra.mxu1 %v402_v23  ;;  %630 = vmatprep.subr.mxu0 %v337_v24  ;;  %v395_v37 = vld [vmem:[#allocation4 + $0x268] sm:$0xff]  ;;  %v394_v39 = vld [vmem:[#allocation4 + $0x260] sm:$0xff]  ;;  %v329_v40 = vld [vmem:[#allocation4 + $0x58] sm:$0xff] }
  0x29   :  { %701 = vmatprep.subr.mxu1 %v401_v25  ;;  %631 = vmatpush1.msra.mxu0 %v336_v26  ;;  %v393_v41 = vld [vmem:[#allocation4 + $0x258] sm:$0xff]  ;;  %v328_v42 = vld [vmem:[#allocation4 + $0x50] sm:$0xff]  ;;  %v327_v44 = vld [vmem:[#allocation4 + $0x48] sm:$0xff] }
  0x2a   :  { %702 = vmatpush1.msra.mxu1 %v400_v27  ;;  %632 = vmatprep.subr.mxu0 %v335_v28  ;;  %v392_v43 = vld [vmem:[#allocation4 + $0x250] sm:$0xff]  ;;  %v391_v45 = vld [vmem:[#allocation4 + $0x248] sm:$0xff]  ;;  %v326_v46 = vld [vmem:[#allocation4 + $0x40] sm:$0xff] }
  0x2b   :  { %703 = vmatprep.subr.mxu1 %v399_v29  ;;  %633 = vmatpush1.msra.mxu0 %v334_v30  ;;  %v390_v47 = vld [vmem:[#allocation4 + $0x240] sm:$0xff]  ;;  %v325_v48 = vld [vmem:[#allocation4 + $0x38] sm:$0xff]  ;;  %v324_v50 = vld [vmem:[#allocation4 + $0x30] sm:$0xff]  ;;  %v1606_v30 = vmov 1983009808  }
  0x2c   :  { %704 = vmatpush1.msra.mxu1 %v398_v31  ;;  %634 = vmatprep.subr.mxu0 %v333_v32  ;;  %v389_v49 = vld [vmem:[#allocation4 + $0x238] sm:$0xff]  ;;  %v388_v51 = vld [vmem:[#allocation4 + $0x230] sm:$0xff]  ;;  %v323_v52 = vld [vmem:[#allocation4 + $0x28] sm:$0xff]  ;;  %v578_v31 = vunpack.c.l.s4 %v1606_v30  ;;  %v580_v32 = vlaneseq }
  0x2d   :  { %705 = vmatprep.subr.mxu1 %v397_v33  ;;  %635 = vmatpush1.msra.mxu0 %v332_v34  ;;  %v387_v53 = vld [vmem:[#allocation4 + $0x228] sm:$0xff]  ;;  %v322_v54 = vld [vmem:[#allocation4 + $0x20] sm:$0xff]  ;;  %v321_v56 = vld [vmem:[#allocation4 + $0x18] sm:$0xff] }
  0x2e   :  { %706 = vmatpush1.msra.mxu1 %v396_v35  ;;  %636 = vmatprep.subr.mxu0 %v331_v36  ;;  %v386_v55 = vld [vmem:[#allocation4 + $0x220] sm:$0xff]  ;;  %v385_v57 = vld [vmem:[#allocation4 + $0x218] sm:$0xff]  ;;  %v320_v58 = vld [vmem:[#allocation4 + $0x10] sm:$0xff] }
  0x2f   :  { %707 = vmatprep.subr.mxu1 %v395_v37  ;;  %637 = vmatpush1.msra.mxu0 %v330_v38  ;;  %v384_v59 = vld [vmem:[#allocation4 + $0x210] sm:$0xff]  ;;  %v319_v60 = vld [vmem:[#allocation4 + $0x8] sm:$0xff]  ;;  %v318_v62 = vld [vmem:[#allocation4] sm:$0xff] }
  0x30   :  { %708 = vmatpush1.msra.mxu1 %v394_v39  ;;  %638 = vmatprep.subr.mxu0 %v329_v40  ;;  %v383_v61 = vld [vmem:[#allocation4 + $0x208] sm:$0xff]  ;;  %v382_v63 = vld [vmem:[#allocation4 + $0x200] sm:$0xff]  ;;  %v381_v0 = vld [vmem:[#allocation4 + $0x1f8] sm:$0xff] }
  0x31   :  { %709 = vmatprep.subr.mxu1 %v393_v41  ;;  %639 = vmatpush1.msra.mxu0 %v328_v42  ;;  %v445_v1 = vld [vmem:[#allocation4 + $0x3f8] sm:$0xff]  ;;  %v380_v2 = vld [vmem:[#allocation4 + $0x1f0] sm:$0xff]  ;;  %v379_v4 = vld [vmem:[#allocation4 + $0x1e8] sm:$0xff]  ;;  %v579_v41 = vunpack.c.0.s8 %v578_v31  ;;  %v1660_v42 = vshrl.u32 %v580_v32, 7 }
  0x32   :  { %710 = vmatpush1.msra.mxu1 %v392_v43  ;;  %640 = vmatprep.subr.mxu0 %v327_v44  ;;  %v444_v3 = vld [vmem:[#allocation4 + $0x3f0] sm:$0xff]  ;;  %v443_v5 = vld [vmem:[#allocation4 + $0x3e8] sm:$0xff]  ;;  %v378_v6 = vld [vmem:[#allocation4 + $0x1e0] sm:$0xff] }
  0x33   :  { %711 = vmatprep.subr.mxu1 %v391_v45  ;;  %641 = vmatpush1.msra.mxu0 %v326_v46  ;;  %v442_v7 = vld [vmem:[#allocation4 + $0x3e0] sm:$0xff]  ;;  %v377_v8 = vld [vmem:[#allocation4 + $0x1d8] sm:$0xff]  ;;  %v376_v10 = vld [vmem:[#allocation4 + $0x1d0] sm:$0xff] }
  0x34   :  { %712 = vmatpush1.msra.mxu1 %v390_v47  ;;  %642 = vmatprep.subr.mxu0 %v325_v48  ;;  %v441_v9 = vld [vmem:[#allocation4 + $0x3d8] sm:$0xff]  ;;  %v440_v11 = vld [vmem:[#allocation4 + $0x3d0] sm:$0xff]  ;;  %v375_v12 = vld [vmem:[#allocation4 + $0x1c8] sm:$0xff] }
  0x35   :  { %713 = vmatprep.subr.mxu1 %v389_v49  ;;  %643 = vmatpush1.msra.mxu0 %v324_v50  ;;  %v439_v13 = vld [vmem:[#allocation4 + $0x3c8] sm:$0xff]  ;;  %v374_v14 = vld [vmem:[#allocation4 + $0x1c0] sm:$0xff]  ;;  %v373_v16 = vld [vmem:[#allocation4 + $0x1b8] sm:$0xff] }
  0x36   :  { %714 = vmatpush1.msra.mxu1 %v388_v51  ;;  %644 = vmatprep.subr.mxu0 %v323_v52  ;;  %v438_v15 = vld [vmem:[#allocation4 + $0x3c0] sm:$0xff]  ;;  %v437_v17 = vld [vmem:[#allocation4 + $0x3b8] sm:$0xff]  ;;  %v372_v18 = vld [vmem:[#allocation4 + $0x1b0] sm:$0xff]  ;;  %v1666_v52 = vsub.s32 %v579_v41, %v1660_v42 }
  0x37   :  { %715 = vmatprep.subr.mxu1 %v387_v53  ;;  %645 = vmatpush1.msra.mxu0 %v322_v54  ;;  %v436_v19 = vld [vmem:[#allocation4 + $0x3b0] sm:$0xff]  ;;  %v371_v20 = vld [vmem:[#allocation4 + $0x1a8] sm:$0xff]  ;;  %v370_v22 = vld [vmem:[#allocation4 + $0x1a0] sm:$0xff] }
  0x38   :  { %716 = vmatpush1.msra.mxu1 %v386_v55  ;;  %646 = vmatprep.subr.mxu0 %v321_v56  ;;  %v435_v21 = vld [vmem:[#allocation4 + $0x3a8] sm:$0xff]  ;;  %v434_v23 = vld [vmem:[#allocation4 + $0x3a0] sm:$0xff]  ;;  %v369_v24 = vld [vmem:[#allocation4 + $0x198] sm:$0xff] }
  0x39   :  { %717 = vmatprep.subr.mxu1 %v385_v57  ;;  %647 = vmatpush1.msra.mxu0 %v320_v58  ;;  %v433_v25 = vld [vmem:[#allocation4 + $0x398] sm:$0xff]  ;;  %v368_v26 = vld [vmem:[#allocation4 + $0x190] sm:$0xff]  ;;  %v367_v28 = vld [vmem:[#allocation4 + $0x188] sm:$0xff] }
  0x3a   :  { %718 = vmatpush1.msra.mxu1 %v384_v59  ;;  %648 = vmatprep.subr.mxu0 %v319_v60  ;;  %v432_v27 = vld [vmem:[#allocation4 + $0x390] sm:$0xff]  ;;  %v431_v29 = vld [vmem:[#allocation4 + $0x388] sm:$0xff]  ;;  %v366_v33 = vld [vmem:[#allocation4 + $0x180] sm:$0xff] }
  0x3b   :  { %719 = vmatprep.subr.mxu1 %v383_v61  ;;  %649 = vmatpush1.msra.mxu0 %v318_v62  ;;  %v430_v34 = vld [vmem:[#allocation4 + $0x380] sm:$0xff]  ;;  %v365_v35 = vld [vmem:[#allocation4 + $0x178] sm:$0xff]  ;;  %v364_v37 = vld [vmem:[#allocation4 + $0x170] sm:$0xff] }
  0x3c   :  { %720 = vmatpush1.msra.mxu1 %v382_v63  ;;  %650 = vmatprep.subr.mxu0 %v381_v0  ;;  %v429_v36 = vld [vmem:[#allocation4 + $0x378] sm:$0xff]  ;;  %v428_v38 = vld [vmem:[#allocation4 + $0x370] sm:$0xff]  ;;  %v363_v39 = vld [vmem:[#allocation4 + $0x168] sm:$0xff] }
  0x3d   :  { %721 = vmatprep.subr.mxu1 %v445_v1  ;;  %651 = vmatpush2.msra.mxu0 %v380_v2  ;;  %v427_v40 = vld [vmem:[#allocation4 + $0x368] sm:$0xff]  ;;  %v362_v43 = vld [vmem:[#allocation4 + $0x160] sm:$0xff]  ;;  %v361_v45 = vld [vmem:[#allocation4 + $0x158] sm:$0xff] }
  0x3e   :  { %722 = vmatpush2.msra.mxu1 %v444_v3  ;;  %652 = vmatprep.subr.mxu0 %v379_v4  ;;  %v426_v44 = vld [vmem:[#allocation4 + $0x360] sm:$0xff]  ;;  %v425_v46 = vld [vmem:[#allocation4 + $0x358] sm:$0xff]  ;;  %v1456_v47 = vld [vmem:[%s1860_s0 + $0x10] sm:$0xff] }
  0x3f   :  { %723 = vmatprep.subr.mxu1 %v443_v5  ;;  %653 = vmatpush2.msra.mxu0 %v378_v6  ;;  %v360_v48 = vld [vmem:[#allocation4 + $0x150] sm:$0xff]  ;;  %v359_v50 = vld [vmem:[#allocation4 + $0x148] sm:$0xff]  ;;  %v358_v53 = vld [vmem:[#allocation4 + $0x140] sm:$0xff]  ;;  %v576_v55 = vcombine.high %v1456_v47, %v1456_v47  ;;  %v583_v62 = vrot.slane %v1456_v47, %v1666_v52 }
  0x40   :  { %724 = vmatpush2.msra.mxu1 %v442_v7  ;;  %654 = vmatprep.subr.mxu0 %v377_v8  ;;  %v424_v49 = vld [vmem:[#allocation4 + $0x350] sm:$0xff]  ;;  %v423_v51 = vld [vmem:[#allocation4 + $0x348] sm:$0xff]  ;;  %v422_v54 = vld [vmem:[#allocation4 + $0x340] sm:$0xff] }
  0x41   :  { %725 = vmatprep.subr.mxu1 %v441_v9  ;;  %655 = vmatpush2.msra.mxu0 %v376_v10  ;;  %v357_v56 = vld [vmem:[#allocation4 + $0x138] sm:$0xff]  ;;  %v356_v58 = vld [vmem:[#allocation4 + $0x130] sm:$0xff]  ;;  %v355_v60 = vld [vmem:[#allocation4 + $0x128] sm:$0xff]  ;;  %v590_v1 = vrot.slane %v576_v55, %v1666_v52  ;;  %v591_v8 = vcombine.high %v583_v62, %v583_v62 }
  0x42   :  { %726 = vmatpush2.msra.mxu1 %v440_v11  ;;  %656 = vmatprep.subr.mxu0 %v375_v12  ;;  %v421_v57 = vld [vmem:[#allocation4 + $0x338] sm:$0xff]  ;;  %v420_v59 = vld [vmem:[#allocation4 + $0x330] sm:$0xff]  ;;  %v419_v61 = vld [vmem:[#allocation4 + $0x328] sm:$0xff] }
  0x43   :  { %727 = vmatprep.subr.mxu1 %v439_v13  ;;  %657 = vmatpush2.msra.mxu0 %v374_v14  ;;  %v354_v63 = vld [vmem:[#allocation4 + $0x120] sm:$0xff]  ;;  %v353_v2 = vld [vmem:[#allocation4 + $0x118] sm:$0xff]  ;;  %v352_v4 = vld [vmem:[#allocation4 + $0x110] sm:$0xff]  ;;  %v592_v10 = vcombine.high %v590_v1, %v590_v1 }
  0x44   :  { %728 = vmatpush2.msra.mxu1 %v438_v15  ;;  %658 = vmatprep.subr.mxu0 %v373_v16  ;;  %v418_v0 = vld [vmem:[#allocation4 + $0x320] sm:$0xff]  ;;  %v417_v3 = vld [vmem:[#allocation4 + $0x318] sm:$0xff]  ;;  %v416_v5 = vld [vmem:[#allocation4 + $0x310] sm:$0xff] }
  0x45   :  { %729 = vmatprep.subr.mxu1 %v437_v17  ;;  %659 = vmatpush2.msra.mxu0 %v372_v18  ;;  %v351_v6 = vld [vmem:[#allocation4 + $0x108] sm:$0xff]  ;;  %v350_v9 = vld [vmem:[#allocation4 + $0x100] sm:$0xff]  ;;  %v477_v12 = vld [vmem:[#allocation4 + $0x4f8] sm:$0xff] }
  0x46   :  { %730 = vmatpush2.msra.mxu1 %v436_v19  ;;  %660 = vmatprep.subr.mxu0 %v371_v20  ;;  %v415_v7 = vld [vmem:[#allocation4 + $0x308] sm:$0xff]  ;;  %v414_v11 = vld [vmem:[#allocation4 + $0x300] sm:$0xff]  ;;  %v541_v13 = vld [vmem:[#allocation4 + $0x6f8] sm:$0xff] }
  0x47   :  { %731 = vmatprep.subr.mxu1 %v435_v21  ;;  %661 = vmatpush2.msra.mxu0 %v370_v22  ;;  %v476_v14 = vld [vmem:[#allocation4 + $0x4f0] sm:$0xff]  ;;  %v475_v16 = vld [vmem:[#allocation4 + $0x4e8] sm:$0xff]  ;;  %v474_v18 = vld [vmem:[#allocation4 + $0x4e0] sm:$0xff] }
  0x48   :  { %732 = vmatpush2.msra.mxu1 %v434_v23  ;;  %662 = vmatprep.subr.mxu0 %v369_v24  ;;  %v540_v15 = vld [vmem:[#allocation4 + $0x6f0] sm:$0xff]  ;;  %v539_v17 = vld [vmem:[#allocation4 + $0x6e8] sm:$0xff]  ;;  %v538_v19 = vld [vmem:[#allocation4 + $0x6e0] sm:$0xff] }
  0x49   :  { %733 = vmatprep.subr.mxu1 %v433_v25  ;;  %663 = vmatpush2.msra.mxu0 %v368_v26  ;;  %v473_v20 = vld [vmem:[#allocation4 + $0x4d8] sm:$0xff]  ;;  %v472_v22 = vld [vmem:[#allocation4 + $0x4d0] sm:$0xff]  ;;  %v471_v24 = vld [vmem:[#allocation4 + $0x4c8] sm:$0xff] }
  0x4a   :  { %734 = vmatpush2.msra.mxu1 %v432_v27  ;;  %664 = vmatprep.subr.mxu0 %v367_v28  ;;  %v537_v21 = vld [vmem:[#allocation4 + $0x6d8] sm:$0xff]  ;;  %v536_v23 = vld [vmem:[#allocation4 + $0x6d0] sm:$0xff]  ;;  %v535_v25 = vld [vmem:[#allocation4 + $0x6c8] sm:$0xff] }
  0x4b   :  { %735 = vmatprep.subr.mxu1 %v431_v29  ;;  %665 = vmatpush2.msra.mxu0 %v366_v33  ;;  %v470_v26 = vld [vmem:[#allocation4 + $0x4c0] sm:$0xff]  ;;  %v469_v28 = vld [vmem:[#allocation4 + $0x4b8] sm:$0xff]  ;;  %v468_v30 = vld [vmem:[#allocation4 + $0x4b0] sm:$0xff] }
  0x4c   :  { %736 = vmatpush2.msra.mxu1 %v430_v34  ;;  %666 = vmatprep.subr.mxu0 %v365_v35  ;;  %v534_v27 = vld [vmem:[#allocation4 + $0x6c0] sm:$0xff]  ;;  %v533_v29 = vld [vmem:[#allocation4 + $0x6b8] sm:$0xff]  ;;  %v532_v31 = vld [vmem:[#allocation4 + $0x6b0] sm:$0xff] }
  0x4d   :  { %737 = vmatprep.subr.mxu1 %v429_v36  ;;  %667 = vmatpush2.msra.mxu0 %v364_v37  ;;  %v467_v32 = vld [vmem:[#allocation4 + $0x4a8] sm:$0xff]  ;;  %v466_v34 = vld [vmem:[#allocation4 + $0x4a0] sm:$0xff]  ;;  %v465_v36 = vld [vmem:[#allocation4 + $0x498] sm:$0xff] }
  0x4e   :  { %738 = vmatpush2.msra.mxu1 %v428_v38  ;;  %668 = vmatprep.subr.mxu0 %v363_v39  ;;  %v531_v33 = vld [vmem:[#allocation4 + $0x6a8] sm:$0xff]  ;;  %v530_v35 = vld [vmem:[#allocation4 + $0x6a0] sm:$0xff]  ;;  %v529_v37 = vld [vmem:[#allocation4 + $0x698] sm:$0xff] }
  0x4f   :  { %739 = vmatprep.subr.mxu1 %v427_v40  ;;  %669 = vmatpush2.msra.mxu0 %v362_v43  ;;  %v464_v38 = vld [vmem:[#allocation4 + $0x490] sm:$0xff]  ;;  %v463_v40 = vld [vmem:[#allocation4 + $0x488] sm:$0xff]  ;;  %v462_v43 = vld [vmem:[#allocation4 + $0x480] sm:$0xff] }
  0x50   :  { %740 = vmatpush2.msra.mxu1 %v426_v44  ;;  %670 = vmatprep.subr.mxu0 %v361_v45  ;;  %v528_v39 = vld [vmem:[#allocation4 + $0x690] sm:$0xff]  ;;  %v527_v41 = vld [vmem:[#allocation4 + $0x688] sm:$0xff]  ;;  %v526_v44 = vld [vmem:[#allocation4 + $0x680] sm:$0xff] }
  0x51   :  { %741 = vmatprep.subr.mxu1 %v425_v46  ;;  %671 = vmatpush2.msra.mxu0 %v360_v48  ;;  %v461_v45 = vld [vmem:[#allocation4 + $0x478] sm:$0xff]  ;;  %v460_v47 = vld [vmem:[#allocation4 + $0x470] sm:$0xff] }
  0x52   :  { %742 = vmatpush2.msra.mxu1 %v424_v49  ;;  %672 = vmatprep.subr.mxu0 %v359_v50  ;;  %v525_v46 = vld [vmem:[#allocation4 + $0x678] sm:$0xff]  ;;  %v524_v48 = vld [vmem:[#allocation4 + $0x670] sm:$0xff]  ;;  %v459_v49 = vld [vmem:[#allocation4 + $0x468] sm:$0xff] }
  0x53   :  { %743 = vmatprep.subr.mxu1 %v423_v51  ;;  %673 = vmatpush2.msra.mxu0 %v358_v53  ;;  %v523_v50 = vld [vmem:[#allocation4 + $0x668] sm:$0xff]  ;;  %v458_v51 = vld [vmem:[#allocation4 + $0x460] sm:$0xff]  ;;  %v521_v55 = vld [vmem:[#allocation4 + $0x658] sm:$0xff] }
  0x54   :  { %744 = vmatpush2.msra.mxu1 %v422_v54  ;;  %674 = vmatprep.subr.mxu0 %v357_v56  ;;  %v522_v53 = vld [vmem:[#allocation4 + $0x660] sm:$0xff]  ;;  %v457_v54 = vld [vmem:[#allocation4 + $0x458] sm:$0xff]  ;;  %v456_v56 = vld [vmem:[#allocation4 + $0x450] sm:$0xff] }
  0x55   :  { %745 = vmatprep.subr.mxu1 %v421_v57  ;;  %675 = vmatpush2.msra.mxu0 %v356_v58  ;;  %v520_v57 = vld [vmem:[#allocation4 + $0x650] sm:$0xff]  ;;  %v455_v58 = vld [vmem:[#allocation4 + $0x448] sm:$0xff] }
  0x56   :  { %746 = vmatpush2.msra.mxu1 %v420_v59  ;;  %676 = vmatprep.subr.mxu0 %v355_v60  ;;  %v519_v59 = vld [vmem:[#allocation4 + $0x648] sm:$0xff]  ;;  %v454_v60 = vld [vmem:[#allocation4 + $0x440] sm:$0xff] }
  0x57   :  { %747 = vmatprep.subr.mxu1 %v419_v61  ;;  %677 = vmatpush2.msra.mxu0 %v354_v63  ;;  %v518_v61 = vld [vmem:[#allocation4 + $0x640] sm:$0xff]  ;;  %v517_v63 = vld [vmem:[#allocation4 + $0x638] sm:$0xff] }
  0x58   :  { %748 = vmatpush2.msra.mxu1 %v418_v0  ;;  %678 = vmatprep.subr.mxu0 %v353_v2  ;;  %v452_v0 = vld [vmem:[#allocation4 + $0x430] sm:$0xff]  ;;  %v451_v2 = vld [vmem:[#allocation4 + $0x428] sm:$0xff] }
  0x59   :  { %749 = vmatprep.subr.mxu1 %v417_v3  ;;  %679 = vmatpush2.msra.mxu0 %v352_v4  ;;  %v515_v3 = vld [vmem:[#allocation4 + $0x628] sm:$0xff]  ;;  %v450_v4 = vld [vmem:[#allocation4 + $0x420] sm:$0xff] }
  0x5a   :  { %750 = vmatpush2.msra.mxu1 %v416_v5  ;;  %680 = vmatprep.subr.mxu0 %v351_v6  ;;  %v514_v5 = vld [vmem:[#allocation4 + $0x620] sm:$0xff]  ;;  %v449_v6 = vld [vmem:[#allocation4 + $0x418] sm:$0xff] }
  0x5b   :  { %751 = vmatprep.subr.mxu1 %v415_v7  ;;  %681 = vmatpush2.msra.mxu0 %v350_v9  ;;  %v513_v7 = vld [vmem:[#allocation4 + $0x618] sm:$0xff]  ;;  %v512_v9 = vld [vmem:[#allocation4 + $0x610] sm:$0xff] }
  0x5c   :  { %682 = vmatprep.mubr.f32.mxu0 %v591_v8  ;;  %752 = vmatpush2.msra.mxu1 %v414_v11  ;;  %v448_v8 = vld [vmem:[#allocation4 + $0x410] sm:$0xff]  ;;  %v511_v11 = vld [vmem:[#allocation4 + $0x608] sm:$0xff] }
  0x5d   :  { %753 = vmatprep.mubr.f32.mxu1 %v592_v10  ;;  %683 = vmatmul.mubr.f32.vlgmr.msra.gmra.mxu0 %v583_v62  ;;  %v453_v62 = vld [vmem:[#allocation4 + $0x438] sm:$0xff]  ;;  %v447_v10 = vld [vmem:[#allocation4 + $0x408] sm:$0xff] }
  0x5e   :  { %754 = vmatmul.mubr.f32.vlgmr.msra.gmra.mxu1 %v590_v1  ;;  %760 = vmatprep.subr.mxu0 %v477_v12  ;;  %v516_v1 = vld [vmem:[#allocation4 + $0x630] sm:$0xff]  ;;  %v446_v12 = vld [vmem:[#allocation4 + $0x400] sm:$0xff] }
  0x5f   :  { %831 = vmatprep.subr.mxu1 %v541_v13  ;;  %761 = vmatpush1.msra.mxu0 %v476_v14  ;;  %v510_v13 = vld [vmem:[#allocation4 + $0x600] sm:$0xff]  ;;  %v509_v14 = vld [vmem:[#allocation4 + $0x5f8] sm:$0xff] }
  0x60   :  { %832 = vmatpush1.msra.mxu1 %v540_v15  ;;  %762 = vmatprep.subr.mxu0 %v475_v16  ;;  %v573_v15 = vld [vmem:[#allocation4 + $0x7f8] sm:$0xff]  ;;  %v508_v16 = vld [vmem:[#allocation4 + $0x5f0] sm:$0xff] }
  0x61   :  { %833 = vmatprep.subr.mxu1 %v539_v17  ;;  %763 = vmatpush1.msra.mxu0 %v474_v18  ;;  %v572_v17 = vld [vmem:[#allocation4 + $0x7f0] sm:$0xff]  ;;  %v507_v18 = vld [vmem:[#allocation4 + $0x5e8] sm:$0xff] }
  0x62   :  { %834 = vmatpush1.msra.mxu1 %v538_v19  ;;  %764 = vmatprep.subr.mxu0 %v473_v20  ;;  %v571_v19 = vld [vmem:[#allocation4 + $0x7e8] sm:$0xff]  ;;  %v506_v20 = vld [vmem:[#allocation4 + $0x5e0] sm:$0xff] }
  0x63   :  { %835 = vmatprep.subr.mxu1 %v537_v21  ;;  %765 = vmatpush1.msra.mxu0 %v472_v22  ;;  %v570_v21 = vld [vmem:[#allocation4 + $0x7e0] sm:$0xff]  ;;  %v505_v22 = vld [vmem:[#allocation4 + $0x5d8] sm:$0xff] }
  0x64   :  { %836 = vmatpush1.msra.mxu1 %v536_v23  ;;  %766 = vmatprep.subr.mxu0 %v471_v24  ;;  %v569_v23 = vld [vmem:[#allocation4 + $0x7d8] sm:$0xff]  ;;  %v504_v24 = vld [vmem:[#allocation4 + $0x5d0] sm:$0xff] }
  0x65   :  { %837 = vmatprep.subr.mxu1 %v535_v25  ;;  %767 = vmatpush1.msra.mxu0 %v470_v26  ;;  %v568_v25 = vld [vmem:[#allocation4 + $0x7d0] sm:$0xff]  ;;  %v503_v26 = vld [vmem:[#allocation4 + $0x5c8] sm:$0xff] }
  0x66   :  { %838 = vmatpush1.msra.mxu1 %v534_v27  ;;  %768 = vmatprep.subr.mxu0 %v469_v28  ;;  %v567_v27 = vld [vmem:[#allocation4 + $0x7c8] sm:$0xff]  ;;  %v502_v28 = vld [vmem:[#allocation4 + $0x5c0] sm:$0xff] }
  0x67   :  { %839 = vmatprep.subr.mxu1 %v533_v29  ;;  %769 = vmatpush1.msra.mxu0 %v468_v30  ;;  %v566_v29 = vld [vmem:[#allocation4 + $0x7c0] sm:$0xff]  ;;  %v501_v30 = vld [vmem:[#allocation4 + $0x5b8] sm:$0xff] }
  0x68   :  { %840 = vmatpush1.msra.mxu1 %v532_v31  ;;  %770 = vmatprep.subr.mxu0 %v467_v32  ;;  %v565_v31 = vld [vmem:[#allocation4 + $0x7b8] sm:$0xff]  ;;  %v500_v32 = vld [vmem:[#allocation4 + $0x5b0] sm:$0xff] }
  0x69   :  { %841 = vmatprep.subr.mxu1 %v531_v33  ;;  %771 = vmatpush1.msra.mxu0 %v466_v34  ;;  %v564_v33 = vld [vmem:[#allocation4 + $0x7b0] sm:$0xff]  ;;  %v499_v34 = vld [vmem:[#allocation4 + $0x5a8] sm:$0xff] }
  0x6a   :  { %842 = vmatpush1.msra.mxu1 %v530_v35  ;;  %772 = vmatprep.subr.mxu0 %v465_v36  ;;  %v563_v35 = vld [vmem:[#allocation4 + $0x7a8] sm:$0xff]  ;;  %v498_v36 = vld [vmem:[#allocation4 + $0x5a0] sm:$0xff] }
  0x6b   :  { %843 = vmatprep.subr.mxu1 %v529_v37  ;;  %773 = vmatpush1.msra.mxu0 %v464_v38  ;;  %v562_v37 = vld [vmem:[#allocation4 + $0x7a0] sm:$0xff]  ;;  %v497_v38 = vld [vmem:[#allocation4 + $0x598] sm:$0xff] }
  0x6c   :  { %844 = vmatpush1.msra.mxu1 %v528_v39  ;;  %774 = vmatprep.subr.mxu0 %v463_v40  ;;  %v561_v39 = vld [vmem:[#allocation4 + $0x798] sm:$0xff]  ;;  %v496_v40 = vld [vmem:[#allocation4 + $0x590] sm:$0xff] }
  0x6d   :  { %845 = vmatprep.subr.mxu1 %v527_v41  ;;  %775 = vmatpush1.msra.mxu0 %v462_v43  ;;  %v560_v41 = vld [vmem:[#allocation4 + $0x790] sm:$0xff]  ;;  %v495_v43 = vld [vmem:[#allocation4 + $0x588] sm:$0xff] }
  0x6e   :  { %846 = vmatpush1.msra.mxu1 %v526_v44  ;;  %776 = vmatprep.subr.mxu0 %v461_v45  ;;  %v559_v44 = vld [vmem:[#allocation4 + $0x788] sm:$0xff]  ;;  %v494_v45 = vld [vmem:[#allocation4 + $0x580] sm:$0xff] }
  0x6f   :  { %847 = vmatprep.subr.mxu1 %v525_v46  ;;  %777 = vmatpush1.msra.mxu0 %v460_v47  ;;  %v558_v46 = vld [vmem:[#allocation4 + $0x780] sm:$0xff]  ;;  %v493_v47 = vld [vmem:[#allocation4 + $0x578] sm:$0xff] }
  0x70   :  { %848 = vmatpush1.msra.mxu1 %v524_v48  ;;  %778 = vmatprep.subr.mxu0 %v459_v49  ;;  %v557_v48 = vld [vmem:[#allocation4 + $0x778] sm:$0xff]  ;;  %v492_v49 = vld [vmem:[#allocation4 + $0x570] sm:$0xff] }
  0x71   :  { %849 = vmatprep.subr.mxu1 %v523_v50  ;;  %779 = vmatpush1.msra.mxu0 %v458_v51  ;;  %v556_v50 = vld [vmem:[#allocation4 + $0x770] sm:$0xff]  ;;  %v491_v51 = vld [vmem:[#allocation4 + $0x568] sm:$0xff] }
  0x72   :  { %850 = vmatpush1.msra.mxu1 %v522_v53  ;;  %780 = vmatprep.subr.mxu0 %v457_v54  ;;  %v555_v53 = vld [vmem:[#allocation4 + $0x768] sm:$0xff]  ;;  %v490_v54 = vld [vmem:[#allocation4 + $0x560] sm:$0xff] }
  0x73   :  { %851 = vmatprep.subr.mxu1 %v521_v55  ;;  %781 = vmatpush1.msra.mxu0 %v456_v56  ;;  %v554_v55 = vld [vmem:[#allocation4 + $0x760] sm:$0xff]  ;;  %v489_v56 = vld [vmem:[#allocation4 + $0x558] sm:$0xff] }
  0x74   :  { %852 = vmatpush1.msra.mxu1 %v520_v57  ;;  %782 = vmatprep.subr.mxu0 %v455_v58  ;;  %v553_v57 = vld [vmem:[#allocation4 + $0x758] sm:$0xff]  ;;  %v488_v58 = vld [vmem:[#allocation4 + $0x550] sm:$0xff] }
  0x75   :  { %853 = vmatprep.subr.mxu1 %v519_v59  ;;  %783 = vmatpush1.msra.mxu0 %v454_v60  ;;  %v552_v59 = vld [vmem:[#allocation4 + $0x750] sm:$0xff]  ;;  %v1457_v60 = vld [vmem:[%s1860_s0 + $0x18] sm:$0xff] }
  0x76   :  { %854 = vmatpush1.msra.mxu1 %v518_v61  ;;  %784 = vmatprep.subr.mxu0 %v453_v62  ;;  %v487_v61 = vld [vmem:[#allocation4 + $0x548] sm:$0xff] }
  0x77   :  { %855 = vmatprep.subr.mxu1 %v517_v63  ;;  %785 = vmatpush1.msra.mxu0 %v452_v0  ;;  %v551_v62 = vld [vmem:[#allocation4 + $0x748] sm:$0xff]  ;;  %v486_v63 = vld [vmem:[#allocation4 + $0x540] sm:$0xff] }
  0x78   :  { %856 = vmatpush1.msra.mxu1 %v516_v1  ;;  %786 = vmatprep.subr.mxu0 %v451_v2  ;;  %v550_v0 = vld [vmem:[#allocation4 + $0x740] sm:$0xff]  ;;  %v485_v1 = vld [vmem:[#allocation4 + $0x538] sm:$0xff] }
  0x79   :  { %857 = vmatprep.subr.mxu1 %v515_v3  ;;  %787 = vmatpush1.msra.mxu0 %v450_v4  ;;  %v549_v2 = vld [vmem:[#allocation4 + $0x738] sm:$0xff]  ;;  %v593_v3 = vcombine.high %v1457_v60, %v1457_v60  ;;  %v484_v4 = vld [vmem:[#allocation4 + $0x530] sm:$0xff] }
  0x7a   :  { %858 = vmatpush1.msra.mxu1 %v514_v5  ;;  %788 = vmatprep.subr.mxu0 %v449_v6  ;;  %v548_v5 = vld [vmem:[#allocation4 + $0x730] sm:$0xff]  ;;  %v483_v6 = vld [vmem:[#allocation4 + $0x528] sm:$0xff] }
  0x7b   :  { %859 = vmatprep.subr.mxu1 %v513_v7  ;;  %789 = vmatpush1.msra.mxu0 %v448_v8  ;;  %v547_v7 = vld [vmem:[#allocation4 + $0x728] sm:$0xff]  ;;  %v600_v8 = vrot.slane %v1457_v60, %v1666_v52 }
  0x7c   :  { %860 = vmatpush1.msra.mxu1 %v512_v9  ;;  %790 = vmatprep.subr.mxu0 %v447_v10  ;;  %v482_v9 = vld [vmem:[#allocation4 + $0x520] sm:$0xff]  ;;  %v75_v60 = vld [vmem:[#allocation2 + $0x68] sm:$0xff] }
  0x7d   :  { %861 = vmatprep.subr.mxu1 %v511_v11  ;;  %791 = vmatpush1.msra.mxu0 %v446_v12  ;;  %v546_v10 = vld [vmem:[#allocation4 + $0x720] sm:$0xff]  ;;  %v481_v11 = vld [vmem:[#allocation4 + $0x518] sm:$0xff] }
  0x7e   :  { %862 = vmatpush1.msra.mxu1 %v510_v13  ;;  %792 = vmatprep.subr.mxu0 %v509_v14  ;;  %v545_v12 = vld [vmem:[#allocation4 + $0x718] sm:$0xff]  ;;  %v607_v13 = vrot.slane %v593_v3, %v1666_v52  ;;  %v480_v14 = vld [vmem:[#allocation4 + $0x510] sm:$0xff] }
  0x7f   :  { %863 = vmatprep.subr.mxu1 %v573_v15  ;;  %793 = vmatpush2.msra.mxu0 %v508_v16  ;;  %v544_v15 = vld [vmem:[#allocation4 + $0x710] sm:$0xff]  ;;  %v479_v16 = vld [vmem:[#allocation4 + $0x508] sm:$0xff] }
  0x80   :  { %864 = vmatpush2.msra.mxu1 %v572_v17  ;;  %794 = vmatprep.subr.mxu0 %v507_v18  ;;  %v543_v17 = vld [vmem:[#allocation4 + $0x708] sm:$0xff]  ;;  %v608_v18 = vcombine.high %v600_v8, %v600_v8  ;;  %v136_v3 = vld [vmem:[#allocation2 + $0x250] sm:$0xff] }
  0x81   :  { %865 = vmatprep.subr.mxu1 %v571_v19  ;;  %795 = vmatpush2.msra.mxu0 %v506_v20  ;;  %v478_v19 = vld [vmem:[#allocation4 + $0x500] sm:$0xff] }
  0x82   :  { %866 = vmatpush2.msra.mxu1 %v570_v21  ;;  %796 = vmatprep.subr.mxu0 %v505_v22  ;;  %v542_v20 = vld [vmem:[#allocation4 + $0x700] sm:$0xff]  ;;  %v609_v21 = vcombine.high %v607_v13, %v607_v13  ;;  %v93_v22 = vld [vmem:[#allocation2 + $0xf8] sm:$0xff] }
  0x83   :  { %867 = vmatprep.subr.mxu1 %v569_v23  ;;  %797 = vmatpush2.msra.mxu0 %v504_v24  ;;  %v157_v23 = vld [vmem:[#allocation2 + $0x2f8] sm:$0xff]  ;;  %v92_v24 = vld [vmem:[#allocation2 + $0xf0] sm:$0xff] }
  0x84   :  { %868 = vmatpush2.msra.mxu1 %v568_v25  ;;  %798 = vmatprep.subr.mxu0 %v503_v26  ;;  %v156_v25 = vld [vmem:[#allocation2 + $0x2f0] sm:$0xff]  ;;  %v91_v26 = vld [vmem:[#allocation2 + $0xe8] sm:$0xff] }
  0x85   :  { %869 = vmatprep.subr.mxu1 %v567_v27  ;;  %799 = vmatpush2.msra.mxu0 %v502_v28  ;;  %v155_v27 = vld [vmem:[#allocation2 + $0x2e8] sm:$0xff]  ;;  %v90_v28 = vld [vmem:[#allocation2 + $0xe0] sm:$0xff] }
  0x86   :  { %870 = vmatpush2.msra.mxu1 %v566_v29  ;;  %800 = vmatprep.subr.mxu0 %v501_v30  ;;  %v154_v29 = vld [vmem:[#allocation2 + $0x2e0] sm:$0xff]  ;;  %v89_v30 = vld [vmem:[#allocation2 + $0xd8] sm:$0xff] }
  0x87   :  { %871 = vmatprep.subr.mxu1 %v565_v31  ;;  %801 = vmatpush2.msra.mxu0 %v500_v32  ;;  %v153_v31 = vld [vmem:[#allocation2 + $0x2d8] sm:$0xff]  ;;  %v88_v32 = vld [vmem:[#allocation2 + $0xd0] sm:$0xff] }
  0x88   :  { %872 = vmatpush2.msra.mxu1 %v564_v33  ;;  %802 = vmatprep.subr.mxu0 %v499_v34  ;;  %v152_v33 = vld [vmem:[#allocation2 + $0x2d0] sm:$0xff]  ;;  %v87_v34 = vld [vmem:[#allocation2 + $0xc8] sm:$0xff] }
  0x89   :  { %873 = vmatprep.subr.mxu1 %v563_v35  ;;  %803 = vmatpush2.msra.mxu0 %v498_v36  ;;  %v151_v35 = vld [vmem:[#allocation2 + $0x2c8] sm:$0xff]  ;;  %v86_v36 = vld [vmem:[#allocation2 + $0xc0] sm:$0xff] }
  0x8a   :  { %874 = vmatpush2.msra.mxu1 %v562_v37  ;;  %804 = vmatprep.subr.mxu0 %v497_v38  ;;  %v150_v37 = vld [vmem:[#allocation2 + $0x2c0] sm:$0xff]  ;;  %v85_v38 = vld [vmem:[#allocation2 + $0xb8] sm:$0xff] }
  0x8b   :  { %875 = vmatprep.subr.mxu1 %v561_v39  ;;  %805 = vmatpush2.msra.mxu0 %v496_v40  ;;  %v149_v39 = vld [vmem:[#allocation2 + $0x2b8] sm:$0xff]  ;;  %v84_v40 = vld [vmem:[#allocation2 + $0xb0] sm:$0xff] }
  0x8c   :  { %876 = vmatpush2.msra.mxu1 %v560_v41  ;;  %806 = vmatprep.subr.mxu0 %v495_v43  ;;  %v148_v41 = vld [vmem:[#allocation2 + $0x2b0] sm:$0xff]  ;;  %v83_v43 = vld [vmem:[#allocation2 + $0xa8] sm:$0xff] }
  0x8d   :  { %877 = vmatprep.subr.mxu1 %v559_v44  ;;  %807 = vmatpush2.msra.mxu0 %v494_v45  ;;  %v147_v44 = vld [vmem:[#allocation2 + $0x2a8] sm:$0xff]  ;;  %v82_v45 = vld [vmem:[#allocation2 + $0xa0] sm:$0xff] }
  0x8e   :  { %878 = vmatpush2.msra.mxu1 %v558_v46  ;;  %808 = vmatprep.subr.mxu0 %v493_v47  ;;  %v146_v46 = vld [vmem:[#allocation2 + $0x2a0] sm:$0xff]  ;;  %v81_v47 = vld [vmem:[#allocation2 + $0x98] sm:$0xff] }
  0x8f   :  { %879 = vmatprep.subr.mxu1 %v557_v48  ;;  %809 = vmatpush2.msra.mxu0 %v492_v49  ;;  %v145_v48 = vld [vmem:[#allocation2 + $0x298] sm:$0xff]  ;;  %v80_v49 = vld [vmem:[#allocation2 + $0x90] sm:$0xff] }
  0x90   :  { %880 = vmatpush2.msra.mxu1 %v556_v50  ;;  %810 = vmatprep.subr.mxu0 %v491_v51  ;;  %v144_v50 = vld [vmem:[#allocation2 + $0x290] sm:$0xff]  ;;  %v79_v51 = vld [vmem:[#allocation2 + $0x88] sm:$0xff] }
  0x91   :  { %881 = vmatprep.subr.mxu1 %v555_v53  ;;  %811 = vmatpush2.msra.mxu0 %v490_v54  ;;  %v143_v53 = vld [vmem:[#allocation2 + $0x288] sm:$0xff]  ;;  %v78_v54 = vld [vmem:[#allocation2 + $0x80] sm:$0xff] }
  0x92   :  { %882 = vmatpush2.msra.mxu1 %v554_v55  ;;  %812 = vmatprep.subr.mxu0 %v489_v56  ;;  %v142_v55 = vld [vmem:[#allocation2 + $0x280] sm:$0xff]  ;;  %v77_v56 = vld [vmem:[#allocation2 + $0x78] sm:$0xff] }
  0x93   :  { %883 = vmatprep.subr.mxu1 %v553_v57  ;;  %813 = vmatpush2.msra.mxu0 %v488_v58  ;;  %v141_v57 = vld [vmem:[#allocation2 + $0x278] sm:$0xff]  ;;  %v76_v58 = vld [vmem:[#allocation2 + $0x70] sm:$0xff] }
  0x94   :  { %884 = vmatpush2.msra.mxu1 %v552_v59  ;;  %814 = vmatprep.subr.mxu0 %v487_v61  ;;  %v140_v59 = vld [vmem:[#allocation2 + $0x270] sm:$0xff]  ;;  %v139_v61 = vld [vmem:[#allocation2 + $0x268] sm:$0xff] }
  0x95   :  { %885 = vmatprep.subr.mxu1 %v551_v62  ;;  %815 = vmatpush2.msra.mxu0 %v486_v63  ;;  %v74_v62 = vld [vmem:[#allocation2 + $0x60] sm:$0xff] }
  0x96   :  { %886 = vmatpush2.msra.mxu1 %v550_v0  ;;  %816 = vmatprep.subr.mxu0 %v485_v1  ;;  %v138_v63 = vld [vmem:[#allocation2 + $0x260] sm:$0xff]  ;;  %v73_v0 = vld [vmem:[#allocation2 + $0x58] sm:$0xff] }
  0x97   :  { %887 = vmatprep.subr.mxu1 %v549_v2  ;;  %817 = vmatpush2.msra.mxu0 %v484_v4  ;;  %v137_v1 = vld [vmem:[#allocation2 + $0x258] sm:$0xff]  ;;  %v72_v2 = vld [vmem:[#allocation2 + $0x50] sm:$0xff]  ;;  %v71_v4 = vld [vmem:[#allocation2 + $0x48] sm:$0xff] }
  0x98   :  { %888 = vmatpush2.msra.mxu1 %v548_v5  ;;  %818 = vmatprep.subr.mxu0 %v483_v6  ;;  %v135_v5 = vld [vmem:[#allocation2 + $0x248] sm:$0xff]  ;;  %v70_v6 = vld [vmem:[#allocation2 + $0x40] sm:$0xff] }
  0x99   :  { %889 = vmatprep.subr.mxu1 %v547_v7  ;;  %819 = vmatpush2.msra.mxu0 %v482_v9  ;;  %v134_v7 = vld [vmem:[#allocation2 + $0x240] sm:$0xff]  ;;  %v133_v9 = vld [vmem:[#allocation2 + $0x238] sm:$0xff] }
  0x9a   :  { %890 = vmatpush2.msra.mxu1 %v546_v10  ;;  %820 = vmatprep.subr.mxu0 %v481_v11  ;;  %v68_v10 = vld [vmem:[#allocation2 + $0x30] sm:$0xff] }
  0x9b   :  { %891 = vmatprep.subr.mxu1 %v545_v12  ;;  %821 = vmatpush2.msra.mxu0 %v480_v14  ;;  %v132_v11 = vld [vmem:[#allocation2 + $0x230] sm:$0xff]  ;;  %v67_v12 = vld [vmem:[#allocation2 + $0x28] sm:$0xff]  ;;  %v66_v14 = vld [vmem:[#allocation2 + $0x20] sm:$0xff] }
  0x9c   :  { %892 = vmatpush2.msra.mxu1 %v544_v15  ;;  %822 = vmatprep.subr.mxu0 %v479_v16  ;;  %v130_v15 = vld [vmem:[#allocation2 + $0x220] sm:$0xff]  ;;  %v65_v16 = vld [vmem:[#allocation2 + $0x18] sm:$0xff] }
  0x9d   :  { %893 = vmatprep.subr.mxu1 %v543_v17  ;;  %823 = vmatpush2.msra.mxu0 %v478_v19  ;;  %v129_v17 = vld [vmem:[#allocation2 + $0x218] sm:$0xff]  ;;  %v128_v19 = vld [vmem:[#allocation2 + $0x210] sm:$0xff] }
  0x9e   :  { %824 = vmatprep.mubr.f32.mxu0 %v608_v18  ;;  %894 = vmatpush2.msra.mxu1 %v542_v20  ;;  %v64_v18 = vld [vmem:[#allocation2 + $0x10] sm:$0xff]  ;;  %v63_v20 = vld [vmem:[#allocation2 + $0x8] sm:$0xff] }
  0x9f   :  { %825 = vmatmul.mubr.f32.vlgmr.msra.gmra.mxu0 %v600_v8  ;;  %895 = vmatprep.mubr.f32.mxu1 %v609_v21  ;;  %v69_v8 = vld [vmem:[#allocation2 + $0x38] sm:$0xff]  ;;  %v127_v21 = vld [vmem:[#allocation2 + $0x208] sm:$0xff] }
  0xa0   :  { %946 = vmatprep.subr.mxu0 %v93_v22  ;;  %1017 = vmatprep.subr.mxu1 %v157_v23  ;;  %v62_v22 = vld [vmem:[#allocation2] sm:$0xff] }
  0xa1   :  { %896 = vmatmul.mubr.f32.vlgmr.msra.gmra.mxu1 %v607_v13  ;;  %947 = vmatpush1.msra.mxu0 %v92_v24  ;;  %v131_v13 = vld [vmem:[#allocation2 + $0x228] sm:$0xff]  ;;  %v126_v23 = vld [vmem:[#allocation2 + $0x200] sm:$0xff]  ;;  %v125_v24 = vld [vmem:[#allocation2 + $0x1f8] sm:$0xff] }
  0xa2   :  { %1018 = vmatpush1.msra.mxu1 %v156_v25  ;;  %948 = vmatprep.subr.mxu0 %v91_v26  ;;  %v189_v25 = vld [vmem:[#allocation2 + $0x3f8] sm:$0xff]  ;;  %v124_v26 = vld [vmem:[#allocation2 + $0x1f0] sm:$0xff] }
  0xa3   :  { %1019 = vmatprep.subr.mxu1 %v155_v27  ;;  %949 = vmatpush1.msra.mxu0 %v90_v28  ;;  %v188_v27 = vld [vmem:[#allocation2 + $0x3f0] sm:$0xff]  ;;  %v123_v28 = vld [vmem:[#allocation2 + $0x1e8] sm:$0xff] }
  0xa4   :  { %1020 = vmatpush1.msra.mxu1 %v154_v29  ;;  %950 = vmatprep.subr.mxu0 %v89_v30  ;;  %v187_v29 = vld [vmem:[#allocation2 + $0x3e8] sm:$0xff]  ;;  %v122_v30 = vld [vmem:[#allocation2 + $0x1e0] sm:$0xff] }
  0xa5   :  { %1021 = vmatprep.subr.mxu1 %v153_v31  ;;  %951 = vmatpush1.msra.mxu0 %v88_v32  ;;  %v186_v31 = vld [vmem:[#allocation2 + $0x3e0] sm:$0xff]  ;;  %v121_v32 = vld [vmem:[#allocation2 + $0x1d8] sm:$0xff] }
  0xa6   :  { %1022 = vmatpush1.msra.mxu1 %v152_v33  ;;  %952 = vmatprep.subr.mxu0 %v87_v34  ;;  %v185_v33 = vld [vmem:[#allocation2 + $0x3d8] sm:$0xff]  ;;  %v120_v34 = vld [vmem:[#allocation2 + $0x1d0] sm:$0xff] }
  0xa7   :  { %1023 = vmatprep.subr.mxu1 %v151_v35  ;;  %953 = vmatpush1.msra.mxu0 %v86_v36  ;;  %v184_v35 = vld [vmem:[#allocation2 + $0x3d0] sm:$0xff]  ;;  %v119_v36 = vld [vmem:[#allocation2 + $0x1c8] sm:$0xff] }
  0xa8   :  { %1024 = vmatpush1.msra.mxu1 %v150_v37  ;;  %954 = vmatprep.subr.mxu0 %v85_v38  ;;  %v183_v37 = vld [vmem:[#allocation2 + $0x3c8] sm:$0xff]  ;;  %v118_v38 = vld [vmem:[#allocation2 + $0x1c0] sm:$0xff] }
  0xa9   :  { %1025 = vmatprep.subr.mxu1 %v149_v39  ;;  %955 = vmatpush1.msra.mxu0 %v84_v40  ;;  %v182_v39 = vld [vmem:[#allocation2 + $0x3c0] sm:$0xff]  ;;  %v117_v40 = vld [vmem:[#allocation2 + $0x1b8] sm:$0xff] }
  0xaa   :  { %1026 = vmatpush1.msra.mxu1 %v148_v41  ;;  %956 = vmatprep.subr.mxu0 %v83_v43  ;;  %v181_v41 = vld [vmem:[#allocation2 + $0x3b8] sm:$0xff]  ;;  %v116_v43 = vld [vmem:[#allocation2 + $0x1b0] sm:$0xff] }
  0xab   :  { %1027 = vmatprep.subr.mxu1 %v147_v44  ;;  %957 = vmatpush1.msra.mxu0 %v82_v45  ;;  %v180_v44 = vld [vmem:[#allocation2 + $0x3b0] sm:$0xff]  ;;  %v115_v45 = vld [vmem:[#allocation2 + $0x1a8] sm:$0xff] }
  0xac   :  { %1028 = vmatpush1.msra.mxu1 %v146_v46  ;;  %958 = vmatprep.subr.mxu0 %v81_v47  ;;  %v179_v46 = vld [vmem:[#allocation2 + $0x3a8] sm:$0xff]  ;;  %v114_v47 = vld [vmem:[#allocation2 + $0x1a0] sm:$0xff] }
  0xad   :  { %1029 = vmatprep.subr.mxu1 %v145_v48  ;;  %959 = vmatpush1.msra.mxu0 %v80_v49  ;;  %v178_v48 = vld [vmem:[#allocation2 + $0x3a0] sm:$0xff]  ;;  %v113_v49 = vld [vmem:[#allocation2 + $0x198] sm:$0xff] }
  0xae   :  { %1030 = vmatpush1.msra.mxu1 %v144_v50  ;;  %960 = vmatprep.subr.mxu0 %v79_v51  ;;  %v177_v50 = vld [vmem:[#allocation2 + $0x398] sm:$0xff]  ;;  %v112_v51 = vld [vmem:[#allocation2 + $0x190] sm:$0xff] }
  0xaf   :  { %1031 = vmatprep.subr.mxu1 %v143_v53  ;;  %961 = vmatpush1.msra.mxu0 %v78_v54  ;;  %v176_v53 = vld [vmem:[#allocation2 + $0x390] sm:$0xff]  ;;  %v111_v54 = vld [vmem:[#allocation2 + $0x188] sm:$0xff] }
  0xb0   :  { %1032 = vmatpush1.msra.mxu1 %v142_v55  ;;  %962 = vmatprep.subr.mxu0 %v77_v56  ;;  %v175_v55 = vld [vmem:[#allocation2 + $0x388] sm:$0xff]  ;;  %v110_v56 = vld [vmem:[#allocation2 + $0x180] sm:$0xff] }
  0xb1   :  { %1033 = vmatprep.subr.mxu1 %v141_v57  ;;  %963 = vmatpush1.msra.mxu0 %v76_v58  ;;  %v174_v57 = vld [vmem:[#allocation2 + $0x380] sm:$0xff]  ;;  %v109_v58 = vld [vmem:[#allocation2 + $0x178] sm:$0xff] }
  0xb2   :  { %1034 = vmatpush1.msra.mxu1 %v140_v59  ;;  %964 = vmatprep.subr.mxu0 %v75_v60  ;;  %v173_v59 = vld [vmem:[#allocation2 + $0x378] sm:$0xff]  ;;  %v108_v60 = vld [vmem:[#allocation2 + $0x170] sm:$0xff] }
  0xb3   :  { %1035 = vmatprep.subr.mxu1 %v139_v61  ;;  %965 = vmatpush1.msra.mxu0 %v74_v62  ;;  %v172_v61 = vld [vmem:[#allocation2 + $0x370] sm:$0xff]  ;;  %v107_v62 = vld [vmem:[#allocation2 + $0x168] sm:$0xff] }
  0xb4   :  { %1036 = vmatpush1.msra.mxu1 %v138_v63  ;;  %966 = vmatprep.subr.mxu0 %v73_v0  ;;  %v171_v63 = vld [vmem:[#allocation2 + $0x368] sm:$0xff]  ;;  %v106_v0 = vld [vmem:[#allocation2 + $0x160] sm:$0xff] }
  0xb5   :  { %1037 = vmatprep.subr.mxu1 %v137_v1  ;;  %967 = vmatpush1.msra.mxu0 %v72_v2  ;;  %v170_v1 = vld [vmem:[#allocation2 + $0x360] sm:$0xff]  ;;  %v105_v2 = vld [vmem:[#allocation2 + $0x158] sm:$0xff] }
  0xb6   :  { %1038 = vmatpush1.msra.mxu1 %v136_v3  ;;  %968 = vmatprep.subr.mxu0 %v71_v4  ;;  %v169_v3 = vld [vmem:[#allocation2 + $0x358] sm:$0xff]  ;;  %v104_v4 = vld [vmem:[#allocation2 + $0x150] sm:$0xff] }
  0xb7   :  { %1039 = vmatprep.subr.mxu1 %v135_v5  ;;  %969 = vmatpush1.msra.mxu0 %v70_v6  ;;  %v168_v5 = vld [vmem:[#allocation2 + $0x350] sm:$0xff]  ;;  %v57_v6 = vld [vmem:[%s1860_s0] sm:$0xff] }
  0xb8   :  { %1040 = vmatpush1.msra.mxu1 %v134_v7  ;;  %970 = vmatprep.subr.mxu0 %v69_v8  ;;  %v103_v7 = vld [vmem:[#allocation2 + $0x148] sm:$0xff] }
  0xb9   :  { %1041 = vmatprep.subr.mxu1 %v133_v9  ;;  %971 = vmatpush1.msra.mxu0 %v68_v10  ;;  %v167_v8 = vld [vmem:[#allocation2 + $0x348] sm:$0xff]  ;;  %v102_v9 = vld [vmem:[#allocation2 + $0x140] sm:$0xff] }
  0xba   :  { %1042 = vmatpush1.msra.mxu1 %v132_v11  ;;  %972 = vmatprep.subr.mxu0 %v67_v12  ;;  %v166_v10 = vld [vmem:[#allocation2 + $0x340] sm:$0xff]  ;;  %v101_v11 = vld [vmem:[#allocation2 + $0x138] sm:$0xff] }
  0xbb   :  { %1043 = vmatprep.subr.mxu1 %v131_v13  ;;  %973 = vmatpush1.msra.mxu0 %v66_v14  ;;  %v165_v12 = vld [vmem:[#allocation2 + $0x338] sm:$0xff]  ;;  %v904_v13 = vcombine.high %v57_v6, %v57_v6  ;;  %v100_v14 = vld [vmem:[#allocation2 + $0x130] sm:$0xff] }
  0xbc   :  { %1044 = vmatpush1.msra.mxu1 %v130_v15  ;;  %974 = vmatprep.subr.mxu0 %v65_v16  ;;  %v164_v15 = vld [vmem:[#allocation2 + $0x330] sm:$0xff]  ;;  %v99_v16 = vld [vmem:[#allocation2 + $0x128] sm:$0xff] }
  0xbd   :  { %1045 = vmatprep.subr.mxu1 %v129_v17  ;;  %975 = vmatpush1.msra.mxu0 %v64_v18  ;;  %v163_v17 = vld [vmem:[#allocation2 + $0x328] sm:$0xff]  ;;  %v911_v18 = vrot.slane %v57_v6, %v1666_v52 }
  0xbe   :  { %1046 = vmatpush1.msra.mxu1 %v128_v19  ;;  %976 = vmatprep.subr.mxu0 %v63_v20  ;;  %v98_v19 = vld [vmem:[#allocation2 + $0x120] sm:$0xff]  ;;  %v203_v6 = vld [vmem:[#allocation2 + $0x468] sm:$0xff] }
  0xbf   :  { %1047 = vmatprep.subr.mxu1 %v127_v21  ;;  %977 = vmatpush1.msra.mxu0 %v62_v22  ;;  %v162_v20 = vld [vmem:[#allocation2 + $0x320] sm:$0xff]  ;;  %v97_v21 = vld [vmem:[#allocation2 + $0x118] sm:$0xff] }
  0xc0   :  { %1048 = vmatpush1.msra.mxu1 %v126_v23  ;;  %978 = vmatprep.subr.mxu0 %v125_v24  ;;  %v161_v22 = vld [vmem:[#allocation2 + $0x318] sm:$0xff]  ;;  %v918_v23 = vrot.slane %v904_v13, %v1666_v52  ;;  %v96_v24 = vld [vmem:[#allocation2 + $0x110] sm:$0xff] }
  0xc1   :  { %1049 = vmatprep.subr.mxu1 %v189_v25  ;;  %979 = vmatpush2.msra.mxu0 %v124_v26  ;;  %v160_v25 = vld [vmem:[#allocation2 + $0x310] sm:$0xff]  ;;  %v95_v26 = vld [vmem:[#allocation2 + $0x108] sm:$0xff] }
  0xc2   :  { %1050 = vmatpush2.msra.mxu1 %v188_v27  ;;  %980 = vmatprep.subr.mxu0 %v123_v28  ;;  %v159_v27 = vld [vmem:[#allocation2 + $0x308] sm:$0xff]  ;;  %v919_v28 = vcombine.high %v911_v18, %v911_v18  ;;  %v264_v13 = vld [vmem:[#allocation2 + $0x650] sm:$0xff] }
  0xc3   :  { %1051 = vmatprep.subr.mxu1 %v187_v29  ;;  %981 = vmatpush2.msra.mxu0 %v122_v30  ;;  %v94_v29 = vld [vmem:[#allocation2 + $0x100] sm:$0xff] }
  0xc4   :  { %1052 = vmatpush2.msra.mxu1 %v186_v31  ;;  %982 = vmatprep.subr.mxu0 %v121_v32  ;;  %v158_v30 = vld [vmem:[#allocation2 + $0x300] sm:$0xff]  ;;  %v920_v31 = vcombine.high %v918_v23, %v918_v23  ;;  %v221_v32 = vld [vmem:[#allocation2 + $0x4f8] sm:$0xff] }
  0xc5   :  { %1053 = vmatprep.subr.mxu1 %v185_v33  ;;  %983 = vmatpush2.msra.mxu0 %v120_v34  ;;  %v285_v33 = vld [vmem:[#allocation2 + $0x6f8] sm:$0xff]  ;;  %v220_v34 = vld [vmem:[#allocation2 + $0x4f0] sm:$0xff] }
  0xc6   :  { %1054 = vmatpush2.msra.mxu1 %v184_v35  ;;  %984 = vmatprep.subr.mxu0 %v119_v36  ;;  %v284_v35 = vld [vmem:[#allocation2 + $0x6f0] sm:$0xff]  ;;  %v219_v36 = vld [vmem:[#allocation2 + $0x4e8] sm:$0xff] }
  0xc7   :  { %1055 = vmatprep.subr.mxu1 %v183_v37  ;;  %985 = vmatpush2.msra.mxu0 %v118_v38  ;;  %v283_v37 = vld [vmem:[#allocation2 + $0x6e8] sm:$0xff]  ;;  %v218_v38 = vld [vmem:[#allocation2 + $0x4e0] sm:$0xff] }
  0xc8   :  { %1056 = vmatpush2.msra.mxu1 %v182_v39  ;;  %986 = vmatprep.subr.mxu0 %v117_v40  ;;  %v282_v39 = vld [vmem:[#allocation2 + $0x6e0] sm:$0xff]  ;;  %v217_v40 = vld [vmem:[#allocation2 + $0x4d8] sm:$0xff] }
  0xc9   :  { %1057 = vmatprep.subr.mxu1 %v181_v41  ;;  %987 = vmatpush2.msra.mxu0 %v116_v43  ;;  %v281_v41 = vld [vmem:[#allocation2 + $0x6d8] sm:$0xff]  ;;  %v216_v43 = vld [vmem:[#allocation2 + $0x4d0] sm:$0xff] }
  0xca   :  { %1058 = vmatpush2.msra.mxu1 %v180_v44  ;;  %988 = vmatprep.subr.mxu0 %v115_v45  ;;  %v280_v44 = vld [vmem:[#allocation2 + $0x6d0] sm:$0xff]  ;;  %v215_v45 = vld [vmem:[#allocation2 + $0x4c8] sm:$0xff] }
  0xcb   :  { %1059 = vmatprep.subr.mxu1 %v179_v46  ;;  %989 = vmatpush2.msra.mxu0 %v114_v47  ;;  %v279_v46 = vld [vmem:[#allocation2 + $0x6c8] sm:$0xff]  ;;  %v214_v47 = vld [vmem:[#allocation2 + $0x4c0] sm:$0xff] }
  0xcc   :  { %1060 = vmatpush2.msra.mxu1 %v178_v48  ;;  %990 = vmatprep.subr.mxu0 %v113_v49  ;;  %v278_v48 = vld [vmem:[#allocation2 + $0x6c0] sm:$0xff]  ;;  %v213_v49 = vld [vmem:[#allocation2 + $0x4b8] sm:$0xff] }
  0xcd   :  { %1061 = vmatprep.subr.mxu1 %v177_v50  ;;  %991 = vmatpush2.msra.mxu0 %v112_v51  ;;  %v277_v50 = vld [vmem:[#allocation2 + $0x6b8] sm:$0xff]  ;;  %v212_v51 = vld [vmem:[#allocation2 + $0x4b0] sm:$0xff] }
  0xce   :  { %1062 = vmatpush2.msra.mxu1 %v176_v53  ;;  %992 = vmatprep.subr.mxu0 %v111_v54  ;;  %v276_v53 = vld [vmem:[#allocation2 + $0x6b0] sm:$0xff]  ;;  %v211_v54 = vld [vmem:[#allocation2 + $0x4a8] sm:$0xff] }
  0xcf   :  { %1063 = vmatprep.subr.mxu1 %v175_v55  ;;  %993 = vmatpush2.msra.mxu0 %v110_v56  ;;  %v275_v55 = vld [vmem:[#allocation2 + $0x6a8] sm:$0xff]  ;;  %v210_v56 = vld [vmem:[#allocation2 + $0x4a0] sm:$0xff] }
  0xd0   :  { %1064 = vmatpush2.msra.mxu1 %v174_v57  ;;  %994 = vmatprep.subr.mxu0 %v109_v58  ;;  %v274_v57 = vld [vmem:[#allocation2 + $0x6a0] sm:$0xff]  ;;  %v209_v58 = vld [vmem:[#allocation2 + $0x498] sm:$0xff] }
  0xd1   :  { %1065 = vmatprep.subr.mxu1 %v173_v59  ;;  %995 = vmatpush2.msra.mxu0 %v108_v60  ;;  %v273_v59 = vld [vmem:[#allocation2 + $0x698] sm:$0xff]  ;;  %v208_v60 = vld [vmem:[#allocation2 + $0x490] sm:$0xff] }
  0xd2   :  { %1066 = vmatpush2.msra.mxu1 %v172_v61  ;;  %996 = vmatprep.subr.mxu0 %v107_v62  ;;  %v272_v61 = vld [vmem:[#allocation2 + $0x690] sm:$0xff]  ;;  %v207_v62 = vld [vmem:[#allocation2 + $0x488] sm:$0xff] }
  0xd3   :  { %1067 = vmatprep.subr.mxu1 %v171_v63  ;;  %997 = vmatpush2.msra.mxu0 %v106_v0  ;;  %v271_v63 = vld [vmem:[#allocation2 + $0x688] sm:$0xff]  ;;  %v206_v0 = vld [vmem:[#allocation2 + $0x480] sm:$0xff] }
  0xd4   :  { %1068 = vmatpush2.msra.mxu1 %v170_v1  ;;  %998 = vmatprep.subr.mxu0 %v105_v2  ;;  %v270_v1 = vld [vmem:[#allocation2 + $0x680] sm:$0xff]  ;;  %v205_v2 = vld [vmem:[#allocation2 + $0x478] sm:$0xff] }
  0xd5   :  { %1069 = vmatprep.subr.mxu1 %v169_v3  ;;  %999 = vmatpush2.msra.mxu0 %v104_v4  ;;  %v269_v3 = vld [vmem:[#allocation2 + $0x678] sm:$0xff]  ;;  %v204_v4 = vld [vmem:[#allocation2 + $0x470] sm:$0xff] }
  0xd6   :  { %1070 = vmatpush2.msra.mxu1 %v168_v5  ;;  %1000 = vmatprep.subr.mxu0 %v103_v7  ;;  %v268_v5 = vld [vmem:[#allocation2 + $0x670] sm:$0xff]  ;;  %v267_v7 = vld [vmem:[#allocation2 + $0x668] sm:$0xff] }
  0xd7   :  { %1071 = vmatprep.subr.mxu1 %v167_v8  ;;  %1001 = vmatpush2.msra.mxu0 %v102_v9  ;;  %v202_v8 = vld [vmem:[#allocation2 + $0x460] sm:$0xff] }
  0xd8   :  { %1072 = vmatpush2.msra.mxu1 %v166_v10  ;;  %1002 = vmatprep.subr.mxu0 %v101_v11  ;;  %v266_v9 = vld [vmem:[#allocation2 + $0x660] sm:$0xff]  ;;  %v201_v10 = vld [vmem:[#allocation2 + $0x458] sm:$0xff] }
  0xd9   :  { %1073 = vmatprep.subr.mxu1 %v165_v12  ;;  %1003 = vmatpush2.msra.mxu0 %v100_v14  ;;  %v265_v11 = vld [vmem:[#allocation2 + $0x658] sm:$0xff]  ;;  %v200_v12 = vld [vmem:[#allocation2 + $0x450] sm:$0xff]  ;;  %v199_v14 = vld [vmem:[#allocation2 + $0x448] sm:$0xff] }
  0xda   :  { %1074 = vmatpush2.msra.mxu1 %v164_v15  ;;  %1004 = vmatprep.subr.mxu0 %v99_v16  ;;  %v263_v15 = vld [vmem:[#allocation2 + $0x648] sm:$0xff]  ;;  %v198_v16 = vld [vmem:[#allocation2 + $0x440] sm:$0xff] }
  0xdb   :  { %1075 = vmatprep.subr.mxu1 %v163_v17  ;;  %1005 = vmatpush2.msra.mxu0 %v98_v19  ;;  %v262_v17 = vld [vmem:[#allocation2 + $0x640] sm:$0xff]  ;;  %v261_v19 = vld [vmem:[#allocation2 + $0x638] sm:$0xff] }
  0xdc   :  { %1076 = vmatpush2.msra.mxu1 %v162_v20  ;;  %1006 = vmatprep.subr.mxu0 %v97_v21  ;;  %v196_v20 = vld [vmem:[#allocation2 + $0x430] sm:$0xff] }
  0xdd   :  { %1077 = vmatprep.subr.mxu1 %v161_v22  ;;  %1007 = vmatpush2.msra.mxu0 %v96_v24  ;;  %v260_v21 = vld [vmem:[#allocation2 + $0x630] sm:$0xff]  ;;  %v195_v22 = vld [vmem:[#allocation2 + $0x428] sm:$0xff]  ;;  %v194_v24 = vld [vmem:[#allocation2 + $0x420] sm:$0xff] }
  0xde   :  { %1078 = vmatpush2.msra.mxu1 %v160_v25  ;;  %1008 = vmatprep.subr.mxu0 %v95_v26  ;;  %v258_v25 = vld [vmem:[#allocation2 + $0x620] sm:$0xff]  ;;  %v193_v26 = vld [vmem:[#allocation2 + $0x418] sm:$0xff] }
  0xdf   :  { %1079 = vmatprep.subr.mxu1 %v159_v27  ;;  %1009 = vmatpush2.msra.mxu0 %v94_v29  ;;  %v257_v27 = vld [vmem:[#allocation2 + $0x618] sm:$0xff]  ;;  %v256_v29 = vld [vmem:[#allocation2 + $0x610] sm:$0xff] }
  0xe0   :  { %1010 = vmatprep.mubr.f32.mxu0 %v919_v28  ;;  %1080 = vmatpush2.msra.mxu1 %v158_v30  ;;  %v192_v28 = vld [vmem:[#allocation2 + $0x410] sm:$0xff]  ;;  %v191_v30 = vld [vmem:[#allocation2 + $0x408] sm:$0xff] }
  0xe1   :  { %1011 = vmatmul.mubr.f32.vlgmr.msra.gmra.mxu0 %v911_v18  ;;  %1081 = vmatprep.mubr.f32.mxu1 %v920_v31  ;;  %v197_v18 = vld [vmem:[#allocation2 + $0x438] sm:$0xff]  ;;  %v255_v31 = vld [vmem:[#allocation2 + $0x608] sm:$0xff] }
  0xe2   :  { %1088 = vmatprep.subr.mxu0 %v221_v32  ;;  %1159 = vmatprep.subr.mxu1 %v285_v33  ;;  %v190_v32 = vld [vmem:[#allocation2 + $0x400] sm:$0xff] }
  0xe3   :  { %1082 = vmatmul.mubr.f32.vlgmr.msra.gmra.mxu1 %v918_v23  ;;  %1089 = vmatpush1.msra.mxu0 %v220_v34  ;;  %v259_v23 = vld [vmem:[#allocation2 + $0x628] sm:$0xff]  ;;  %v254_v33 = vld [vmem:[#allocation2 + $0x600] sm:$0xff]  ;;  %v253_v34 = vld [vmem:[#allocation2 + $0x5f8] sm:$0xff] }
  0xe4   :  { %1160 = vmatpush1.msra.mxu1 %v284_v35  ;;  %1090 = vmatprep.subr.mxu0 %v219_v36  ;;  %v317_v35 = vld [vmem:[#allocation2 + $0x7f8] sm:$0xff]  ;;  %v252_v36 = vld [vmem:[#allocation2 + $0x5f0] sm:$0xff] }
  0xe5   :  { %1161 = vmatprep.subr.mxu1 %v283_v37  ;;  %1091 = vmatpush1.msra.mxu0 %v218_v38  ;;  %v316_v37 = vld [vmem:[#allocation2 + $0x7f0] sm:$0xff]  ;;  %v251_v38 = vld [vmem:[#allocation2 + $0x5e8] sm:$0xff] }
  0xe6   :  { %1162 = vmatpush1.msra.mxu1 %v282_v39  ;;  %1092 = vmatprep.subr.mxu0 %v217_v40  ;;  %v315_v39 = vld [vmem:[#allocation2 + $0x7e8] sm:$0xff]  ;;  %v250_v40 = vld [vmem:[#allocation2 + $0x5e0] sm:$0xff] }
  0xe7   :  { %1163 = vmatprep.subr.mxu1 %v281_v41  ;;  %1093 = vmatpush1.msra.mxu0 %v216_v43  ;;  %v314_v41 = vld [vmem:[#allocation2 + $0x7e0] sm:$0xff]  ;;  %v249_v43 = vld [vmem:[#allocation2 + $0x5d8] sm:$0xff] }
  0xe8   :  { %1164 = vmatpush1.msra.mxu1 %v280_v44  ;;  %1094 = vmatprep.subr.mxu0 %v215_v45  ;;  %v313_v44 = vld [vmem:[#allocation2 + $0x7d8] sm:$0xff]  ;;  %v248_v45 = vld [vmem:[#allocation2 + $0x5d0] sm:$0xff] }
  0xe9   :  { %1165 = vmatprep.subr.mxu1 %v279_v46  ;;  %1095 = vmatpush1.msra.mxu0 %v214_v47  ;;  %v312_v46 = vld [vmem:[#allocation2 + $0x7d0] sm:$0xff]  ;;  %v247_v47 = vld [vmem:[#allocation2 + $0x5c8] sm:$0xff] }
  0xea   :  { %1166 = vmatpush1.msra.mxu1 %v278_v48  ;;  %1096 = vmatprep.subr.mxu0 %v213_v49  ;;  %v311_v48 = vld [vmem:[#allocation2 + $0x7c8] sm:$0xff]  ;;  %v246_v49 = vld [vmem:[#allocation2 + $0x5c0] sm:$0xff] }
  0xeb   :  { %1167 = vmatprep.subr.mxu1 %v277_v50  ;;  %1097 = vmatpush1.msra.mxu0 %v212_v51  ;;  %v310_v50 = vld [vmem:[#allocation2 + $0x7c0] sm:$0xff]  ;;  %v245_v51 = vld [vmem:[#allocation2 + $0x5b8] sm:$0xff] }
  0xec   :  { %1168 = vmatpush1.msra.mxu1 %v276_v53  ;;  %1098 = vmatprep.subr.mxu0 %v211_v54  ;;  %v309_v53 = vld [vmem:[#allocation2 + $0x7b8] sm:$0xff]  ;;  %v244_v54 = vld [vmem:[#allocation2 + $0x5b0] sm:$0xff] }
  0xed   :  { %1169 = vmatprep.subr.mxu1 %v275_v55  ;;  %1099 = vmatpush1.msra.mxu0 %v210_v56  ;;  %v308_v55 = vld [vmem:[#allocation2 + $0x7b0] sm:$0xff]  ;;  %v243_v56 = vld [vmem:[#allocation2 + $0x5a8] sm:$0xff] }
  0xee   :  { %1170 = vmatpush1.msra.mxu1 %v274_v57  ;;  %1100 = vmatprep.subr.mxu0 %v209_v58  ;;  %v307_v57 = vld [vmem:[#allocation2 + $0x7a8] sm:$0xff]  ;;  %v242_v58 = vld [vmem:[#allocation2 + $0x5a0] sm:$0xff] }
  0xef   :  { %1171 = vmatprep.subr.mxu1 %v273_v59  ;;  %1101 = vmatpush1.msra.mxu0 %v208_v60  ;;  %v306_v59 = vld [vmem:[#allocation2 + $0x7a0] sm:$0xff]  ;;  %v241_v60 = vld [vmem:[#allocation2 + $0x598] sm:$0xff] }
  0xf0   :  { %1172 = vmatpush1.msra.mxu1 %v272_v61  ;;  %1102 = vmatprep.subr.mxu0 %v207_v62  ;;  %v305_v61 = vld [vmem:[#allocation2 + $0x798] sm:$0xff]  ;;  %v240_v62 = vld [vmem:[#allocation2 + $0x590] sm:$0xff] }
  0xf1   :  { %1173 = vmatprep.subr.mxu1 %v271_v63  ;;  %1103 = vmatpush1.msra.mxu0 %v206_v0  ;;  %v304_v63 = vld [vmem:[#allocation2 + $0x790] sm:$0xff]  ;;  %v239_v0 = vld [vmem:[#allocation2 + $0x588] sm:$0xff] }
  0xf2   :  { %1174 = vmatpush1.msra.mxu1 %v270_v1  ;;  %1104 = vmatprep.subr.mxu0 %v205_v2  ;;  %v303_v1 = vld [vmem:[#allocation2 + $0x788] sm:$0xff]  ;;  %v238_v2 = vld [vmem:[#allocation2 + $0x580] sm:$0xff] }
  0xf3   :  { %1175 = vmatprep.subr.mxu1 %v269_v3  ;;  %1105 = vmatpush1.msra.mxu0 %v204_v4  ;;  %v302_v3 = vld [vmem:[#allocation2 + $0x780] sm:$0xff]  ;;  %v237_v4 = vld [vmem:[#allocation2 + $0x578] sm:$0xff] }
  0xf4   :  { %1176 = vmatpush1.msra.mxu1 %v268_v5  ;;  %1106 = vmatprep.subr.mxu0 %v203_v6  ;;  %v301_v5 = vld [vmem:[#allocation2 + $0x778] sm:$0xff]  ;;  %v236_v6 = vld [vmem:[#allocation2 + $0x570] sm:$0xff] }
  0xf5   :  { %1177 = vmatprep.subr.mxu1 %v267_v7  ;;  %1107 = vmatpush1.msra.mxu0 %v202_v8  ;;  %v300_v7 = vld [vmem:[#allocation2 + $0x770] sm:$0xff]  ;;  %v235_v8 = vld [vmem:[#allocation2 + $0x568] sm:$0xff] }
  0xf6   :  { %1178 = vmatpush1.msra.mxu1 %v266_v9  ;;  %1108 = vmatprep.subr.mxu0 %v201_v10  ;;  %v299_v9 = vld [vmem:[#allocation2 + $0x768] sm:$0xff]  ;;  %v234_v10 = vld [vmem:[#allocation2 + $0x560] sm:$0xff] }
  0xf7   :  { %1179 = vmatprep.subr.mxu1 %v265_v11  ;;  %1109 = vmatpush1.msra.mxu0 %v200_v12  ;;  %v298_v11 = vld [vmem:[#allocation2 + $0x760] sm:$0xff]  ;;  %v233_v12 = vld [vmem:[#allocation2 + $0x558] sm:$0xff] }
  0xf8   :  { %1180 = vmatpush1.msra.mxu1 %v264_v13  ;;  %1110 = vmatprep.subr.mxu0 %v199_v14  ;;  %v297_v13 = vld [vmem:[#allocation2 + $0x758] sm:$0xff]  ;;  %v58_v14 = vld [vmem:[%s1860_s0 + $0x8] sm:$0xff] }
  0xf9   :  { %1181 = vmatprep.subr.mxu1 %v263_v15  ;;  %1111 = vmatpush1.msra.mxu0 %v198_v16  ;;  %v232_v15 = vld [vmem:[#allocation2 + $0x550] sm:$0xff] }
  0xfa   :  { %1182 = vmatpush1.msra.mxu1 %v262_v17  ;;  %1112 = vmatprep.subr.mxu0 %v197_v18  ;;  %v296_v16 = vld [vmem:[#allocation2 + $0x750] sm:$0xff]  ;;  %v231_v17 = vld [vmem:[#allocation2 + $0x548] sm:$0xff] }
  0xfb   :  { %1183 = vmatprep.subr.mxu1 %v261_v19  ;;  %1113 = vmatpush1.msra.mxu0 %v196_v20  ;;  %v295_v18 = vld [vmem:[#allocation2 + $0x748] sm:$0xff]  ;;  %v230_v19 = vld [vmem:[#allocation2 + $0x540] sm:$0xff] }
  0xfc   :  { %1184 = vmatpush1.msra.mxu1 %v260_v21  ;;  %1114 = vmatprep.subr.mxu0 %v195_v22  ;;  %v294_v20 = vld [vmem:[#allocation2 + $0x740] sm:$0xff]  ;;  %v921_v21 = vcombine.high %v58_v14, %v58_v14  ;;  %v229_v22 = vld [vmem:[#allocation2 + $0x538] sm:$0xff] }
  0xfd   :  { %1185 = vmatprep.subr.mxu1 %v259_v23  ;;  %1115 = vmatpush1.msra.mxu0 %v194_v24  ;;  %v293_v23 = vld [vmem:[#allocation2 + $0x738] sm:$0xff]  ;;  %v228_v24 = vld [vmem:[#allocation2 + $0x530] sm:$0xff] }
  0xfe   :  { %1186 = vmatpush1.msra.mxu1 %v258_v25  ;;  %1116 = vmatprep.subr.mxu0 %v193_v26  ;;  %v292_v25 = vld [vmem:[#allocation2 + $0x730] sm:$0xff]  ;;  %v227_v26 = vld [vmem:[#allocation2 + $0x528] sm:$0xff] }
  0xff   :  { %1187 = vmatprep.subr.mxu1 %v257_v27  ;;  %1117 = vmatpush1.msra.mxu0 %v192_v28  ;;  %v291_v27 = vld [vmem:[#allocation2 + $0x728] sm:$0xff]  ;;  %v928_v28 = vrot.slane %v58_v14, %v1666_v52 }
 0x100   :  { %1188 = vmatpush1.msra.mxu1 %v256_v29  ;;  %1118 = vmatprep.subr.mxu0 %v191_v30  ;;  %v226_v29 = vld [vmem:[#allocation2 + $0x520] sm:$0xff]  ;;  %v1369_v14 = vld [vmem:[%s1866_s6 + $0x68] sm:$0xff] }
 0x101   :  { %1189 = vmatprep.subr.mxu1 %v255_v31  ;;  %1119 = vmatpush1.msra.mxu0 %v190_v32  ;;  %v290_v30 = vld [vmem:[#allocation2 + $0x720] sm:$0xff]  ;;  %v935_v31 = vrot.slane %v921_v21, %v1666_v52  ;;  %v225_v32 = vld [vmem:[#allocation2 + $0x518] sm:$0xff]  ;;  %v1362_v21 = vld [vmem:[%s1866_s6 + $0x30] sm:$0xff] }
 0x102   :  { %1190 = vmatpush1.msra.mxu1 %v254_v33  ;;  %1120 = vmatprep.subr.mxu0 %v253_v34  ;;  %v289_v33 = vld [vmem:[#allocation2 + $0x718] sm:$0xff]  ;;  %v224_v34 = vld [vmem:[#allocation2 + $0x510] sm:$0xff]  ;;  %v286_v52 = vld [vmem:[#allocation2 + $0x700] sm:$0xff] }
 0x103   :  { %1191 = vmatprep.subr.mxu1 %v317_v35  ;;  %1121 = vmatpush2.msra.mxu0 %v252_v36  ;;  %v288_v35 = vld [vmem:[#allocation2 + $0x710] sm:$0xff]  ;;  %v223_v36 = vld [vmem:[#allocation2 + $0x508] sm:$0xff] }
 0x104   :  { %1192 = vmatpush2.msra.mxu1 %v316_v37  ;;  %1122 = vmatprep.subr.mxu0 %v251_v38  ;;  %v287_v37 = vld [vmem:[#allocation2 + $0x708] sm:$0xff]  ;;  %v936_v38 = vcombine.high %v928_v28, %v928_v28 }
 0x105   :  { %1193 = vmatprep.subr.mxu1 %v315_v39  ;;  %1123 = vmatpush2.msra.mxu0 %v250_v40  ;;  %v222_v39 = vld [vmem:[#allocation2 + $0x500] sm:$0xff]  ;;  %v937_v40 = vcombine.high %v935_v31, %v935_v31 }
 0x106   :  { %1194 = vmatpush2.msra.mxu1 %v314_v41  ;;  %1124 = vmatprep.subr.mxu0 %v249_v43  ;;  %v1277_v41 = vld [vmem:[%s1864_s4 + $0xf8] sm:$0xff] }
 0x107   :  { %1195 = vmatprep.subr.mxu1 %v313_v44  ;;  %1125 = vmatpush2.msra.mxu0 %v248_v45  ;;  %v1261_v43 = vld [vmem:[%s1864_s4 + $0x78] sm:$0xff]  ;;  %v1276_v44 = vld [vmem:[%s1864_s4 + $0xf0] sm:$0xff] }
 0x108   :  { %1196 = vmatpush2.msra.mxu1 %v312_v46  ;;  %1126 = vmatprep.subr.mxu0 %v247_v47  ;;  %v1260_v45 = vld [vmem:[%s1864_s4 + $0x70] sm:$0xff]  ;;  %v1275_v46 = vld [vmem:[%s1864_s4 + $0xe8] sm:$0xff] }
 0x109   :  { %1197 = vmatprep.subr.mxu1 %v311_v48  ;;  %1127 = vmatpush2.msra.mxu0 %v246_v49  ;;  %v1259_v47 = vld [vmem:[%s1864_s4 + $0x68] sm:$0xff]  ;;  %v1274_v48 = vld [vmem:[%s1864_s4 + $0xe0] sm:$0xff] }
 0x10a   :  { %1198 = vmatpush2.msra.mxu1 %v310_v50  ;;  %1128 = vmatprep.subr.mxu0 %v245_v51  ;;  %v1258_v49 = vld [vmem:[%s1864_s4 + $0x60] sm:$0xff]  ;;  %v1273_v50 = vld [vmem:[%s1864_s4 + $0xd8] sm:$0xff] }
 0x10b   :  { %1199 = vmatprep.subr.mxu1 %v309_v53  ;;  %1129 = vmatpush2.msra.mxu0 %v244_v54  ;;  %v1257_v51 = vld [vmem:[%s1864_s4 + $0x58] sm:$0xff]  ;;  %v1272_v53 = vld [vmem:[%s1864_s4 + $0xd0] sm:$0xff] }
 0x10c   :  { %1200 = vmatpush2.msra.mxu1 %v308_v55  ;;  %1130 = vmatprep.subr.mxu0 %v243_v56  ;;  %v1256_v54 = vld [vmem:[%s1864_s4 + $0x50] sm:$0xff]  ;;  %v1271_v55 = vld [vmem:[%s1864_s4 + $0xc8] sm:$0xff] }
 0x10d   :  { %1201 = vmatprep.subr.mxu1 %v307_v57  ;;  %1131 = vmatpush2.msra.mxu0 %v242_v58  ;;  %v1255_v56 = vld [vmem:[%s1864_s4 + $0x48] sm:$0xff]  ;;  %v1270_v57 = vld [vmem:[%s1864_s4 + $0xc0] sm:$0xff] }
 0x10e   :  { %1202 = vmatpush2.msra.mxu1 %v306_v59  ;;  %1132 = vmatprep.subr.mxu0 %v241_v60  ;;  %v1254_v58 = vld [vmem:[%s1864_s4 + $0x40] sm:$0xff]  ;;  %v1269_v59 = vld [vmem:[%s1864_s4 + $0xb8] sm:$0xff] }
 0x10f   :  { %1203 = vmatprep.subr.mxu1 %v305_v61  ;;  %1133 = vmatpush2.msra.mxu0 %v240_v62  ;;  %v1253_v60 = vld [vmem:[%s1864_s4 + $0x38] sm:$0xff]  ;;  %v1268_v61 = vld [vmem:[%s1864_s4 + $0xb0] sm:$0xff] }
 0x110   :  { %1204 = vmatpush2.msra.mxu1 %v304_v63  ;;  %1134 = vmatprep.subr.mxu0 %v239_v0  ;;  %v1252_v62 = vld [vmem:[%s1864_s4 + $0x30] sm:$0xff]  ;;  %v1267_v63 = vld [vmem:[%s1864_s4 + $0xa8] sm:$0xff] }
 0x111   :  { %1205 = vmatprep.subr.mxu1 %v303_v1  ;;  %1135 = vmatpush2.msra.mxu0 %v238_v2  ;;  %v1251_v0 = vld [vmem:[%s1864_s4 + $0x28] sm:$0xff]  ;;  %v1266_v1 = vld [vmem:[%s1864_s4 + $0xa0] sm:$0xff] }
 0x112   :  { %1206 = vmatpush2.msra.mxu1 %v302_v3  ;;  %1136 = vmatprep.subr.mxu0 %v237_v4  ;;  %v1250_v2 = vld [vmem:[%s1864_s4 + $0x20] sm:$0xff]  ;;  %v1265_v3 = vld [vmem:[%s1864_s4 + $0x98] sm:$0xff] }
 0x113   :  { %1207 = vmatprep.subr.mxu1 %v301_v5  ;;  %1137 = vmatpush2.msra.mxu0 %v236_v6  ;;  %v1249_v4 = vld [vmem:[%s1864_s4 + $0x18] sm:$0xff]  ;;  %v1264_v5 = vld [vmem:[%s1864_s4 + $0x90] sm:$0xff] }
 0x114   :  { %1208 = vmatpush2.msra.mxu1 %v300_v7  ;;  %1138 = vmatprep.subr.mxu0 %v235_v8  ;;  %v1248_v6 = vld [vmem:[%s1864_s4 + $0x10] sm:$0xff]  ;;  %v1263_v7 = vld [vmem:[%s1864_s4 + $0x88] sm:$0xff] }
 0x115   :  { %1209 = vmatprep.subr.mxu1 %v299_v9  ;;  %1139 = vmatpush2.msra.mxu0 %v234_v10  ;;  %v1247_v8 = vld [vmem:[%s1864_s4 + $0x8] sm:$0xff]  ;;  %v1262_v9 = vld [vmem:[%s1864_s4 + $0x80] sm:$0xff] }
 0x116   :  { %1210 = vmatpush2.msra.mxu1 %v298_v11  ;;  %1140 = vmatprep.subr.mxu0 %v233_v12  ;;  %v1246_v10 = vld [vmem:[%s1864_s4] sm:$0xff]  ;;  %v1371_v11 = vld [vmem:[%s1866_s6 + $0x78] sm:$0xff]  ;;  %v1607_v12 = vmov 0.0  }
 0x117   :  { %1211 = vmatprep.subr.mxu1 %v297_v13  ;;  %1141 = vmatpush2.msra.mxu0 %v232_v15  ;;  %v1370_v13 = vld [vmem:[%s1866_s6 + $0x70] sm:$0xff]  ;;  %v1368_v15 = vld [vmem:[%s1866_s6 + $0x60] sm:$0xff] }
 0x118   :  { %1212 = vmatpush2.msra.mxu1 %v296_v16  ;;  %1142 = vmatprep.subr.mxu0 %v231_v17  ;;  %v1367_v16 = vld [vmem:[%s1866_s6 + $0x58] sm:$0xff]  ;;  %v1366_v17 = vld [vmem:[%s1866_s6 + $0x50] sm:$0xff] }
 0x119   :  { %1213 = vmatprep.subr.mxu1 %v295_v18  ;;  %1143 = vmatpush2.msra.mxu0 %v230_v19  ;;  %v1365_v18 = vld [vmem:[%s1866_s6 + $0x48] sm:$0xff]  ;;  %v1364_v19 = vld [vmem:[%s1866_s6 + $0x40] sm:$0xff] }
 0x11a   :  { %1214 = vmatpush2.msra.mxu1 %v294_v20  ;;  %1144 = vmatprep.subr.mxu0 %v229_v22  ;;  %v1363_v20 = vld [vmem:[%s1866_s6 + $0x38] sm:$0xff]  ;;  %v1361_v22 = vld [vmem:[%s1866_s6 + $0x28] sm:$0xff] }
 0x11b   :  { %1215 = vmatprep.subr.mxu1 %v293_v23  ;;  %1145 = vmatpush2.msra.mxu0 %v228_v24 }
 0x11c   :  { %1216 = vmatpush2.msra.mxu1 %v292_v25  ;;  %1146 = vmatprep.subr.mxu0 %v227_v26 }
 0x11d   :  { %1217 = vmatprep.subr.mxu1 %v291_v27  ;;  %1147 = vmatpush2.msra.mxu0 %v226_v29  ;;  %v684_v23 = vpop.f32.mrf.mxu0 }
 0x11e   :  { %1218 = vmatpush2.msra.mxu1 %v290_v30  ;;  %1148 = vmatprep.subr.mxu0 %v225_v32  ;;  %v755_v24 = vpop.f32.mrf.mxu1 }
 0x11f   :  { %1219 = vmatprep.subr.mxu1 %v289_v33  ;;  %1149 = vmatpush2.msra.mxu0 %v224_v34  ;;  %v686_v25 = vpop.f32.mrf.mxu0 }
 0x120   :  { %1220 = vmatpush2.msra.mxu1 %v288_v35  ;;  %1150 = vmatprep.subr.mxu0 %v223_v36  ;;  %v757_v27 = vpop.f32.mrf.mxu1 }
 0x121   :  { %1221 = vmatprep.subr.mxu1 %v287_v37  ;;  %1151 = vmatpush2.msra.mxu0 %v222_v39 }
 0x122   :  { %1152 = vmatprep.mubr.f32.mxu0 %v936_v38  ;;  %1222 = vmatpush2.msra.mxu1 %v286_v52 }
 0x123   :  { %1223 = vmatprep.mubr.f32.mxu1 %v937_v40  ;;  %1153 = vmatmul.mubr.f32.vlgmr.msra.gmra.mxu0 %v928_v28  ;;  %v756_v28 = vadd.f32 %v755_v24, %v684_v23 }
 0x124   :  { %1224 = vmatmul.mubr.f32.vlgmr.msra.gmra.mxu1 %v935_v31  ;;  %1460 = vmatprep.subr.mxu0 %v1277_v41  ;;  %v758_v31 = vadd.f32 %v757_v27, %v686_v25 }
 0x125   :  { %1461 = vmatpush3.msra.mxu0 %v1261_v43  ;;  %1512 = vmatprep.subr.mxu1 %v1607_v12  ;;  %v1234_v43 = vsub.s32 0, %v1660_v42 }
 0x126   :  { %1462 = vmatprep.subr.mxu0 %v1276_v44  ;;  %1513 = vmatpush3.msra.mxu1 %v1371_v11 }
 0x127   :  { %1463 = vmatpush3.msra.mxu0 %v1260_v45  ;;  %1514 = vmatprep.subr.mxu1 %v1607_v12  ;;  %v1230_v45 = vld [vmem:[%s1863_s3] sm:$0x3] }
 0x128   :  { %1464 = vmatprep.subr.mxu0 %v1275_v46  ;;  %1515 = vmatpush3.msra.mxu1 %v1370_v13  ;;  %v1238_v46 = vsub.s32 1, %v1660_v42  ;;  %v1360_v42 = vld [vmem:[%s1866_s6 + $0x20] sm:$0xff] }
 0x129   :  { %1465 = vmatpush3.msra.mxu0 %v1259_v47  ;;  %1516 = vmatprep.subr.mxu1 %v1607_v12 }
 0x12a   :  { %1466 = vmatprep.subr.mxu0 %v1274_v48  ;;  %1517 = vmatpush3.msra.mxu1 %v1369_v14 }
 0x12b   :  { %1467 = vmatpush3.msra.mxu0 %v1258_v49  ;;  %1518 = vmatprep.subr.mxu1 %v1607_v12 }
 0x12c   :  { %1468 = vmatprep.subr.mxu0 %v1273_v50  ;;  %1519 = vmatpush3.msra.mxu1 %v1368_v15 }
 0x12d   :  { %1469 = vmatpush3.msra.mxu0 %v1257_v51  ;;  %1520 = vmatprep.subr.mxu1 %v1607_v12  ;;  %v1235_v51 = vrot.slane %v1230_v45, %v1234_v43 }
 0x12e   :  { %1470 = vmatprep.subr.mxu0 %v1272_v53  ;;  %1521 = vmatpush3.msra.mxu1 %v1367_v16 }
 0x12f   :  { %1471 = vmatpush3.msra.mxu0 %v1256_v54  ;;  %1522 = vmatprep.subr.mxu1 %v1607_v12 }
 0x130   :  { %1472 = vmatprep.subr.mxu0 %v1271_v55  ;;  %1523 = vmatpush3.msra.mxu1 %v1366_v17 }
 0x131   :  { %1473 = vmatpush3.msra.mxu0 %v1255_v56  ;;  %1524 = vmatprep.subr.mxu1 %v1607_v12  ;;  %v1239_v56 = vrot.slane %v1230_v45, %v1238_v46 }
 0x132   :  { %1474 = vmatprep.subr.mxu0 %v1270_v57  ;;  %1525 = vmatpush3.msra.mxu1 %v1365_v18 }
 0x133   :  { %1475 = vmatpush3.msra.mxu0 %v1254_v58  ;;  %1526 = vmatprep.subr.mxu1 %v1607_v12 }
 0x134   :  { %1476 = vmatprep.subr.mxu0 %v1269_v59  ;;  %1527 = vmatpush3.msra.mxu1 %v1364_v19 }
 0x135   :  { %1477 = vmatpush3.msra.mxu0 %v1253_v60  ;;  %1528 = vmatprep.subr.mxu1 %v1607_v12 }
 0x136   :  { %1478 = vmatprep.subr.mxu0 %v1268_v61  ;;  %1529 = vmatpush3.msra.mxu1 %v1363_v20 }
 0x137   :  { %1479 = vmatpush3.msra.mxu0 %v1252_v62  ;;  %1530 = vmatprep.subr.mxu1 %v1607_v12 }
 0x138   :  { %1480 = vmatprep.subr.mxu0 %v1267_v63  ;;  %1531 = vmatpush3.msra.mxu1 %v1362_v21  ;;  %v1359_v63 = vld [vmem:[%s1866_s6 + $0x18] sm:$0xff] }
 0x139   :  { %1481 = vmatpush3.msra.mxu0 %v1251_v0  ;;  %1532 = vmatprep.subr.mxu1 %v1607_v12  ;;  %v1358_v0 = vld [vmem:[%s1866_s6 + $0x10] sm:$0xff] }
 0x13a   :  { %1482 = vmatprep.subr.mxu0 %v1266_v1  ;;  %1533 = vmatpush3.msra.mxu1 %v1361_v22  ;;  %v1357_v1 = vld [vmem:[%s1866_s6 + $0x8] sm:$0xff] }
 0x13b   :  { %1483 = vmatpush3.msra.mxu0 %v1250_v2  ;;  %1534 = vmatprep.subr.mxu1 %v1607_v12  ;;  %v1356_v2 = vld [vmem:[%s1866_s6] sm:$0xff] }
 0x13c   :  { %1484 = vmatprep.subr.mxu0 %v1265_v3  ;;  %1535 = vmatpush3.msra.mxu1 %v1360_v42 }
 0x13d   :  { %1485 = vmatpush3.msra.mxu0 %v1249_v4  ;;  %1536 = vmatprep.subr.mxu1 %v1607_v12  ;;  %v1458_v4 = vld [vmem:[%s1865_s5] ss:$0 sm:$0xff] }
 0x13e   :  { %1486 = vmatprep.subr.mxu0 %v1264_v5  ;;  %1537 = vmatpush3.msra.mxu1 %v1359_v63 }
 0x13f   :  { %1487 = vmatpush3.msra.mxu0 %v1248_v6  ;;  %1538 = vmatprep.subr.mxu1 %v1607_v12 }
 0x140   :  { %1488 = vmatprep.subr.mxu0 %v1263_v7  ;;  %1539 = vmatpush3.msra.mxu1 %v1358_v0 }
 0x141   :  { %1489 = vmatpush3.msra.mxu0 %v1247_v8  ;;  %1540 = vmatprep.subr.mxu1 %v1607_v12 }
 0x142   :  { %1490 = vmatprep.subr.mxu0 %v1262_v9  ;;  %1541 = vmatpush3.msra.mxu1 %v1357_v1  ;;  %v1459_v9 = vld [vmem:[%s1867_s7] ss:$0 sm:$0xff] }
 0x143   :  { %1491 = vmatpush3.msra.mxu0 %v1246_v10  ;;  %1542 = vmatprep.subr.mxu1 %v1607_v12 }
 0x144   :  { %1543 = vmatpush3.msra.mxu1 %v1356_v2  ;;  %1544 = vmatprep.mubr.msk.f32.mxu1 %vm1608_vm0, %v1607_v12 }
 0x15f   :  { %v826_v26 = vpop.f32.mrf.mxu0 }
 0x160   :  { %v827_v32 = vadd.f32 %v826_v26, %v756_v28 }
 0x161   :  { %v897_v29 = vpop.f32.mrf.mxu1  ;;  %v828_v30 = vpop.f32.mrf.mxu0 }
 0x162   :  { %v829_v34 = vadd.f32 %v828_v30, %v758_v31  ;;  %v898_v36 = vadd.f32 %v897_v29, %v827_v32 }
 0x163   :  { %v899_v35 = vpop.f32.mrf.mxu1 }
 0x164   :  { %v900_v39 = vadd.f32 %v899_v35, %v829_v34 }
 0x1a1   :  { %v1012_v33 = vpop.f32.mrf.mxu0 }
 0x1a2   :  { %v1013_v40 = vadd.f32 %v1012_v33, %v898_v36 }
 0x1a3   :  { %v1083_v37 = vpop.f32.mrf.mxu1  ;;  %v1014_v38 = vpop.f32.mrf.mxu0 }
 0x1a4   :  { %v1015_v52 = vadd.f32 %v1014_v38, %v900_v39  ;;  %v1084_v44 = vadd.f32 %v1083_v37, %v1013_v40 }
 0x1a5   :  { %v1085_v41 = vpop.f32.mrf.mxu1 }
 0x1a6   :  { %v1086_v49 = vadd.f32 %v1085_v41, %v1015_v52 }
 0x1e3   :  { %v1154_v47 = vpop.f32.mrf.mxu0 }
 0x1e4   :  { %v1225_v48 = vpop.f32.mrf.mxu1  ;;  %v1155_v50 = vadd.f32 %v1154_v47, %v1084_v44 }
 0x1e5   :  { %v1156_v53 = vpop.f32.mrf.mxu0 }
 0x1e6   :  { %v1226_v54 = vadd.f32 %v1225_v48, %v1155_v50  ;;  %v1157_v55 = vadd.f32 %v1156_v53, %v1086_v49  ;;  %v1227_v57 = vpop.f32.mrf.mxu1 }
 0x1e8   :  { %v1228_v58 = vadd.f32 %v1227_v57, %v1157_v55  ;;  %v1242_v59 = vadd.f32 %v1235_v51, %v1226_v54 }
 0x1ea   :  { %v1243_v60 = vadd.f32 %v1239_v56, %v1228_v58  ;;  %v1244_v62 = vmax.f32 %v1242_v59, 0.0 }
 0x1ec   :  { %v1245_v61 = vmax.f32 %v1243_v60, 0.0 }
 0x1ee   :  { %1349 = vmatprep.mubr.f32.mxu0 %v1245_v61 }
 0x1ef   :  { %1350 = vmatmul.mubr.f32.vlgmr.msra.gmra.mxu0 %v1244_v62 }
 0x2af   :  { %v1492_v3 = vpop.f32.mrf.mxu0 }
 0x2b1   :  { %v1493_v5 = vpop.f32.mrf.mxu0 }
 0x2b2   :  { %v1494_v6 = vadd.f32 %v1493_v5, %v1492_v3 }
 0x2b4   :  { %v1352_v7 = vadd.f32 %v1494_v6, %v1458_v4 }
 0x2b6   :  { %v1355_v8 = vmax.f32 %v1352_v7, 0.0 }
 0x2b8   :  { %1545 = vmatmul.mubr.f32.vlgmr.msra.gmra.mxu1 %v1355_v8 }
 0x378   :  { %v1445_v10 = vpop.f32.mrf.mxu1 }
 0x379   :  { %v1446_v11 = vadd.f32 %v1459_v9, %v1445_v10 }
 0x37a   :  { %v1546_v13 = vpop.f32.mrf.mxu1 }
 0x37b   :  { %1449 = vst [vmem:[%s1868_s8] sm:$0x3] %v1446_v11 }
 0x37c   :  { %1454 = vsyncpa [#allocation3], 1 }
 0x37d   :  { %1455 = vsyncpa [#allocation5], 1 }

// kernel: posenet_forward.2
= control target key start
LH: loop header
LB: loop body
LE: loop exit
PB: predicated region body
PF: predicated region fallthrough
CT: control target
= control target key end

     0   :  { %s3552_s12 = smov 0   ;;  %s3554_s13 = smov 0   ;;  %s5728_s0 = inlined_call_operand.vmem [shape: bf16[2,2,3,256], index: 0, kind: input, shape index: {}]   ;;  %s5729_s1 = inlined_call_operand.vmem [shape: bf16[3,1024], index: 1, kind: input, shape index: {}]   ;;  %s5730_s2 = inlined_call_operand.vmem [shape: f32[1,1024], index: 2, kind: input, shape index: {}]   ;;  %s5731_s3 = inlined_call_operand.vmem [shape: f32[2,2,1024], index: 3, kind: output, shape index: {}]  }
   0x1   :  { %s3556_s14 = smov 0  }
   0x2 LB: > { %s25_s15 = sadd.s32 1, %s3520_s13  ;;  %p3329_p0 = scmp.ge.s32.totalorder %s3524_s14, 1  ;;  %s3524_s14 = sphi %s3556_s14, %s13_s14   ;;  %s3520_s13 = sphi %s3554_s13, %s6086_s13   ;;  %s3516_s12 = sphi %s3552_s12, %s6085_s12  }
   0x3   : > { %p27_p1 = scmp.ge.s32.totalorder %s25_s15, 2  ;;  %p156_p2 = scmp.lt.s32.totalorder %s3524_s14, 3 }
   0x5   : > { %s6088_s15 = smov (%p27_p1, %s25_s15), 0  ;;  %p157_p3 = pnand %p3329_p0, %p156_p2 }
   0x7   : > { %160 = sbr.rel (%p157_p3) target bundleno = 1306 (0x51a), region = 32 }
   0xc   : > { %p185_p4 = scmp.lt.s32.totalorder %s3516_s12, 1  ;;  %v211_v0 = vlaneseq  ;;  %v3526_v1 = vmov 1983009808   ;;  %v206_v3 = vld [vmem:[%s5729_s1] sm:$0xff]  ;;  %vm379_vm0 = vcmask 1040384   ;;  %v5740_v4 = vmov 0  }
   0xd   : > { %v298_v2 = vunpack.c.l.s4 %v3526_v1  ;;  %439 = vmatprep.mubr.bf16.mxu0 %v5740_v4  ;;  %632 = vmatprep.mubr.bf16.mxu1 %v5740_v4  ;;  %v207_v5 = vld [vmem:[%s5729_s1 + $0x8] sm:$0xff]  ;;  %vm380_vm1 = vcmask 1041408   ;;  %v3528_v9 = vmov 65535   ;;  %v296_v11 = vcombine.high %v206_v3, %v206_v3 }
   0xe   : > { %s6090_s12 = smov (!%p185_p4, %s3516_s12), 1  ;;  %v3581_v6 = vshrl.u32 %v211_v0, 7  ;;  %v381_v10 = vsel %vm379_vm0, 4294967295, %v3528_v9  ;;  %v313_v12 = vcombine.high %v207_v5, %v207_v5  ;;  %vm330_vm2 = vcmask 23552  }
   0xf   : > { %s3467_s20 = sshll.u32 %s6090_s12, 3  ;;  %v299_v7 = vunpack.c.0.s8 %v298_v2  ;;  %v382_v14 = vsel %vm380_vm1, %v381_v10, 0  ;;  %s3468_s28 = sshll.u32 %s6090_s12, 4 }
  0x10   : > { %5769 = vst [vmem:[#allocation3_spill] sm:$0xff] %v3581_v6  ;;  %s3586_s23 = scalar_lea.vmem %s5728_s0, %s3467_s20  ;;  %s198_s4 = scalar_lea.vmem %s5731_s3, %s3468_s28 }
  0x11   : > { %v3334_v8 = vld.sshfl [vmem:[%s3586_s23] sm:$0x33 pattern:$0x76325410]  ;;  %v302_v13 = vsub.s32 %v299_v7, %v3581_v6 }
  0x12   : > { %262 = vxpose.xlu0.c.b16.start.end [1/1] (short) %v3334_v8, 128  ;;  %v259_v31 = vcombine.high %v3334_v8, %v3334_v8 }
  0x13   : > { %v303_v15 = vrot.slane %v206_v3, %v302_v13  ;;  %v310_v16 = vrot.slane %v296_v11, %v302_v13  ;;  %v320_v17 = vrot.slane %v207_v5, %v302_v13  ;;  %v327_v18 = vrot.slane %v313_v12, %v302_v13 }
  0x15   : > { %v311_v19 = vcombine.high %v303_v15, %v303_v15  ;;  %v312_v20 = vcombine.high %v310_v16, %v310_v16  ;;  %v3590_v21 = vand.u32 %v382_v14, %v303_v15  ;;  %v3592_v22 = vand.u32 %v382_v14, %v310_v16 }
  0x16   : > { %v328_v23 = vcombine.high %v320_v17, %v320_v17  ;;  %v329_v24 = vcombine.high %v327_v18, %v327_v18  ;;  %v3594_v25 = vand.u32 %v382_v14, %v320_v17  ;;  %v3596_v26 = vand.u32 %v382_v14, %v327_v18 }
  0x17   : > { %5770 = vst [vmem:[#allocation4_spill] sm:$0xff] %v3590_v21  ;;  %5771 = vst [vmem:[#allocation5_spill] sm:$0xff] %v3592_v22  ;;  %v3598_v27 = vand.u32 %v382_v14, %v311_v19  ;;  %v3600_v28 = vand.u32 %v382_v14, %v312_v20 }
  0x18   : > { %5772 = vst [vmem:[#allocation6_spill] sm:$0xff] %v3594_v25  ;;  %5773 = vst [vmem:[#allocation7_spill] sm:$0xff] %v3596_v26  ;;  %v3602_v29 = vand.u32 %v382_v14, %v328_v23  ;;  %v3604_v30 = vand.u32 %v382_v14, %v329_v24 }
  0x19   : > { %5774 = vst [vmem:[#allocation8_spill] sm:$0xff] %v3598_v27  ;;  %5775 = vst [vmem:[#allocation9_spill] sm:$0xff] %v3600_v28  ;;  %421 = vmatprep.subr.bf16.mxu0 %v3598_v27  ;;  %614 = vmatprep.subr.bf16.mxu1 %v3600_v28 }
  0x1a   : > { %5776 = vst [vmem:[#allocation10_spill] sm:$0xff] %v3602_v29  ;;  %5777 = vst [vmem:[#allocation11_spill] sm:$0xff] %v3604_v30  ;;  %422 = vmatpush1.bf16.msra.mxu0 %v3590_v21  ;;  %615 = vmatpush1.bf16.msra.mxu1 %v3592_v22  ;;  %v213_v22 = vsub.s32 0, %v3581_v6  ;;  %v221_v21 = vsub.s32 2, %v3581_v6 }
  0x1b   : > { %807 = vmatprep.subr.bf16.mxu0 %v3602_v29  ;;  %1000 = vmatprep.subr.bf16.mxu1 %v3604_v30 }
  0x2f   : > { %278 = vxpose.xlu0.c.b16.start.end [1/1] (short) %v259_v31, 128 }
  0x74   : > { %v3612_v32 = vpop.trf.xlu0 }
  0x75   : > { %3335 = vmatmul.mubr.msk.bf16.vlgmr.msra.gmra.mxu0 %vm330_vm2, %v3612_v32  ;;  %3351 = vmatmul.mubr.msk.bf16.vlgmr.msra.gmra.mxu1 %vm330_vm2, %v3612_v32 }
  0x76   : > { %808 = vmatpush1.bf16.msra.mxu0 %v3594_v25  ;;  %1001 = vmatpush1.bf16.msra.mxu1 %v3596_v26 }
  0x77   : > { %449 = vmatprep.mubr.bf16.mxu0 %v5740_v4  ;;  %642 = vmatprep.mubr.bf16.mxu1 %v5740_v4 }
  0x78   : > { %v3622_v33 = vpop.trf.xlu0 }
  0x7c   : > { %v3630_v34 = vpop.trf.xlu0 }
  0x7d   : > { %3336 = vmatmul.mubr.msk.bf16.gmra.mxu0 %vm330_vm2, %v3622_v33  ;;  %3352 = vmatmul.mubr.msk.bf16.gmra.mxu1 %vm330_vm2, %v3622_v33 }
  0x7e   : > { %459 = vmatprep.mubr.bf16.mxu0 %v5740_v4  ;;  %652 = vmatprep.mubr.bf16.mxu1 %v5740_v4 }
  0x80   : > { %v3638_v35 = vpop.trf.xlu0 }
  0x84   : > { %v3646_v36 = vpop.trf.xlu0 }
  0x85   : > { %3337 = vmatmul.mubr.msk.bf16.gmra.mxu0 %vm330_vm2, %v3630_v34  ;;  %3353 = vmatmul.mubr.msk.bf16.gmra.mxu1 %vm330_vm2, %v3630_v34 }
  0x86   : > { %469 = vmatprep.mubr.bf16.mxu0 %v5740_v4  ;;  %662 = vmatprep.mubr.bf16.mxu1 %v5740_v4 }
  0x88   : > { %v3654_v37 = vpop.trf.xlu0 }
  0x8c   : > { %v3662_v38 = vpop.trf.xlu0 }
  0x8d   : > { %3338 = vmatmul.mubr.msk.bf16.gmra.mxu0 %vm330_vm2, %v3638_v35  ;;  %3354 = vmatmul.mubr.msk.bf16.gmra.mxu1 %vm330_vm2, %v3638_v35 }
  0x8e   : > { %479 = vmatprep.mubr.bf16.mxu0 %v5740_v4  ;;  %672 = vmatprep.mubr.bf16.mxu1 %v5740_v4 }
  0x90   : > { %v3670_v39 = vpop.trf.xlu0 }
  0x94   : > { %v3678_v40 = vpop.trf.xlu0 }
  0x95   : > { %3339 = vmatmul.mubr.msk.bf16.gmra.mxu0 %vm330_vm2, %v3646_v36  ;;  %3355 = vmatmul.mubr.msk.bf16.gmra.mxu1 %vm330_vm2, %v3646_v36 }
  0x96   : > { %489 = vmatprep.mubr.bf16.mxu0 %v5740_v4  ;;  %682 = vmatprep.mubr.bf16.mxu1 %v5740_v4 }
  0x98   : > { %v3686_v41 = vpop.trf.xlu0 }
  0x9c   : > { %v3694_v42 = vpop.trf.xlu0 }
  0x9d   : > { %3340 = vmatmul.mubr.msk.bf16.gmra.mxu0 %vm330_vm2, %v3654_v37  ;;  %3356 = vmatmul.mubr.msk.bf16.gmra.mxu1 %vm330_vm2, %v3654_v37 }
  0x9e   : > { %499 = vmatprep.mubr.bf16.mxu0 %v5740_v4  ;;  %692 = vmatprep.mubr.bf16.mxu1 %v5740_v4 }
  0xa0   : > { %v3702_v43 = vpop.trf.xlu0 }
  0xa4   : > { %v3710_v44 = vpop.trf.xlu0 }
  0xa5   : > { %3341 = vmatmul.mubr.msk.bf16.gmra.mxu0 %vm330_vm2, %v3662_v38  ;;  %3357 = vmatmul.mubr.msk.bf16.gmra.mxu1 %vm330_vm2, %v3662_v38 }
  0xa6   : > { %509 = vmatprep.mubr.bf16.mxu0 %v5740_v4  ;;  %702 = vmatprep.mubr.bf16.mxu1 %v5740_v4 }
  0xa8   : > { %v3718_v45 = vpop.trf.xlu0 }
  0xac   : > { %v3726_v46 = vpop.trf.xlu0 }
  0xad   : > { %3342 = vmatmul.mubr.msk.bf16.gmra.mxu0 %vm330_vm2, %v3670_v39  ;;  %3358 = vmatmul.mubr.msk.bf16.gmra.mxu1 %vm330_vm2, %v3670_v39 }
  0xae   : > { %519 = vmatprep.mubr.bf16.mxu0 %v5740_v4  ;;  %712 = vmatprep.mubr.bf16.mxu1 %v5740_v4 }
  0xb0   : > { %v3734_v47 = vpop.trf.xlu0 }
  0xb5   : > { %3343 = vmatmul.mubr.msk.bf16.gmra.mxu0 %vm330_vm2, %v3678_v40  ;;  %3359 = vmatmul.mubr.msk.bf16.gmra.mxu1 %vm330_vm2, %v3678_v40 }
  0xb6   : > { %529 = vmatprep.mubr.bf16.mxu0 %v5740_v4  ;;  %722 = vmatprep.mubr.bf16.mxu1 %v5740_v4 }
  0xbd   : > { %3344 = vmatmul.mubr.msk.bf16.gmra.mxu0 %vm330_vm2, %v3686_v41  ;;  %3360 = vmatmul.mubr.msk.bf16.gmra.mxu1 %vm330_vm2, %v3686_v41 }
  0xbe   : > { %539 = vmatprep.mubr.bf16.mxu0 %v5740_v4  ;;  %732 = vmatprep.mubr.bf16.mxu1 %v5740_v4 }
  0xc5   : > { %3345 = vmatmul.mubr.msk.bf16.gmra.mxu0 %vm330_vm2, %v3694_v42  ;;  %3361 = vmatmul.mubr.msk.bf16.gmra.mxu1 %vm330_vm2, %v3694_v42 }
  0xc6   : > { %549 = vmatprep.mubr.bf16.mxu0 %v5740_v4  ;;  %742 = vmatprep.mubr.bf16.mxu1 %v5740_v4 }
  0xcd   : > { %3346 = vmatmul.mubr.msk.bf16.gmra.mxu0 %vm330_vm2, %v3702_v43  ;;  %3362 = vmatmul.mubr.msk.bf16.gmra.mxu1 %vm330_vm2, %v3702_v43 }
  0xce   : > { %559 = vmatprep.mubr.bf16.mxu0 %v5740_v4  ;;  %752 = vmatprep.mubr.bf16.mxu1 %v5740_v4 }
  0xd5   : > { %3347 = vmatmul.mubr.msk.bf16.gmra.mxu0 %vm330_vm2, %v3710_v44  ;;  %3363 = vmatmul.mubr.msk.bf16.gmra.mxu1 %vm330_vm2, %v3710_v44 }
  0xd6   : > { %569 = vmatprep.mubr.bf16.mxu0 %v5740_v4  ;;  %762 = vmatprep.mubr.bf16.mxu1 %v5740_v4 }
  0xdd   : > { %3348 = vmatmul.mubr.msk.bf16.gmra.mxu0 %vm330_vm2, %v3718_v45  ;;  %3364 = vmatmul.mubr.msk.bf16.gmra.mxu1 %vm330_vm2, %v3718_v45 }
  0xde   : > { %579 = vmatprep.mubr.bf16.mxu0 %v5740_v4  ;;  %772 = vmatprep.mubr.bf16.mxu1 %v5740_v4 }
  0xe5   : > { %3349 = vmatmul.mubr.msk.bf16.gmra.mxu0 %vm330_vm2, %v3726_v46  ;;  %3365 = vmatmul.mubr.msk.bf16.gmra.mxu1 %vm330_vm2, %v3726_v46 }
  0xe6   : > { %589 = vmatprep.mubr.bf16.mxu0 %v5740_v4  ;;  %782 = vmatprep.mubr.bf16.mxu1 %v5740_v4 }
  0xed   : > { %3350 = vmatmul.mubr.msk.bf16.gmra.mxu0 %vm330_vm2, %v3734_v47  ;;  %3366 = vmatmul.mubr.msk.bf16.gmra.mxu1 %vm330_vm2, %v3734_v47 }
  0xee   : > { %825 = vmatprep.mubr.bf16.mxu0 %v5740_v4  ;;  %1018 = vmatprep.mubr.bf16.mxu1 %v5740_v4 }
  0xf5   : > { %3367 = vmatmul.mubr.msk.bf16.vlgmr.msra.gmra.mxu0 %vm330_vm2, %v3612_v32  ;;  %3383 = vmatmul.mubr.msk.bf16.vlgmr.msra.gmra.mxu1 %vm330_vm2, %v3612_v32 }
  0xf6   : > { %835 = vmatprep.mubr.bf16.mxu0 %v5740_v4  ;;  %1028 = vmatprep.mubr.bf16.mxu1 %v5740_v4 }
  0xfd   : > { %3368 = vmatmul.mubr.msk.bf16.gmra.mxu0 %vm330_vm2, %v3622_v33  ;;  %3384 = vmatmul.mubr.msk.bf16.gmra.mxu1 %vm330_vm2, %v3622_v33 }
  0xfe   : > { %845 = vmatprep.mubr.bf16.mxu0 %v5740_v4  ;;  %1038 = vmatprep.mubr.bf16.mxu1 %v5740_v4 }
 0x105   : > { %3369 = vmatmul.mubr.msk.bf16.gmra.mxu0 %vm330_vm2, %v3630_v34  ;;  %3385 = vmatmul.mubr.msk.bf16.gmra.mxu1 %vm330_vm2, %v3630_v34 }
 0x106   : > { %855 = vmatprep.mubr.bf16.mxu0 %v5740_v4  ;;  %1048 = vmatprep.mubr.bf16.mxu1 %v5740_v4 }
 0x10d   : > { %3370 = vmatmul.mubr.msk.bf16.gmra.mxu0 %vm330_vm2, %v3638_v35  ;;  %3386 = vmatmul.mubr.msk.bf16.gmra.mxu1 %vm330_vm2, %v3638_v35 }
 0x10e   : > { %865 = vmatprep.mubr.bf16.mxu0 %v5740_v4  ;;  %1058 = vmatprep.mubr.bf16.mxu1 %v5740_v4 }
 0x115   : > { %3371 = vmatmul.mubr.msk.bf16.gmra.mxu0 %vm330_vm2, %v3646_v36  ;;  %3387 = vmatmul.mubr.msk.bf16.gmra.mxu1 %vm330_vm2, %v3646_v36 }
 0x116   : > { %875 = vmatprep.mubr.bf16.mxu0 %v5740_v4  ;;  %1068 = vmatprep.mubr.bf16.mxu1 %v5740_v4 }
 0x11d   : > { %3372 = vmatmul.mubr.msk.bf16.gmra.mxu0 %vm330_vm2, %v3654_v37  ;;  %3388 = vmatmul.mubr.msk.bf16.gmra.mxu1 %vm330_vm2, %v3654_v37 }
 0x11e   : > { %885 = vmatprep.mubr.bf16.mxu0 %v5740_v4  ;;  %1078 = vmatprep.mubr.bf16.mxu1 %v5740_v4 }
 0x125   : > { %3373 = vmatmul.mubr.msk.bf16.gmra.mxu0 %vm330_vm2, %v3662_v38  ;;  %3389 = vmatmul.mubr.msk.bf16.gmra.mxu1 %vm330_vm2, %v3662_v38 }
 0x126   : > { %895 = vmatprep.mubr.bf16.mxu0 %v5740_v4  ;;  %1088 = vmatprep.mubr.bf16.mxu1 %v5740_v4 }
 0x12d   : > { %3374 = vmatmul.mubr.msk.bf16.gmra.mxu0 %vm330_vm2, %v3670_v39  ;;  %3390 = vmatmul.mubr.msk.bf16.gmra.mxu1 %vm330_vm2, %v3670_v39 }
 0x12e   : > { %905 = vmatprep.mubr.bf16.mxu0 %v5740_v4  ;;  %1098 = vmatprep.mubr.bf16.mxu1 %v5740_v4 }
 0x135   : > { %v3790_v48 = vpop.f32.mrf.mxu0  ;;  %v3792_v49 = vpop.f32.mrf.mxu1  ;;  %3375 = vmatmul.mubr.msk.bf16.gmra.mxu0 %vm330_vm2, %v3678_v40  ;;  %3391 = vmatmul.mubr.msk.bf16.gmra.mxu1 %vm330_vm2, %v3678_v40 }
 0x136   : > { %5778 = vst [vmem:[#allocation12_spill] sm:$0xff] %v3790_v48  ;;  %5779 = vst [vmem:[#allocation13_spill] sm:$0xff] %v3792_v49  ;;  %915 = vmatprep.mubr.bf16.mxu0 %v5740_v4  ;;  %1108 = vmatprep.mubr.bf16.mxu1 %v5740_v4  ;;  %v225_v49 = vsub.s32 3, %v3581_v6 }
 0x137   : > { %v3800_v50 = vpop.f32.mrf.mxu0  ;;  %v3802_v51 = vpop.f32.mrf.mxu1 }
 0x138   : > { %5780 = vst [vmem:[#allocation14_spill] sm:$0xff] %v3800_v50  ;;  %5781 = vst [vmem:[#allocation15_spill] sm:$0xff] %v3802_v51 }
 0x139   : > { %v3804_v52 = vpop.f32.mrf.mxu0  ;;  %v3806_v53 = vpop.f32.mrf.mxu1 }
 0x13a   : > { %5782 = vst [vmem:[#allocation16_spill] sm:$0xff] %v3804_v52  ;;  %5783 = vst [vmem:[#allocation17_spill] sm:$0xff] %v3806_v53 }
 0x13b   : > { %v3808_v54 = vpop.f32.mrf.mxu0  ;;  %v3810_v55 = vpop.f32.mrf.mxu1 }
 0x13c   : > { %5784 = vst [vmem:[#allocation18_spill] sm:$0xff] %v3808_v54  ;;  %5785 = vst [vmem:[#allocation19_spill] sm:$0xff] %v3810_v55 }
 0x13d   : > { %v3812_v56 = vpop.f32.mrf.mxu0  ;;  %v3814_v57 = vpop.f32.mrf.mxu1  ;;  %3376 = vmatmul.mubr.msk.bf16.gmra.mxu0 %vm330_vm2, %v3686_v41  ;;  %3392 = vmatmul.mubr.msk.bf16.gmra.mxu1 %vm330_vm2, %v3686_v41 }
 0x13e   : > { %5786 = vst [vmem:[#allocation20_spill] sm:$0xff] %v3812_v56  ;;  %5787 = vst [vmem:[#allocation21_spill] sm:$0xff] %v3814_v57  ;;  %925 = vmatprep.mubr.bf16.mxu0 %v5740_v4  ;;  %1118 = vmatprep.mubr.bf16.mxu1 %v5740_v4 }
 0x13f   : > { %v3822_v58 = vpop.f32.mrf.mxu0  ;;  %v3824_v59 = vpop.f32.mrf.mxu1 }
 0x140   : > { %5788 = vst [vmem:[#allocation22_spill] sm:$0xff] %v3822_v58  ;;  %5789 = vst [vmem:[#allocation23_spill] sm:$0xff] %v3824_v59 }
 0x141   : > { %v3826_v60 = vpop.f32.mrf.mxu0  ;;  %v3828_v61 = vpop.f32.mrf.mxu1 }
 0x142   : > { %5790 = vst [vmem:[#allocation24_spill] sm:$0xff] %v3826_v60  ;;  %5791 = vst [vmem:[#allocation25_spill] sm:$0xff] %v3828_v61 }
 0x143   : > { %v3830_v62 = vpop.f32.mrf.mxu0  ;;  %v3832_v63 = vpop.f32.mrf.mxu1 }
 0x144   : > { %5792 = vst [vmem:[#allocation26_spill] sm:$0xff] %v3830_v62  ;;  %5793 = vst [vmem:[#allocation27_spill] sm:$0xff] %v3832_v63 }
 0x145   : > { %v3834_v0 = vpop.f32.mrf.mxu0  ;;  %v3836_v1 = vpop.f32.mrf.mxu1  ;;  %3377 = vmatmul.mubr.msk.bf16.gmra.mxu0 %vm330_vm2, %v3694_v42  ;;  %3393 = vmatmul.mubr.msk.bf16.gmra.mxu1 %vm330_vm2, %v3694_v42 }
 0x146   : > { %5794 = vst [vmem:[#allocation28_spill] sm:$0xff] %v3836_v1  ;;  %935 = vmatprep.mubr.bf16.mxu0 %v5740_v4  ;;  %1128 = vmatprep.mubr.bf16.mxu1 %v5740_v4 }
 0x147   : > { %v3844_v2 = vpop.f32.mrf.mxu0  ;;  %v3846_v3 = vpop.f32.mrf.mxu1 }
 0x149   : > { %v3848_v5 = vpop.f32.mrf.mxu0  ;;  %v3850_v7 = vpop.f32.mrf.mxu1 }
 0x14b   : > { %v3852_v8 = vpop.f32.mrf.mxu0  ;;  %v3854_v9 = vpop.f32.mrf.mxu1 }
 0x14d   : > { %v3856_v10 = vpop.f32.mrf.mxu0  ;;  %v3858_v11 = vpop.f32.mrf.mxu1  ;;  %3378 = vmatmul.mubr.msk.bf16.gmra.mxu0 %vm330_vm2, %v3702_v43  ;;  %3394 = vmatmul.mubr.msk.bf16.gmra.mxu1 %vm330_vm2, %v3702_v43 }
 0x14e   : > { %945 = vmatprep.mubr.bf16.mxu0 %v5740_v4  ;;  %1138 = vmatprep.mubr.bf16.mxu1 %v5740_v4 }
 0x14f   : > { %v3866_v12 = vpop.f32.mrf.mxu0  ;;  %v3868_v13 = vpop.f32.mrf.mxu1 }
 0x151   : > { %v3870_v14 = vpop.f32.mrf.mxu0  ;;  %v3872_v15 = vpop.f32.mrf.mxu1 }
 0x153   : > { %v3874_v16 = vpop.f32.mrf.mxu0  ;;  %v3876_v17 = vpop.f32.mrf.mxu1 }
 0x155   : > { %v3878_v18 = vpop.f32.mrf.mxu0  ;;  %v3880_v19 = vpop.f32.mrf.mxu1  ;;  %3379 = vmatmul.mubr.msk.bf16.gmra.mxu0 %vm330_vm2, %v3710_v44  ;;  %3395 = vmatmul.mubr.msk.bf16.gmra.mxu1 %vm330_vm2, %v3710_v44 }
 0x156   : > { %955 = vmatprep.mubr.bf16.mxu0 %v5740_v4  ;;  %1148 = vmatprep.mubr.bf16.mxu1 %v5740_v4 }
 0x157   : > { %v3888_v20 = vpop.f32.mrf.mxu0  ;;  %v3890_v23 = vpop.f32.mrf.mxu1 }
 0x159   : > { %v3892_v24 = vpop.f32.mrf.mxu0  ;;  %v3894_v31 = vpop.f32.mrf.mxu1 }
 0x15b   : > { %v3896_v32 = vpop.f32.mrf.mxu0  ;;  %v3898_v33 = vpop.f32.mrf.mxu1 }
 0x15d   : > { %v3900_v34 = vpop.f32.mrf.mxu0  ;;  %v3902_v35 = vpop.f32.mrf.mxu1  ;;  %3380 = vmatmul.mubr.msk.bf16.gmra.mxu0 %vm330_vm2, %v3718_v45  ;;  %3396 = vmatmul.mubr.msk.bf16.gmra.mxu1 %vm330_vm2, %v3718_v45 }
 0x15e   : > { %965 = vmatprep.mubr.bf16.mxu0 %v5740_v4  ;;  %1158 = vmatprep.mubr.bf16.mxu1 %v5740_v4 }
 0x15f   : > { %v3910_v36 = vpop.f32.mrf.mxu0  ;;  %v3912_v37 = vpop.f32.mrf.mxu1 }
 0x161   : > { %v3914_v38 = vpop.f32.mrf.mxu0  ;;  %v3916_v39 = vpop.f32.mrf.mxu1 }
 0x163   : > { %v3918_v40 = vpop.f32.mrf.mxu0  ;;  %v3920_v41 = vpop.f32.mrf.mxu1 }
 0x165   : > { %v501_v42 = vpop.f32.mrf.mxu0  ;;  %v694_v43 = vpop.f32.mrf.mxu1  ;;  %3381 = vmatmul.mubr.msk.bf16.gmra.mxu0 %vm330_vm2, %v3726_v46  ;;  %3397 = vmatmul.mubr.msk.bf16.gmra.mxu1 %vm330_vm2, %v3726_v46  ;;  %v208_v46 = vld [vmem:[%s5730_s2] sm:$0xff] }
 0x166   : > { %975 = vmatprep.mubr.bf16.mxu0 %v5740_v4  ;;  %1168 = vmatprep.mubr.bf16.mxu1 %v5740_v4  ;;  %v217_v4 = vsub.s32 1, %v3581_v6  ;;  %v3939_v50 = vrot.slane %v208_v46, %v213_v22  ;;  %v3941_v53 = vrot.slane %v208_v46, %v221_v21  ;;  %v3945_v57 = vrot.slane %v208_v46, %v225_v49 }
 0x167   : > { %v503_v44 = vpop.f32.mrf.mxu0  ;;  %v696_v45 = vpop.f32.mrf.mxu1 }
 0x168   : > { %5795 = vst [vmem:[#allocation29_spill] sm:$0xff] %v3939_v50  ;;  %5796 = vst [vmem:[#allocation30_spill] sm:$0xff] %v3941_v53  ;;  %v3943_v54 = vrot.slane %v208_v46, %v217_v4 }
 0x169   : > { %v505_v26 = vpop.f32.mrf.mxu0  ;;  %v698_v25 = vpop.f32.mrf.mxu1  ;;  %5798 = vst [vmem:[#allocation32_spill] sm:$0xff] %v3945_v57 }
 0x16a   : > { %5797 = vst [vmem:[#allocation31_spill] sm:$0xff] %v3943_v54 }
 0x16b   : > { %v507_v30 = vpop.f32.mrf.mxu0  ;;  %v700_v29 = vpop.f32.mrf.mxu1 }
 0x16d   : > { %v511_v28 = vpop.f32.mrf.mxu0  ;;  %v704_v27 = vpop.f32.mrf.mxu1  ;;  %3382 = vmatmul.mubr.msk.bf16.gmra.mxu0 %vm330_vm2, %v3734_v47  ;;  %3398 = vmatmul.mubr.msk.bf16.gmra.mxu1 %vm330_vm2, %v3734_v47 }
 0x16e   : > { %v512_v60 = vadd.f32 %v511_v28, %v3939_v50  ;;  %v705_v4 = vadd.f32 %v704_v27, %v3941_v53  ;;  %v504_v27 = vadd.f32 %v503_v44, %v3943_v54  ;;  %v498_v44 = vadd.f32 %v3918_v40, %v3943_v54 }
 0x16f   : > { %v513_v48 = vpop.f32.mrf.mxu0  ;;  %v706_v51 = vpop.f32.mrf.mxu1  ;;  %v494_v40 = vadd.f32 %v3910_v36, %v3943_v54  ;;  %v488_v36 = vadd.f32 %v3896_v32, %v3943_v54  ;;  %v484_v32 = vadd.f32 %v3888_v20, %v3943_v54  ;;  %v478_v20 = vadd.f32 %v3874_v16, %v3943_v54 }
 0x170   : > { %v514_v6 = vadd.f32 %v513_v48, %v3943_v54  ;;  %v707_v61 = vadd.f32 %v706_v51, %v3945_v57  ;;  %v506_v51 = vadd.f32 %v505_v26, %v3939_v50  ;;  %v695_v26 = vadd.f32 %v694_v43, %v3941_v53 }
 0x171   : > { %v515_v52 = vpop.f32.mrf.mxu0  ;;  %v708_v55 = vpop.f32.mrf.mxu1  ;;  %v474_v16 = vadd.f32 %v3866_v12, %v3943_v54  ;;  %v468_v12 = vadd.f32 %v3852_v8, %v3943_v54  ;;  %v464_v8 = vadd.f32 %v3844_v2, %v3943_v54  ;;  %v5817_v2 = vld [vmem:[#allocation26_spill] sm:$0xff] }
 0x172   : > { %v516_v47 = vadd.f32 %v515_v52, %v3939_v50  ;;  %v709_v56 = vadd.f32 %v708_v55, %v3941_v53  ;;  %v508_v52 = vadd.f32 %v507_v30, %v3943_v54  ;;  %v701_v55 = vadd.f32 %v700_v29, %v3945_v57 }
 0x173   : > { %v517_v59 = vpop.f32.mrf.mxu0  ;;  %v710_v58 = vpop.f32.mrf.mxu1  ;;  %v1294_v30 = vmax.f32 %v707_v61, 0.0  ;;  %v502_v29 = vadd.f32 %v501_v42, %v3939_v50  ;;  %v689_v42 = vadd.f32 %v3916_v39, %v3941_v53  ;;  %v1283_v43 = vmax.f32 %v506_v51, 0.0 }
 0x174   : > { %v518_v22 = vadd.f32 %v517_v59, %v3943_v54  ;;  %v711_v21 = vadd.f32 %v710_v58, %v3945_v57  ;;  %v699_v59 = vadd.f32 %v698_v25, %v3941_v53  ;;  %v1299_v62 = vmax.f32 %v516_v47, 0.0 }
 0x175   : > { %v3955_v49 = vpop.f32.mrf.mxu0  ;;  %v3957_v46 = vpop.f32.mrf.mxu1  ;;  %v1301_v58 = vmax.f32 %v709_v56, 0.0  ;;  %v1293_v25 = vmax.f32 %v705_v4, 0.0  ;;  %v1284_v61 = vmax.f32 %v508_v52, 0.0  ;;  %v1276_v4 = vmax.f32 %v504_v27, 0.0 }
 0x176   : > { %5799 = vst [vmem:[#allocation33_spill] sm:$0xff] %v3955_v49  ;;  %5800 = vst [vmem:[#allocation34_spill] sm:$0xff] %v3957_v46  ;;  %v1300_v63 = vmax.f32 %v518_v22, 0.0  ;;  %v1302_v48 = vmax.f32 %v711_v21, 0.0  ;;  %v697_v46 = vadd.f32 %v696_v45, %v3945_v57  ;;  %v1292_v49 = vmax.f32 %v514_v6, 0.0 }
 0x177   : > { %v3963_v1 = vpop.f32.mrf.mxu0  ;;  %v3965_v28 = vpop.f32.mrf.mxu1  ;;  %v1291_v22 = vmax.f32 %v512_v60, 0.0  ;;  %v691_v6 = vadd.f32 %v3920_v41, %v3945_v57  ;;  %v496_v60 = vadd.f32 %v3914_v38, %v3939_v50  ;;  %v1285_v45 = vmax.f32 %v699_v59, 0.0 }
 0x178   : > { %5801 = vst [vmem:[#allocation35_spill] sm:$0xff] %v3963_v1  ;;  %5802 = vst [vmem:[#allocation36_spill] sm:$0xff] %v3965_v28  ;;  %1435 = vmatprep.subr.mxu0 %v1300_v63  ;;  %1506 = vmatprep.subr.mxu1 %v1302_v48  ;;  %v1286_v63 = vmax.f32 %v701_v55, 0.0  ;;  %v687_v41 = vadd.f32 %v3912_v37, %v3945_v57  ;;  %v492_v38 = vadd.f32 %v3900_v34, %v3939_v50 }
 0x179   : > { %v3971_v47 = vpop.f32.mrf.mxu0  ;;  %v3973_v56 = vpop.f32.mrf.mxu1  ;;  %1436 = vmatpush1.msra.mxu0 %v1299_v62  ;;  %1507 = vmatpush1.msra.mxu1 %v1301_v58  ;;  %v685_v39 = vadd.f32 %v3902_v35, %v3941_v53  ;;  %v1275_v52 = vmax.f32 %v502_v29, 0.0  ;;  %v1277_v55 = vmax.f32 %v695_v26, 0.0  ;;  %v681_v37 = vadd.f32 %v3898_v33, %v3945_v57 }
 0x17a   : > { %5803 = vst [vmem:[#allocation37_spill] sm:$0xff] %v3971_v47  ;;  %5804 = vst [vmem:[#allocation38_spill] sm:$0xff] %v3973_v56  ;;  %1437 = vmatprep.subr.mxu0 %v1292_v49  ;;  %1508 = vmatprep.subr.mxu1 %v1294_v30  ;;  %v1278_v49 = vmax.f32 %v697_v46, 0.0  ;;  %v1268_v46 = vmax.f32 %v498_v44, 0.0  ;;  %v1270_v59 = vmax.f32 %v691_v6, 0.0  ;;  %v486_v34 = vadd.f32 %v3892_v24, %v3939_v50 }
 0x17b   : > { %v3983_v62 = vpop.f32.mrf.mxu0  ;;  %v3985_v21 = vpop.f32.mrf.mxu1  ;;  %1438 = vmatpush1.msra.mxu0 %v1291_v22  ;;  %1509 = vmatpush1.msra.mxu1 %v1293_v25  ;;  %v679_v35 = vadd.f32 %v3894_v31, %v3941_v53  ;;  %v1267_v58 = vmax.f32 %v496_v60, 0.0  ;;  %v1269_v27 = vmax.f32 %v689_v42, 0.0  ;;  %v677_v33 = vadd.f32 %v3890_v23, %v3945_v57 }
 0x17c   : > { %5805 = vst [vmem:[#allocation39_spill] sm:$0xff] %v3983_v62  ;;  %5806 = vst [vmem:[#allocation40_spill] sm:$0xff] %v3985_v21  ;;  %1439 = vmatprep.subr.mxu0 %v1284_v61  ;;  %1510 = vmatprep.subr.mxu1 %v1286_v63  ;;  %v1260_v26 = vmax.f32 %v494_v40, 0.0  ;;  %v1262_v22 = vmax.f32 %v687_v41, 0.0  ;;  %v482_v24 = vadd.f32 %v3878_v18, %v3939_v50  ;;  %v1259_v25 = vmax.f32 %v492_v38, 0.0 }
 0x17d   : > { %v3995_v48 = vpop.f32.mrf.mxu0  ;;  %v3997_v51 = vpop.f32.mrf.mxu1  ;;  %1440 = vmatpush1.msra.mxu0 %v1283_v43  ;;  %1511 = vmatpush1.msra.mxu1 %v1285_v45  ;;  %v675_v31 = vadd.f32 %v3880_v19, %v3941_v53  ;;  %v1261_v44 = vmax.f32 %v685_v39, 0.0  ;;  %v671_v23 = vadd.f32 %v3876_v17, %v3945_v57  ;;  %v1252_v63 = vmax.f32 %v488_v36, 0.0 }
 0x17e   : > { %5807 = vst [vmem:[#allocation41_spill] sm:$0xff] %v3995_v48  ;;  %5808 = vst [vmem:[#allocation42_spill] sm:$0xff] %v3997_v51  ;;  %1441 = vmatprep.subr.mxu0 %v1276_v4  ;;  %1512 = vmatprep.subr.mxu1 %v1278_v49  ;;  %v1254_v60 = vmax.f32 %v681_v37, 0.0  ;;  %v476_v18 = vadd.f32 %v3870_v14, %v3939_v50  ;;  %v669_v19 = vadd.f32 %v3872_v15, %v3941_v53 }
 0x17f   : > { %v4007_v30 = vpop.f32.mrf.mxu0  ;;  %v4009_v29 = vpop.f32.mrf.mxu1  ;;  %1442 = vmatpush1.msra.mxu0 %v1275_v52  ;;  %1513 = vmatpush1.msra.mxu1 %v1277_v55  ;;  %v1251_v42 = vmax.f32 %v486_v34, 0.0  ;;  %v1253_v43 = vmax.f32 %v679_v35, 0.0  ;;  %v667_v17 = vadd.f32 %v3868_v13, %v3945_v57  ;;  %v1244_v41 = vmax.f32 %v484_v32, 0.0 }
 0x180   : > { %5809 = vst [vmem:[#allocation43_spill] sm:$0xff] %v4007_v30  ;;  %5810 = vst [vmem:[#allocation44_spill] sm:$0xff] %v4009_v29  ;;  %1443 = vmatprep.subr.mxu0 %v1268_v46  ;;  %1514 = vmatprep.subr.mxu1 %v1270_v59  ;;  %v1246_v4 = vmax.f32 %v677_v33, 0.0  ;;  %v472_v14 = vadd.f32 %v3856_v10, %v3939_v50  ;;  %v665_v15 = vadd.f32 %v3858_v11, %v3941_v53 }
 0x181   : > { %v4019_v6 = vpop.f32.mrf.mxu0  ;;  %v4021_v61 = vpop.f32.mrf.mxu1  ;;  %1444 = vmatpush1.msra.mxu0 %v1267_v58  ;;  %1515 = vmatpush1.msra.mxu1 %v1269_v27  ;;  %v1243_v49 = vmax.f32 %v482_v24, 0.0  ;;  %v1245_v38 = vmax.f32 %v675_v31, 0.0  ;;  %v661_v13 = vadd.f32 %v3854_v9, %v3945_v57  ;;  %v1236_v55 = vmax.f32 %v478_v20, 0.0  ;;  %v5818_v24 = vld [vmem:[#allocation27_spill] sm:$0xff] }
 0x182   : > { %5811 = vst [vmem:[#allocation45_spill] sm:$0xff] %v4019_v6  ;;  %5812 = vst [vmem:[#allocation46_spill] sm:$0xff] %v4021_v61  ;;  %1445 = vmatprep.subr.mxu0 %v1260_v26  ;;  %1516 = vmatprep.subr.mxu1 %v1262_v22  ;;  %v1238_v36 = vmax.f32 %v671_v23, 0.0  ;;  %v466_v10 = vadd.f32 %v3848_v5, %v3939_v50  ;;  %v659_v11 = vadd.f32 %v3850_v7, %v3941_v53  ;;  %v5816_v7 = vld [vmem:[#allocation28_spill] sm:$0xff]  ;;  %v5820_v23 = vld [vmem:[#allocation25_spill] sm:$0xff] }
 0x183   : > { %v4031_v45 = vpop.f32.mrf.mxu0  ;;  %v4033_v40 = vpop.f32.mrf.mxu1  ;;  %1446 = vmatpush1.msra.mxu0 %v1259_v25  ;;  %1517 = vmatpush1.msra.mxu1 %v1261_v44  ;;  %v1235_v37 = vmax.f32 %v476_v18, 0.0  ;;  %v1237_v46 = vmax.f32 %v669_v19, 0.0  ;;  %v657_v9 = vadd.f32 %v3846_v3, %v3945_v57  ;;  %v1228_v35 = vmax.f32 %v474_v16, 0.0 }
 0x184   : > { %5813 = vst [vmem:[#allocation47_spill] sm:$0xff] %v4031_v45  ;;  %5814 = vst [vmem:[#allocation48_spill] sm:$0xff] %v4033_v40  ;;  %1447 = vmatprep.subr.mxu0 %v1252_v63  ;;  %1518 = vmatprep.subr.mxu1 %v1254_v60  ;;  %v1230_v58 = vmax.f32 %v667_v17, 0.0  ;;  %v462_v5 = vadd.f32 %v3834_v0, %v3939_v50  ;;  %v655_v27 = vadd.f32 %v5816_v7, %v3941_v53  ;;  %v5819_v0 = vld [vmem:[#allocation24_spill] sm:$0xff]  ;;  %v5822_v17 = vld [vmem:[#allocation23_spill] sm:$0xff] }
 0x185   : > { %v4043_v39 = vpop.f32.mrf.mxu0  ;;  %v4045_v52 = vpop.f32.mrf.mxu1  ;;  %1448 = vmatpush1.msra.mxu0 %v1251_v42  ;;  %1519 = vmatpush1.msra.mxu1 %v1253_v43  ;;  %v1227_v32 = vmax.f32 %v472_v14, 0.0  ;;  %v1229_v33 = vmax.f32 %v665_v15, 0.0  ;;  %v458_v3 = vadd.f32 %v5817_v2, %v3943_v54  ;;  %v651_v31 = vadd.f32 %v5818_v24, %v3945_v57  ;;  %v5821_v43 = vld [vmem:[#allocation22_spill] sm:$0xff]  ;;  %v5823_v15 = vld [vmem:[#allocation20_spill] sm:$0xff]  ;;  %v5828_v7 = vld [vmem:[#allocation17_spill] sm:$0xff] }
 0x186   : > { %5815 = vst [vmem:[#allocation49_spill] sm:$0xff] %v4045_v52  ;;  %1449 = vmatprep.subr.mxu0 %v1244_v41  ;;  %1520 = vmatprep.subr.mxu1 %v1246_v4  ;;  %v1220_v25 = vmax.f32 %v468_v12, 0.0  ;;  %v1222_v44 = vmax.f32 %v661_v13, 0.0  ;;  %v456_v20 = vadd.f32 %v5819_v0, %v3939_v50  ;;  %v649_v63 = vadd.f32 %v5820_v23, %v3941_v53 }
 0x187   : > { %v4055_v59 = vpop.f32.mrf.mxu0  ;;  %v4057_v34 = vpop.f32.mrf.mxu1  ;;  %1450 = vmatpush1.msra.mxu0 %v1243_v49  ;;  %1521 = vmatpush1.msra.mxu1 %v1245_v38  ;;  %v1219_v60 = vmax.f32 %v466_v10, 0.0  ;;  %v1221_v18 = vmax.f32 %v659_v11, 0.0  ;;  %v454_v16 = vadd.f32 %v5821_v43, %v3943_v54  ;;  %v647_v41 = vadd.f32 %v5822_v17, %v3945_v57  ;;  %v5824_v38 = vld [vmem:[#allocation21_spill] sm:$0xff]  ;;  %v5825_v11 = vld [vmem:[#allocation18_spill] sm:$0xff] }
 0x188   : > { %1451 = vmatprep.subr.mxu0 %v1236_v55  ;;  %1522 = vmatprep.subr.mxu1 %v1238_v36  ;;  %v1212_v4 = vmax.f32 %v464_v8, 0.0  ;;  %v1214_v14 = vmax.f32 %v657_v9, 0.0  ;;  %v452_v49 = vadd.f32 %v5823_v15, %v3939_v50  ;;  %v645_v12 = vadd.f32 %v5824_v38, %v3941_v53 }
 0x189   : > { %v4067_v26 = vpop.f32.mrf.mxu0  ;;  %v4069_v22 = vpop.f32.mrf.mxu1  ;;  %1452 = vmatpush1.msra.mxu0 %v1235_v37  ;;  %1523 = vmatpush1.msra.mxu1 %v1237_v46  ;;  %v1211_v13 = vmax.f32 %v462_v5, 0.0  ;;  %v1213_v55 = vmax.f32 %v655_v27, 0.0  ;;  %v448_v37 = vadd.f32 %v5825_v11, %v3943_v54  ;;  %v5826_v46 = vld [vmem:[#allocation19_spill] sm:$0xff]  ;;  %v1204_v9 = vmax.f32 %v458_v3, 0.0 }
 0x18a   : > { %1453 = vmatprep.subr.mxu0 %v1228_v35  ;;  %1524 = vmatprep.subr.mxu1 %v1230_v58  ;;  %v641_v8 = vadd.f32 %v5826_v46, %v3945_v57  ;;  %v1206_v35 = vmax.f32 %v651_v31, 0.0  ;;  %v5827_v58 = vld [vmem:[#allocation16_spill] sm:$0xff]  ;;  %v639_v27 = vadd.f32 %v5828_v7, %v3941_v53  ;;  %v5830_v31 = vld [vmem:[#allocation15_spill] sm:$0xff]  ;;  %v1196_v0 = vmax.f32 %v454_v16, 0.0 }
 0x18b   : > { %v4079_v19 = vpop.f32.mrf.mxu0  ;;  %v4081_v42 = vpop.f32.mrf.mxu1  ;;  %1454 = vmatpush1.msra.mxu0 %v1227_v32  ;;  %1525 = vmatpush1.msra.mxu1 %v1229_v33  ;;  %v446_v5 = vadd.f32 %v5827_v58, %v3939_v50  ;;  %v1203_v32 = vmax.f32 %v456_v20, 0.0  ;;  %v1205_v33 = vmax.f32 %v649_v63, 0.0  ;;  %v1198_v23 = vmax.f32 %v647_v41, 0.0  ;;  %v5832_v63 = vld [vmem:[#allocation13_spill] sm:$0xff] }
 0x18c   : > { %1455 = vmatprep.subr.mxu0 %v1220_v25  ;;  %1526 = vmatprep.subr.mxu1 %v1222_v44  ;;  %v5829_v25 = vld [vmem:[#allocation14_spill] sm:$0xff]  ;;  %v637_v44 = vadd.f32 %v5830_v31, %v3945_v57  ;;  %v1195_v43 = vmax.f32 %v452_v49, 0.0  ;;  %v1197_v17 = vmax.f32 %v645_v12, 0.0  ;;  %v1188_v15 = vmax.f32 %v448_v37, 0.0 }
 0x18d   : > { %v4091_v36 = vpop.f32.mrf.mxu0  ;;  %v4093_v10 = vpop.f32.mrf.mxu1  ;;  %1456 = vmatpush1.msra.mxu0 %v1219_v60  ;;  %1527 = vmatpush1.msra.mxu1 %v1221_v18  ;;  %v444_v3 = vadd.f32 %v5829_v25, %v3943_v54  ;;  %v5831_v60 = vld [vmem:[#allocation12_spill] sm:$0xff]  ;;  %v635_v18 = vadd.f32 %v5832_v63, %v3941_v53  ;;  %v1190_v38 = vmax.f32 %v641_v8, 0.0  ;;  %v1187_v16 = vmax.f32 %v446_v5, 0.0 }
 0x18e   : > { %1457 = vmatprep.subr.mxu0 %v1212_v4  ;;  %1528 = vmatprep.subr.mxu1 %v1214_v14  ;;  %v442_v20 = vadd.f32 %v5831_v60, %v3939_v50  ;;  %v1189_v41 = vmax.f32 %v639_v27, 0.0  ;;  %v1182_v12 = vmax.f32 %v637_v44, 0.0  ;;  %v4128_v8 = vld.sshfl [vmem:[%s3586_s23 + $0x4] sm:$0x33 pattern:$0x76325410] }
 0x18f   : > { %v4103_v2 = vpop.f32.mrf.mxu0  ;;  %v4105_v24 = vpop.f32.mrf.mxu1  ;;  %1458 = vmatpush1.msra.mxu0 %v1211_v13  ;;  %1529 = vmatpush1.msra.mxu1 %v1213_v55  ;;  %v1180_v49 = vmax.f32 %v444_v3, 0.0  ;;  %v1181_v46 = vmax.f32 %v635_v18, 0.0  ;;  %5833 = vst [vmem:[#allocation28_spill] sm:$0xff] %v4128_v8  ;;  %v5744_v5 = vmov 1.0  }
 0x190   : > { %1459 = vmatprep.subr.mxu0 %v1204_v9  ;;  %1530 = vmatprep.subr.mxu1 %v1206_v35  ;;  %v1179_v11 = vmax.f32 %v442_v20, 0.0 }
 0x191   : > { %v4115_v4 = vpop.f32.mrf.mxu0  ;;  %v4117_v14 = vpop.f32.mrf.mxu1  ;;  %1460 = vmatpush1.msra.mxu0 %v1203_v32  ;;  %1531 = vmatpush1.msra.mxu1 %v1205_v33 }
 0x192   : > { %1461 = vmatprep.subr.mxu0 %v1196_v0  ;;  %1532 = vmatprep.subr.mxu1 %v1198_v23 }
 0x193   : > { %v4119_v13 = vpop.f32.mrf.mxu0  ;;  %v4121_v55 = vpop.f32.mrf.mxu1  ;;  %1462 = vmatpush1.msra.mxu0 %v1195_v43  ;;  %1533 = vmatpush1.msra.mxu1 %v1197_v17 }
 0x194   : > { %1463 = vmatprep.subr.mxu0 %v1188_v15  ;;  %1534 = vmatprep.subr.mxu1 %v1190_v38 }
 0x195   : > { %v4123_v9 = vpop.f32.mrf.mxu0  ;;  %v4125_v37 = vpop.f32.mrf.mxu1  ;;  %1464 = vmatpush1.msra.mxu0 %v1187_v16  ;;  %1535 = vmatpush1.msra.mxu1 %v1189_v41 }
 0x196   : > { %1465 = vmatprep.subr.mxu0 %v1180_v49  ;;  %1536 = vmatprep.subr.mxu1 %v1182_v12 }
 0x197   : > { %v4130_v35 = vpop.f32.mrf.mxu0  ;;  %v4132_v58 = vpop.f32.mrf.mxu1  ;;  %1466 = vmatpush1.msra.mxu0 %v1179_v11  ;;  %1537 = vmatpush1.msra.mxu1 %v1181_v46 }
 0x198   : > { %1499 = vmatprep.mubr.f32.mxu0 %v5744_v5  ;;  %1570 = vmatprep.mubr.f32.mxu1 %v5744_v5 }
 0x199   : > { %v4136_v7 = vpop.f32.mrf.mxu0  ;;  %v4138_v27 = vpop.f32.mrf.mxu1  ;;  %1793 = vxpose.xlu1.c.b16.start.end [1/1] (short) %v4128_v8, 128 }
 0x19b   : > { %v4141_v32 = vpop.f32.mrf.mxu0  ;;  %v4143_v33 = vpop.f32.mrf.mxu1 }
 0x19d   : > { %v4145_v25 = vpop.f32.mrf.mxu0  ;;  %v4147_v3 = vpop.f32.mrf.mxu1 }
 0x19f   : > { %v4149_v31 = vpop.f32.mrf.mxu0  ;;  %v4151_v44 = vpop.f32.mrf.mxu1 }
 0x1a1   : > { %v575_v0 = vpop.f32.mrf.mxu0  ;;  %v768_v23 = vpop.f32.mrf.mxu1 }
 0x1a3   : > { %v577_v60 = vpop.f32.mrf.mxu0  ;;  %v770_v20 = vpop.f32.mrf.mxu1 }
 0x1a5   : > { %v581_v63 = vpop.f32.mrf.mxu0  ;;  %v774_v18 = vpop.f32.mrf.mxu1 }
 0x1a7   : > { %v583_v43 = vpop.f32.mrf.mxu0  ;;  %v776_v17 = vpop.f32.mrf.mxu1 }
 0x1a9   : > { %v585_v15 = vpop.f32.mrf.mxu0  ;;  %v778_v38 = vpop.f32.mrf.mxu1 }
 0x1ab   : > { %v587_v16 = vpop.f32.mrf.mxu0  ;;  %v780_v41 = vpop.f32.mrf.mxu1 }
 0x1ad   : > { %v591_v49 = vpop.f32.mrf.mxu0  ;;  %v784_v12 = vpop.f32.mrf.mxu1 }
 0x1ae   : > { %v592_v29 = vadd.f32 %v591_v49, %v3939_v50  ;;  %v785_v30 = vadd.f32 %v784_v12, %v3941_v53  ;;  %v584_v12 = vadd.f32 %v583_v43, %v3943_v54  ;;  %v578_v43 = vadd.f32 %v577_v60, %v3943_v54 }
 0x1af   : > { %v593_v11 = vpop.f32.mrf.mxu0  ;;  %v786_v46 = vpop.f32.mrf.mxu1  ;;  %v767_v60 = vadd.f32 %v4151_v44, %v3945_v57 }
 0x1b0   : > { %v594_v21 = vadd.f32 %v593_v11, %v3943_v54  ;;  %v787_v62 = vadd.f32 %v786_v46, %v3945_v57  ;;  %v586_v46 = vadd.f32 %v585_v15, %v3939_v50  ;;  %v1419_v15 = vmax.f32 %v592_v29, 0.0 }
 0x1b1   : > { %v595_v5 = vpop.f32.mrf.mxu0  ;;  %v788_v8 = vpop.f32.mrf.mxu1  ;;  %v1396_v44 = vmax.f32 %v578_v43, 0.0 }
 0x1b2   : > { %v596_v28 = vadd.f32 %v595_v5, %v3939_v50  ;;  %v789_v1 = vadd.f32 %v788_v8, %v3941_v53  ;;  %v588_v8 = vadd.f32 %v587_v16, %v3943_v54  ;;  %v781_v5 = vadd.f32 %v780_v41, %v3945_v57 }
 0x1b3   : > { %v597_v56 = vpop.f32.mrf.mxu0  ;;  %v790_v47 = vpop.f32.mrf.mxu1  ;;  %v1422_v16 = vmax.f32 %v787_v62, 0.0  ;;  %v1411_v29 = vmax.f32 %v586_v46, 0.0 }
 0x1b4   : > { %v598_v51 = vadd.f32 %v597_v56, %v3943_v54  ;;  %v791_v48 = vadd.f32 %v790_v47, %v3945_v57  ;;  %v779_v56 = vadd.f32 %v778_v38, %v3941_v53  ;;  %v1427_v45 = vmax.f32 %v596_v28, 0.0 }
 0x1b5   : > { %v4161_v61 = vpop.f32.mrf.mxu0  ;;  %v4163_v6 = vpop.f32.mrf.mxu1  ;;  %v1429_v47 = vmax.f32 %v789_v1, 0.0  ;;  %v1421_v38 = vmax.f32 %v785_v30, 0.0  ;;  %v1414_v62 = vmax.f32 %v781_v5, 0.0 }
 0x1b6   : > { %5834 = vst [vmem:[#allocation26_spill] sm:$0xff] %v4161_v61  ;;  %5835 = vst [vmem:[#allocation27_spill] sm:$0xff] %v4163_v6  ;;  %v1428_v40 = vmax.f32 %v598_v51, 0.0  ;;  %v1430_v11 = vmax.f32 %v791_v48, 0.0  ;;  %v777_v6 = vadd.f32 %v776_v17, %v3945_v57  ;;  %v1420_v61 = vmax.f32 %v594_v21, 0.0 }
 0x1b7   : > { %v4169_v52 = vpop.f32.mrf.mxu0  ;;  %v4171_v49 = vpop.f32.mrf.mxu1  ;;  %v582_v48 = vadd.f32 %v581_v63, %v3939_v50  ;;  %v775_v51 = vadd.f32 %v774_v18, %v3941_v53  ;;  %v771_v17 = vadd.f32 %v770_v20, %v3945_v57  ;;  %v1412_v21 = vmax.f32 %v588_v8, 0.0 }
 0x1b8   : > { %5836 = vst [vmem:[#allocation24_spill] sm:$0xff] %v4169_v52  ;;  %5837 = vst [vmem:[#allocation25_spill] sm:$0xff] %v4171_v49  ;;  %1467 = vmatprep.subr.mxu0 %v1428_v40  ;;  %1538 = vmatprep.subr.mxu1 %v1430_v11  ;;  %v576_v40 = vadd.f32 %v575_v0, %v3939_v50  ;;  %v769_v63 = vadd.f32 %v768_v23, %v3941_v53  ;;  %v1413_v30 = vmax.f32 %v779_v56, 0.0 }
 0x1b9   : > { %v4177_v28 = vpop.f32.mrf.mxu0  ;;  %v4179_v1 = vpop.f32.mrf.mxu1  ;;  %1468 = vmatpush2.msra.mxu0 %v1427_v45  ;;  %1539 = vmatpush2.msra.mxu1 %v1429_v47  ;;  %v574_v45 = vadd.f32 %v4149_v31, %v3943_v54  ;;  %v1406_v20 = vmax.f32 %v777_v6, 0.0  ;;  %v572_v0 = vadd.f32 %v4145_v25, %v3939_v50  ;;  %v765_v23 = vadd.f32 %v4147_v3, %v3941_v53 }
 0x1ba   : > { %5838 = vst [vmem:[#allocation22_spill] sm:$0xff] %v4177_v28  ;;  %5839 = vst [vmem:[#allocation23_spill] sm:$0xff] %v4179_v1  ;;  %1469 = vmatprep.subr.mxu0 %v1420_v61  ;;  %1540 = vmatprep.subr.mxu1 %v1422_v16  ;;  %v1404_v61 = vmax.f32 %v584_v12, 0.0  ;;  %v1403_v8 = vmax.f32 %v582_v48, 0.0  ;;  %v1405_v5 = vmax.f32 %v775_v51, 0.0  ;;  %v568_v31 = vadd.f32 %v4141_v32, %v3943_v54 }
 0x1bb   : > { %v4185_v18 = vpop.f32.mrf.mxu0  ;;  %v4187_v41 = vpop.f32.mrf.mxu1  ;;  %1470 = vmatpush2.msra.mxu0 %v1419_v15  ;;  %1541 = vmatpush2.msra.mxu1 %v1421_v38  ;;  %v761_v6 = vadd.f32 %v4143_v33, %v3945_v57  ;;  %v1398_v56 = vmax.f32 %v771_v17, 0.0  ;;  %v566_v25 = vadd.f32 %v4136_v7, %v3939_v50  ;;  %v759_v3 = vadd.f32 %v4138_v27, %v3941_v53 }
 0x1bc   : > { %5840 = vst [vmem:[#allocation20_spill] sm:$0xff] %v4185_v18  ;;  %5841 = vst [vmem:[#allocation21_spill] sm:$0xff] %v4187_v41  ;;  %1471 = vmatprep.subr.mxu0 %v1412_v21  ;;  %1542 = vmatprep.subr.mxu1 %v1414_v62  ;;  %v1395_v47 = vmax.f32 %v576_v40, 0.0  ;;  %v1397_v12 = vmax.f32 %v769_v63, 0.0  ;;  %v564_v32 = vadd.f32 %v4130_v35, %v3943_v54  ;;  %v1388_v51 = vmax.f32 %v574_v45, 0.0 }
 0x1bd   : > { %v4197_v11 = vpop.f32.mrf.mxu0  ;;  %v4199_v46 = vpop.f32.mrf.mxu1  ;;  %1472 = vmatpush2.msra.mxu0 %v1411_v29  ;;  %1543 = vmatpush2.msra.mxu1 %v1413_v30  ;;  %v757_v33 = vadd.f32 %v4132_v58, %v3945_v57  ;;  %v1390_v15 = vmax.f32 %v767_v60, 0.0  ;;  %v562_v7 = vadd.f32 %v4123_v9, %v3939_v50  ;;  %v755_v27 = vadd.f32 %v4125_v37, %v3941_v53 }
 0x1be   : > { %5842 = vst [vmem:[#allocation18_spill] sm:$0xff] %v4197_v11  ;;  %5843 = vst [vmem:[#allocation19_spill] sm:$0xff] %v4199_v46  ;;  %1473 = vmatprep.subr.mxu0 %v1404_v61  ;;  %1544 = vmatprep.subr.mxu1 %v1406_v20  ;;  %v1387_v38 = vmax.f32 %v572_v0, 0.0  ;;  %v1389_v43 = vmax.f32 %v765_v23, 0.0  ;;  %v558_v35 = vadd.f32 %v4119_v13, %v3943_v54  ;;  %v1380_v62 = vmax.f32 %v568_v31, 0.0 }
 0x1bf   : > { %v4209_v16 = vpop.f32.mrf.mxu0  ;;  %v4211_v48 = vpop.f32.mrf.mxu1  ;;  %1474 = vmatpush2.msra.mxu0 %v1403_v8  ;;  %1545 = vmatpush2.msra.mxu1 %v1405_v5  ;;  %v751_v58 = vadd.f32 %v4121_v55, %v3945_v57  ;;  %v1382_v40 = vmax.f32 %v761_v6, 0.0  ;;  %v556_v9 = vadd.f32 %v4115_v4, %v3939_v50  ;;  %v749_v37 = vadd.f32 %v4117_v14, %v3941_v53 }
 0x1c0   : > { %5844 = vst [vmem:[#allocation16_spill] sm:$0xff] %v4209_v16  ;;  %5845 = vst [vmem:[#allocation17_spill] sm:$0xff] %v4211_v48  ;;  %1475 = vmatprep.subr.mxu0 %v1396_v44  ;;  %1546 = vmatprep.subr.mxu1 %v1398_v56  ;;  %v1379_v63 = vmax.f32 %v566_v25, 0.0  ;;  %v1381_v29 = vmax.f32 %v759_v3, 0.0  ;;  %v554_v13 = vadd.f32 %v4103_v2, %v3943_v54  ;;  %v1372_v60 = vmax.f32 %v564_v32, 0.0 }
 0x1c1   : > { %v4221_v17 = vpop.f32.mrf.mxu0  ;;  %v4223_v21 = vpop.f32.mrf.mxu1  ;;  %1476 = vmatpush2.msra.mxu0 %v1395_v47  ;;  %1547 = vmatpush2.msra.mxu1 %v1397_v12  ;;  %v747_v55 = vadd.f32 %v4105_v24, %v3945_v57  ;;  %v1374_v61 = vmax.f32 %v757_v33, 0.0  ;;  %v552_v4 = vadd.f32 %v4091_v36, %v3939_v50  ;;  %v745_v14 = vadd.f32 %v4093_v10, %v3941_v53 }
 0x1c2   : > { %5846 = vst [vmem:[#allocation14_spill] sm:$0xff] %v4221_v17  ;;  %5847 = vst [vmem:[#allocation15_spill] sm:$0xff] %v4223_v21  ;;  %1477 = vmatprep.subr.mxu0 %v1388_v51  ;;  %1548 = vmatprep.subr.mxu1 %v1390_v15  ;;  %v1371_v20 = vmax.f32 %v562_v7, 0.0  ;;  %v1373_v0 = vmax.f32 %v755_v27, 0.0  ;;  %v548_v2 = vadd.f32 %v4079_v19, %v3943_v54  ;;  %v1364_v5 = vmax.f32 %v558_v35, 0.0  ;;  %v5853_v7 = vld [vmem:[#allocation48_spill] sm:$0xff] }
 0x1c3   : > { %v4233_v30 = vpop.f32.mrf.mxu0  ;;  %v4235_v45 = vpop.f32.mrf.mxu1  ;;  %1478 = vmatpush2.msra.mxu0 %v1387_v38  ;;  %1549 = vmatpush2.msra.mxu1 %v1389_v43  ;;  %v741_v24 = vadd.f32 %v4081_v42, %v3945_v57  ;;  %v1366_v31 = vmax.f32 %v751_v58, 0.0  ;;  %v546_v36 = vadd.f32 %v4067_v26, %v3939_v50  ;;  %v739_v10 = vadd.f32 %v4069_v22, %v3941_v53  ;;  %v5851_v22 = vld [vmem:[#allocation49_spill] sm:$0xff]  ;;  %v5855_v58 = vld [vmem:[#allocation46_spill] sm:$0xff] }
 0x1c4   : > { %5848 = vst [vmem:[#allocation12_spill] sm:$0xff] %v4233_v30  ;;  %5849 = vst [vmem:[#allocation13_spill] sm:$0xff] %v4235_v45  ;;  %1479 = vmatprep.subr.mxu0 %v1380_v62  ;;  %1550 = vmatprep.subr.mxu1 %v1382_v40  ;;  %v1363_v6 = vmax.f32 %v556_v9, 0.0  ;;  %v1365_v44 = vmax.f32 %v749_v37, 0.0  ;;  %v544_v19 = vadd.f32 %v4055_v59, %v3943_v54  ;;  %v1356_v3 = vmax.f32 %v554_v13, 0.0  ;;  %v5852_v59 = vld [vmem:[#allocation47_spill] sm:$0xff] }
 0x1c5   : > { %v4245_v23 = vpop.f32.mrf.mxu0  ;;  %v4247_v8 = vpop.f32.mrf.mxu1  ;;  %1480 = vmatpush2.msra.mxu0 %v1379_v63  ;;  %1551 = vmatpush2.msra.mxu1 %v1381_v29  ;;  %v737_v42 = vadd.f32 %v4057_v34, %v3945_v57  ;;  %v1358_v47 = vmax.f32 %v747_v55, 0.0  ;;  %v542_v26 = vadd.f32 %v4043_v39, %v3939_v50  ;;  %v735_v12 = vadd.f32 %v5851_v22, %v3941_v53  ;;  %v5854_v39 = vld [vmem:[#allocation45_spill] sm:$0xff]  ;;  %v5856_v29 = vld [vmem:[#allocation43_spill] sm:$0xff]  ;;  %v5857_v55 = vld [vmem:[#allocation44_spill] sm:$0xff] }
 0x1c6   : > { %5850 = vst [vmem:[#allocation50_spill] sm:$0xff] %v4247_v8  ;;  %1481 = vmatprep.subr.mxu0 %v1372_v60  ;;  %1552 = vmatprep.subr.mxu1 %v1374_v61  ;;  %v1355_v32 = vmax.f32 %v552_v4, 0.0  ;;  %v1357_v33 = vmax.f32 %v745_v14, 0.0  ;;  %v538_v34 = vadd.f32 %v5852_v59, %v3943_v54  ;;  %v731_v27 = vadd.f32 %v5853_v7, %v3945_v57  ;;  %v5858_v14 = vld [vmem:[#allocation41_spill] sm:$0xff]  ;;  %v5863_v22 = vld [vmem:[#allocation38_spill] sm:$0xff] }
 0x1c7   : > { %v4257_v56 = vpop.f32.mrf.mxu0  ;;  %v4259_v25 = vpop.f32.mrf.mxu1  ;;  %1482 = vmatpush2.msra.mxu0 %v1371_v20  ;;  %1553 = vmatpush2.msra.mxu1 %v1373_v0  ;;  %v1348_v38 = vmax.f32 %v548_v2, 0.0  ;;  %v1350_v43 = vmax.f32 %v741_v24, 0.0  ;;  %v536_v35 = vadd.f32 %v5854_v39, %v3939_v50  ;;  %v729_v62 = vadd.f32 %v5855_v58, %v3941_v53  ;;  %v5859_v0 = vld [vmem:[#allocation42_spill] sm:$0xff] }
 0x1c8   : > { %1483 = vmatprep.subr.mxu0 %v1364_v5  ;;  %1554 = vmatprep.subr.mxu1 %v1366_v31  ;;  %v1347_v40 = vmax.f32 %v546_v36, 0.0  ;;  %v1349_v9 = vmax.f32 %v739_v10, 0.0  ;;  %v534_v13 = vadd.f32 %v5856_v29, %v3943_v54  ;;  %v727_v60 = vadd.f32 %v5857_v55, %v3945_v57  ;;  %v5860_v10 = vld [vmem:[#allocation39_spill] sm:$0xff] }
 0x1c9   : > { %v4269_v51 = vpop.f32.mrf.mxu0  ;;  %v4271_v15 = vpop.f32.mrf.mxu1  ;;  %1484 = vmatpush2.msra.mxu0 %v1363_v6  ;;  %1555 = vmatpush2.msra.mxu1 %v1365_v44  ;;  %v1340_v61 = vmax.f32 %v544_v19, 0.0  ;;  %v1342_v4 = vmax.f32 %v737_v42, 0.0  ;;  %v532_v20 = vadd.f32 %v5858_v14, %v3939_v50  ;;  %v725_v2 = vadd.f32 %v5859_v0, %v3941_v53  ;;  %v5861_v44 = vld [vmem:[#allocation40_spill] sm:$0xff] }
 0x1ca   : > { %1485 = vmatprep.subr.mxu0 %v1356_v3  ;;  %1556 = vmatprep.subr.mxu1 %v1358_v47  ;;  %v1339_v24 = vmax.f32 %v542_v26, 0.0  ;;  %v1341_v5 = vmax.f32 %v735_v12, 0.0  ;;  %v528_v6 = vadd.f32 %v5860_v10, %v3943_v54  ;;  %v721_v19 = vadd.f32 %v5861_v44, %v3945_v57  ;;  %v5862_v47 = vld [vmem:[#allocation37_spill] sm:$0xff] }
 0x1cb   : > { %v4281_v37 = vpop.f32.mrf.mxu0  ;;  %v4283_v63 = vpop.f32.mrf.mxu1  ;;  %1486 = vmatpush2.msra.mxu0 %v1355_v32  ;;  %1557 = vmatpush2.msra.mxu1 %v1357_v33  ;;  %v1332_v42 = vmax.f32 %v538_v34, 0.0  ;;  %v1334_v3 = vmax.f32 %v731_v27, 0.0  ;;  %v526_v26 = vadd.f32 %v5862_v47, %v3939_v50  ;;  %v719_v12 = vadd.f32 %v5863_v22, %v3941_v53  ;;  %v5865_v27 = vld [vmem:[#allocation36_spill] sm:$0xff] }
 0x1cc   : > { %1487 = vmatprep.subr.mxu0 %v1348_v38  ;;  %1558 = vmatprep.subr.mxu1 %v1350_v43  ;;  %v1331_v32 = vmax.f32 %v536_v35, 0.0  ;;  %v1333_v33 = vmax.f32 %v729_v62, 0.0  ;;  %v5864_v38 = vld [vmem:[#allocation35_spill] sm:$0xff]  ;;  %v717_v43 = vadd.f32 %v5865_v27, %v3945_v57  ;;  %v1324_v39 = vmax.f32 %v534_v13, 0.0  ;;  %v5867_v62 = vld [vmem:[#allocation34_spill] sm:$0xff] }
 0x1cd   : > { %v4293_v31 = vpop.f32.mrf.mxu0  ;;  %v4295_v36 = vpop.f32.mrf.mxu1  ;;  %1488 = vmatpush2.msra.mxu0 %v1347_v40  ;;  %1559 = vmatpush2.msra.mxu1 %v1349_v9  ;;  %v524_v34 = vadd.f32 %v5864_v38, %v3943_v54  ;;  %v1326_v58 = vmax.f32 %v727_v60, 0.0  ;;  %v5866_v40 = vld [vmem:[#allocation33_spill] sm:$0xff]  ;;  %v715_v9 = vadd.f32 %v5867_v62, %v3941_v53  ;;  %v1323_v29 = vmax.f32 %v532_v20, 0.0 }
 0x1ce   : > { %1489 = vmatprep.subr.mxu0 %v1340_v61  ;;  %1560 = vmatprep.subr.mxu1 %v1342_v4  ;;  %v522_v35 = vadd.f32 %v5866_v40, %v3939_v50  ;;  %v1325_v55 = vmax.f32 %v725_v2, 0.0  ;;  %v1316_v14 = vmax.f32 %v528_v6, 0.0  ;;  %v1318_v0 = vmax.f32 %v721_v19, 0.0  ;;  %v5868_v19 = vld [vmem:[#allocation28_spill] sm:$0xff] }
 0x1cf   : > { %v4305_v59 = vpop.f32.mrf.mxu0  ;;  %v4307_v7 = vpop.f32.mrf.mxu1  ;;  %1490 = vmatpush2.msra.mxu0 %v1339_v24  ;;  %1561 = vmatpush2.msra.mxu1 %v1341_v5  ;;  %v1315_v13 = vmax.f32 %v526_v26, 0.0  ;;  %v1317_v60 = vmax.f32 %v719_v12, 0.0  ;;  %v1308_v20 = vmax.f32 %v524_v34, 0.0  ;;  %v1310_v2 = vmax.f32 %v717_v43, 0.0 }
 0x1d0   : > { %1491 = vmatprep.subr.mxu0 %v1332_v42  ;;  %1562 = vmatprep.subr.mxu1 %v1334_v3  ;;  %v1307_v10 = vmax.f32 %v522_v35, 0.0  ;;  %v1309_v44 = vmax.f32 %v715_v9, 0.0  ;;  %v1790_v3 = vcombine.high %v5868_v19, %v5868_v19  ;;  %v5869_v22 = vmov 1.0  }
 0x1d1   : > { %v4317_v61 = vpop.f32.mrf.mxu0  ;;  %v4319_v4 = vpop.f32.mrf.mxu1  ;;  %1492 = vmatpush2.msra.mxu0 %v1331_v32  ;;  %1563 = vmatpush2.msra.mxu1 %v1333_v33 }
 0x1d2   : > { %1493 = vmatprep.subr.mxu0 %v1324_v39  ;;  %1564 = vmatprep.subr.mxu1 %v1326_v58 }
 0x1d3   : > { %v4321_v24 = vpop.f32.mrf.mxu0  ;;  %v4323_v5 = vpop.f32.mrf.mxu1  ;;  %1494 = vmatpush2.msra.mxu0 %v1323_v29  ;;  %1565 = vmatpush2.msra.mxu1 %v1325_v55 }
 0x1d4   : > { %1495 = vmatprep.subr.mxu0 %v1316_v14  ;;  %1566 = vmatprep.subr.mxu1 %v1318_v0 }
 0x1d5   : > { %v4325_v42 = vpop.f32.mrf.mxu0  ;;  %v4327_v6 = vpop.f32.mrf.mxu1  ;;  %1496 = vmatpush2.msra.mxu0 %v1315_v13  ;;  %1567 = vmatpush2.msra.mxu1 %v1317_v60 }
 0x1d6   : > { %1497 = vmatprep.subr.mxu0 %v1308_v20  ;;  %1568 = vmatprep.subr.mxu1 %v1310_v2  ;;  %v5870_v2 = vld [vmem:[#allocation3_spill] sm:$0xff] }
 0x1d7   : > { %v4331_v47 = vpop.f32.mrf.mxu0  ;;  %v4333_v26 = vpop.f32.mrf.mxu1  ;;  %1498 = vmatpush2.msra.mxu0 %v1307_v10  ;;  %1569 = vmatpush2.msra.mxu1 %v1309_v44  ;;  %v229_v10 = vsub.s32 4, %v5870_v2  ;;  %v237_v44 = vsub.s32 6, %v5870_v2  ;;  %v233_v57 = vsub.s32 5, %v5870_v2  ;;  %v241_v54 = vsub.s32 7, %v5870_v2 }
 0x1d8   : > { %1500 = vmatmul.mubr.f32.vlgmr.msra.gmra.mxu0 %v5869_v22  ;;  %1571 = vmatmul.mubr.f32.vlgmr.msra.gmra.mxu1 %v5869_v22 }
 0x1d9   : > { %v4337_v12 = vpop.f32.mrf.mxu0  ;;  %v4339_v32 = vpop.f32.mrf.mxu1  ;;  %1809 = vxpose.xlu1.c.b16.start.end [1/1] (short) %v1790_v3, 128  ;;  %1641 = vmatprep.mubr.f32.mxu0 %v5869_v22 }
 0x1da   : > { %1712 = vmatprep.mubr.f32.mxu1 %v5869_v22  ;;  %v3501_v22 = vld [vmem:[%s5730_s2] sm:$0xff] }
 0x1db   : > { %v4343_v33 = vpop.f32.mrf.mxu0  ;;  %v4345_v38 = vpop.f32.mrf.mxu1  ;;  %v4366_v49 = vrot.slane %v3501_v22, %v229_v10  ;;  %v4368_v52 = vrot.slane %v3501_v22, %v237_v44  ;;  %v4370_v41 = vrot.slane %v3501_v22, %v233_v57  ;;  %v4372_v18 = vrot.slane %v3501_v22, %v241_v54 }
 0x1dd   : > { %v4347_v34 = vpop.f32.mrf.mxu0  ;;  %v4349_v27 = vpop.f32.mrf.mxu1  ;;  %5871 = vst [vmem:[#allocation49_spill] sm:$0xff] %v4366_v49  ;;  %5872 = vst [vmem:[#allocation47_spill] sm:$0xff] %v4368_v52 }
 0x1de   : > { %5873 = vst [vmem:[#allocation48_spill] sm:$0xff] %v4370_v41  ;;  %5874 = vst [vmem:[#allocation45_spill] sm:$0xff] %v4372_v18 }
 0x1df   : > { %v4351_v43 = vpop.f32.mrf.mxu0  ;;  %v4353_v39 = vpop.f32.mrf.mxu1 }
 0x1e1   : > { %v4355_v58 = vpop.f32.mrf.mxu0  ;;  %v4357_v40 = vpop.f32.mrf.mxu1 }
 0x1e3   : > { %v883_v35 = vpop.f32.mrf.mxu0  ;;  %v1076_v62 = vpop.f32.mrf.mxu1 }
 0x1e5   : > { %v887_v9 = vpop.f32.mrf.mxu0  ;;  %v1080_v29 = vpop.f32.mrf.mxu1 }
 0x1e7   : > { %v889_v55 = vpop.f32.mrf.mxu0  ;;  %v1082_v14 = vpop.f32.mrf.mxu1 }
 0x1e9   : > { %v891_v0 = vpop.f32.mrf.mxu0  ;;  %v1084_v13 = vpop.f32.mrf.mxu1 }
 0x1eb   : > { %v893_v60 = vpop.f32.mrf.mxu0  ;;  %v1086_v20 = vpop.f32.mrf.mxu1 }
 0x1ed   : > { %v897_v19 = vpop.f32.mrf.mxu0  ;;  %v1090_v3 = vpop.f32.mrf.mxu1 }
 0x1ee   : > { %v898_v17 = vadd.f32 %v897_v19, %v4366_v49  ;;  %v1091_v57 = vadd.f32 %v1090_v3, %v4368_v52  ;;  %v890_v3 = vadd.f32 %v889_v55, %v4370_v41  ;;  %v884_v55 = vadd.f32 %v883_v35, %v4370_v41 }
 0x1ef   : > { %v899_v53 = vpop.f32.mrf.mxu0  ;;  %v1092_v50 = vpop.f32.mrf.mxu1  ;;  %v880_v35 = vadd.f32 %v4351_v43, %v4370_v41  ;;  %v874_v43 = vadd.f32 %v4343_v33, %v4370_v41  ;;  %v870_v33 = vadd.f32 %v4331_v47, %v4370_v41  ;;  %v864_v47 = vadd.f32 %v4321_v24, %v4370_v41 }
 0x1f0   : > { %v900_v16 = vadd.f32 %v899_v53, %v4370_v41  ;;  %v1093_v21 = vadd.f32 %v1092_v50, %v4372_v18  ;;  %v892_v50 = vadd.f32 %v891_v0, %v4366_v49  ;;  %v1081_v0 = vadd.f32 %v1080_v29, %v4368_v52 }
 0x1f1   : > { %v901_v1 = vpop.f32.mrf.mxu0  ;;  %v1094_v28 = vpop.f32.mrf.mxu1  ;;  %v860_v24 = vadd.f32 %v4305_v59, %v4370_v41  ;;  %v854_v59 = vadd.f32 %v4281_v37, %v4370_v41  ;;  %v850_v37 = vadd.f32 %v4257_v56, %v4370_v41  ;;  %v5893_v56 = vld [vmem:[#allocation12_spill] sm:$0xff] }
 0x1f2   : > { %v902_v46 = vadd.f32 %v901_v1, %v4366_v49  ;;  %v1095_v2 = vadd.f32 %v1094_v28, %v4368_v52  ;;  %v894_v28 = vadd.f32 %v893_v60, %v4370_v41  ;;  %v1087_v1 = vadd.f32 %v1086_v20, %v4372_v18 }
 0x1f3   : > { %v903_v11 = vpop.f32.mrf.mxu0  ;;  %v1096_v48 = vpop.f32.mrf.mxu1  ;;  %v1298_v60 = vmax.f32 %v1093_v21, 0.0  ;;  %v888_v20 = vadd.f32 %v887_v9, %v4366_v49  ;;  %v1287_v9 = vmax.f32 %v892_v50, 0.0 }
 0x1f4   : > { %v904_v10 = vadd.f32 %v903_v11, %v4370_v41  ;;  %v1097_v44 = vadd.f32 %v1096_v48, %v4372_v18  ;;  %v1085_v11 = vadd.f32 %v1084_v13, %v4368_v52  ;;  %v1303_v30 = vmax.f32 %v902_v46, 0.0 }
 0x1f5   : > { %v4382_v54 = vpop.f32.mrf.mxu0  ;;  %v4384_v22 = vpop.f32.mrf.mxu1  ;;  %v1305_v48 = vmax.f32 %v1095_v2, 0.0  ;;  %v1297_v13 = vmax.f32 %v1091_v57, 0.0  ;;  %v1290_v21 = vmax.f32 %v1087_v1, 0.0  ;;  %v1280_v57 = vmax.f32 %v890_v3, 0.0 }
 0x1f6   : > { %5875 = vst [vmem:[#allocation46_spill] sm:$0xff] %v4382_v54  ;;  %5876 = vst [vmem:[#allocation43_spill] sm:$0xff] %v4384_v22  ;;  %v1304_v45 = vmax.f32 %v904_v10, 0.0  ;;  %v1306_v53 = vmax.f32 %v1097_v44, 0.0  ;;  %v1083_v22 = vadd.f32 %v1082_v14, %v4372_v18  ;;  %v1296_v54 = vmax.f32 %v900_v16, 0.0 }
 0x1f7   : > { %v4390_v8 = vpop.f32.mrf.mxu0  ;;  %v4392_v19 = vpop.f32.mrf.mxu1  ;;  %v1295_v10 = vmax.f32 %v898_v17, 0.0  ;;  %v1077_v14 = vadd.f32 %v1076_v62, %v4372_v18  ;;  %v1288_v16 = vmax.f32 %v894_v28, 0.0  ;;  %v1075_v17 = vadd.f32 %v4357_v40, %v4368_v52 }
 0x1f8   : > { %5877 = vst [vmem:[#allocation44_spill] sm:$0xff] %v4390_v8  ;;  %5878 = vst [vmem:[#allocation41_spill] sm:$0xff] %v4392_v19  ;;  %1577 = vmatprep.subr.mxu0 %v1304_v45  ;;  %1648 = vmatprep.subr.mxu1 %v1306_v53  ;;  %v882_v45 = vadd.f32 %v4355_v58, %v4366_v49  ;;  %v1289_v29 = vmax.f32 %v1085_v11, 0.0  ;;  %v1073_v62 = vadd.f32 %v4353_v39, %v4372_v18 }
 0x1f9   : > { %v4398_v46 = vpop.f32.mrf.mxu0  ;;  %v4400_v2 = vpop.f32.mrf.mxu1  ;;  %1578 = vmatpush1.msra.mxu0 %v1303_v30  ;;  %1649 = vmatpush1.msra.mxu1 %v1305_v48  ;;  %v878_v58 = vadd.f32 %v4347_v34, %v4366_v49  ;;  %v1071_v40 = vadd.f32 %v4349_v27, %v4368_v52  ;;  %v1279_v28 = vmax.f32 %v888_v20, 0.0  ;;  %v1281_v1 = vmax.f32 %v1081_v0, 0.0 }
 0x1fa   : > { %5879 = vst [vmem:[#allocation42_spill] sm:$0xff] %v4398_v46  ;;  %5880 = vst [vmem:[#allocation39_spill] sm:$0xff] %v4400_v2  ;;  %1579 = vmatprep.subr.mxu0 %v1296_v54  ;;  %1650 = vmatprep.subr.mxu1 %v1298_v60  ;;  %v1282_v54 = vmax.f32 %v1083_v22, 0.0  ;;  %v1067_v39 = vadd.f32 %v4345_v38, %v4372_v18  ;;  %v1272_v22 = vmax.f32 %v884_v55, 0.0  ;;  %v1274_v11 = vmax.f32 %v1077_v14, 0.0 }
 0x1fb   : > { %v4408_v44 = vpop.f32.mrf.mxu0  ;;  %v4410_v30 = vpop.f32.mrf.mxu1  ;;  %1580 = vmatpush1.msra.mxu0 %v1295_v10  ;;  %1651 = vmatpush1.msra.mxu1 %v1297_v13  ;;  %v872_v34 = vadd.f32 %v4337_v12, %v4366_v49  ;;  %v1065_v27 = vadd.f32 %v4339_v32, %v4368_v52  ;;  %v1271_v48 = vmax.f32 %v882_v45, 0.0  ;;  %v1273_v3 = vmax.f32 %v1075_v17, 0.0 }
 0x1fc   : > { %5881 = vst [vmem:[#allocation40_spill] sm:$0xff] %v4408_v44  ;;  %5882 = vst [vmem:[#allocation37_spill] sm:$0xff] %v4410_v30  ;;  %1581 = vmatprep.subr.mxu0 %v1288_v16  ;;  %1652 = vmatprep.subr.mxu1 %v1290_v21  ;;  %v1063_v38 = vadd.f32 %v4333_v26, %v4372_v18  ;;  %v1264_v0 = vmax.f32 %v880_v35, 0.0  ;;  %v1266_v10 = vmax.f32 %v1073_v62, 0.0  ;;  %v1263_v13 = vmax.f32 %v878_v58, 0.0 }
 0x1fd   : > { %v4420_v53 = vpop.f32.mrf.mxu0  ;;  %v4422_v50 = vpop.f32.mrf.mxu1  ;;  %1582 = vmatpush1.msra.mxu0 %v1287_v9  ;;  %1653 = vmatpush1.msra.mxu1 %v1289_v29  ;;  %v868_v12 = vadd.f32 %v4325_v42, %v4366_v49  ;;  %v1061_v32 = vadd.f32 %v4327_v6, %v4368_v52  ;;  %v1265_v55 = vmax.f32 %v1071_v40, 0.0  ;;  %v1057_v26 = vadd.f32 %v4323_v5, %v4372_v18 }
 0x1fe   : > { %5883 = vst [vmem:[#allocation38_spill] sm:$0xff] %v4420_v53  ;;  %5884 = vst [vmem:[#allocation35_spill] sm:$0xff] %v4422_v50  ;;  %1583 = vmatprep.subr.mxu0 %v1280_v57  ;;  %1654 = vmatprep.subr.mxu1 %v1282_v54  ;;  %v1256_v21 = vmax.f32 %v874_v43, 0.0  ;;  %v1258_v45 = vmax.f32 %v1067_v39, 0.0  ;;  %v862_v42 = vadd.f32 %v4317_v61, %v4366_v49  ;;  %v1255_v17 = vmax.f32 %v872_v34, 0.0 }
 0x1ff   : > { %v4432_v60 = vpop.f32.mrf.mxu0  ;;  %v4434_v20 = vpop.f32.mrf.mxu1  ;;  %1584 = vmatpush1.msra.mxu0 %v1279_v28  ;;  %1655 = vmatpush1.msra.mxu1 %v1281_v1  ;;  %v1055_v6 = vadd.f32 %v4319_v4, %v4368_v52  ;;  %v1257_v9 = vmax.f32 %v1065_v27, 0.0  ;;  %v1053_v5 = vadd.f32 %v4307_v7, %v4372_v18  ;;  %v1248_v62 = vmax.f32 %v870_v33, 0.0 }
 0x200   : > { %5885 = vst [vmem:[#allocation36_spill] sm:$0xff] %v4432_v60  ;;  %5886 = vst [vmem:[#allocation33_spill] sm:$0xff] %v4434_v20  ;;  %1585 = vmatprep.subr.mxu0 %v1272_v22  ;;  %1656 = vmatprep.subr.mxu1 %v1274_v11  ;;  %v1250_v57 = vmax.f32 %v1063_v38, 0.0  ;;  %v858_v61 = vadd.f32 %v4293_v31, %v4366_v49  ;;  %v1051_v4 = vadd.f32 %v4295_v36, %v4368_v52 }
 0x201   : > { %v4444_v14 = vpop.f32.mrf.mxu0  ;;  %v4446_v16 = vpop.f32.mrf.mxu1  ;;  %1586 = vmatpush1.msra.mxu0 %v1271_v48  ;;  %1657 = vmatpush1.msra.mxu1 %v1273_v3  ;;  %v1247_v54 = vmax.f32 %v868_v12, 0.0  ;;  %v1249_v58 = vmax.f32 %v1061_v32, 0.0  ;;  %v1047_v7 = vadd.f32 %v4283_v63, %v4372_v18  ;;  %v1240_v1 = vmax.f32 %v864_v47, 0.0  ;;  %v5894_v12 = vld [vmem:[#allocation13_spill] sm:$0xff] }
 0x202   : > { %5887 = vst [vmem:[#allocation34_spill] sm:$0xff] %v4444_v14  ;;  %5888 = vst [vmem:[#allocation28_spill] sm:$0xff] %v4446_v16  ;;  %1587 = vmatprep.subr.mxu0 %v1264_v0  ;;  %1658 = vmatprep.subr.mxu1 %v1266_v10  ;;  %v1242_v43 = vmax.f32 %v1057_v26, 0.0  ;;  %v852_v31 = vadd.f32 %v4269_v51, %v4366_v49  ;;  %v1045_v36 = vadd.f32 %v4271_v15, %v4368_v52  ;;  %v5892_v15 = vld [vmem:[#allocation50_spill] sm:$0xff]  ;;  %v5896_v26 = vld [vmem:[#allocation15_spill] sm:$0xff] }
 0x203   : > { %v4456_v29 = vpop.f32.mrf.mxu0  ;;  %v4458_v35 = vpop.f32.mrf.mxu1  ;;  %1588 = vmatpush1.msra.mxu0 %v1263_v13  ;;  %1659 = vmatpush1.msra.mxu1 %v1265_v55  ;;  %v1239_v39 = vmax.f32 %v862_v42, 0.0  ;;  %v1241_v22 = vmax.f32 %v1055_v6, 0.0  ;;  %v1043_v63 = vadd.f32 %v4259_v25, %v4372_v18  ;;  %v1232_v27 = vmax.f32 %v860_v24, 0.0 }
 0x204   : > { %5889 = vst [vmem:[#allocation51_spill] sm:$0xff] %v4456_v29  ;;  %5890 = vst [vmem:[#allocation52_spill] sm:$0xff] %v4458_v35  ;;  %1589 = vmatprep.subr.mxu0 %v1256_v21  ;;  %1660 = vmatprep.subr.mxu1 %v1258_v45  ;;  %v1234_v48 = vmax.f32 %v1053_v5, 0.0  ;;  %v848_v51 = vadd.f32 %v4245_v23, %v4366_v49  ;;  %v1041_v3 = vadd.f32 %v5892_v15, %v4368_v52  ;;  %v5895_v23 = vld [vmem:[#allocation14_spill] sm:$0xff]  ;;  %v5898_v5 = vld [vmem:[#allocation17_spill] sm:$0xff] }
 0x205   : > { %v4468_v40 = vpop.f32.mrf.mxu0  ;;  %v4470_v28 = vpop.f32.mrf.mxu1  ;;  %1590 = vmatpush1.msra.mxu0 %v1255_v17  ;;  %1661 = vmatpush1.msra.mxu1 %v1257_v9  ;;  %v1231_v33 = vmax.f32 %v858_v61, 0.0  ;;  %v1233_v38 = vmax.f32 %v1051_v4, 0.0  ;;  %v844_v25 = vadd.f32 %v5893_v56, %v4370_v41  ;;  %v1037_v32 = vadd.f32 %v5894_v12, %v4372_v18  ;;  %v5897_v9 = vld [vmem:[#allocation16_spill] sm:$0xff]  ;;  %v5899_v4 = vld [vmem:[#allocation18_spill] sm:$0xff]  ;;  %v5904_v15 = vld [vmem:[#allocation23_spill] sm:$0xff] }
 0x206   : > { %5891 = vst [vmem:[#allocation53_spill] sm:$0xff] %v4470_v28  ;;  %1591 = vmatprep.subr.mxu0 %v1248_v62  ;;  %1662 = vmatprep.subr.mxu1 %v1250_v57  ;;  %v1224_v13 = vmax.f32 %v854_v59, 0.0  ;;  %v1226_v55 = vmax.f32 %v1047_v7, 0.0  ;;  %v842_v47 = vadd.f32 %v5895_v23, %v4366_v49  ;;  %v1035_v21 = vadd.f32 %v5896_v26, %v4368_v52 }
 0x207   : > { %v4480_v11 = vpop.f32.mrf.mxu0  ;;  %v4482_v34 = vpop.f32.mrf.mxu1  ;;  %1592 = vmatpush1.msra.mxu0 %v1247_v54  ;;  %1663 = vmatpush1.msra.mxu1 %v1249_v58  ;;  %v1223_v45 = vmax.f32 %v852_v31, 0.0  ;;  %v1225_v42 = vmax.f32 %v1045_v36, 0.0  ;;  %v840_v24 = vadd.f32 %v5897_v9, %v4370_v41  ;;  %v1033_v62 = vadd.f32 %v5898_v5, %v4372_v18  ;;  %v5900_v58 = vld [vmem:[#allocation19_spill] sm:$0xff]  ;;  %v5901_v36 = vld [vmem:[#allocation20_spill] sm:$0xff] }
 0x208   : > { %1593 = vmatprep.subr.mxu0 %v1240_v1  ;;  %1664 = vmatprep.subr.mxu1 %v1242_v43  ;;  %v1216_v57 = vmax.f32 %v850_v37, 0.0  ;;  %v1218_v61 = vmax.f32 %v1043_v63, 0.0  ;;  %v838_v54 = vadd.f32 %v5899_v4, %v4366_v49  ;;  %v1031_v59 = vadd.f32 %v5900_v58, %v4368_v52 }
 0x209   : > { %v4492_v0 = vpop.f32.mrf.mxu0  ;;  %v4494_v10 = vpop.f32.mrf.mxu1  ;;  %1594 = vmatpush1.msra.mxu0 %v1239_v39  ;;  %1665 = vmatpush1.msra.mxu1 %v1241_v22  ;;  %v1215_v7 = vmax.f32 %v848_v51, 0.0  ;;  %v1217_v1 = vmax.f32 %v1041_v3, 0.0  ;;  %v834_v39 = vadd.f32 %v5901_v36, %v4370_v41  ;;  %v5902_v22 = vld [vmem:[#allocation21_spill] sm:$0xff]  ;;  %v1208_v63 = vmax.f32 %v844_v25, 0.0 }
 0x20a   : > { %1595 = vmatprep.subr.mxu0 %v1232_v27  ;;  %1666 = vmatprep.subr.mxu1 %v1234_v48  ;;  %v1027_v37 = vadd.f32 %v5902_v22, %v4372_v18  ;;  %v1210_v27 = vmax.f32 %v1037_v32, 0.0  ;;  %v5903_v48 = vld [vmem:[#allocation22_spill] sm:$0xff]  ;;  %v1025_v3 = vadd.f32 %v5904_v15, %v4368_v52  ;;  %v5906_v32 = vld [vmem:[#allocation25_spill] sm:$0xff]  ;;  %v1200_v23 = vmax.f32 %v840_v24, 0.0 }
 0x20b   : > { %v4504_v6 = vpop.f32.mrf.mxu0  ;;  %v4506_v17 = vpop.f32.mrf.mxu1  ;;  %1596 = vmatpush1.msra.mxu0 %v1231_v33  ;;  %1667 = vmatpush1.msra.mxu1 %v1233_v38  ;;  %v832_v51 = vadd.f32 %v5903_v48, %v4366_v49  ;;  %v1207_v33 = vmax.f32 %v842_v47, 0.0  ;;  %v1209_v38 = vmax.f32 %v1035_v21, 0.0  ;;  %v1202_v26 = vmax.f32 %v1033_v62, 0.0  ;;  %v5908_v21 = vld [vmem:[#allocation27_spill] sm:$0xff] }
 0x20c   : > { %1597 = vmatprep.subr.mxu0 %v1224_v13  ;;  %1668 = vmatprep.subr.mxu1 %v1226_v55  ;;  %v5905_v13 = vld [vmem:[#allocation24_spill] sm:$0xff]  ;;  %v1023_v55 = vadd.f32 %v5906_v32, %v4372_v18  ;;  %v1199_v9 = vmax.f32 %v838_v54, 0.0  ;;  %v1201_v5 = vmax.f32 %v1031_v59, 0.0  ;;  %v1192_v4 = vmax.f32 %v834_v39, 0.0 }
 0x20d   : > { %v4516_v43 = vpop.f32.mrf.mxu0  ;;  %v4518_v31 = vpop.f32.mrf.mxu1  ;;  %1598 = vmatpush1.msra.mxu0 %v1223_v45  ;;  %1669 = vmatpush1.msra.mxu1 %v1225_v42  ;;  %v830_v25 = vadd.f32 %v5905_v13, %v4370_v41  ;;  %v5907_v45 = vld [vmem:[#allocation26_spill] sm:$0xff]  ;;  %v1021_v42 = vadd.f32 %v5908_v21, %v4368_v52  ;;  %v1194_v58 = vmax.f32 %v1027_v37, 0.0  ;;  %v1191_v24 = vmax.f32 %v832_v51, 0.0 }
 0x20e   : > { %1599 = vmatprep.subr.mxu0 %v1216_v57  ;;  %1670 = vmatprep.subr.mxu1 %v1218_v61  ;;  %v828_v47 = vadd.f32 %v5907_v45, %v4366_v49  ;;  %v1193_v62 = vmax.f32 %v1025_v3, 0.0  ;;  %v1186_v59 = vmax.f32 %v1023_v55, 0.0 }
 0x20f   : > { %v4528_v56 = vpop.f32.mrf.mxu0  ;;  %v4530_v12 = vpop.f32.mrf.mxu1  ;;  %1600 = vmatpush1.msra.mxu0 %v1215_v7  ;;  %1671 = vmatpush1.msra.mxu1 %v1217_v1  ;;  %v1184_v54 = vmax.f32 %v830_v25, 0.0  ;;  %v1185_v22 = vmax.f32 %v1021_v42, 0.0 }
 0x210   : > { %1601 = vmatprep.subr.mxu0 %v1208_v63  ;;  %1672 = vmatprep.subr.mxu1 %v1210_v27  ;;  %v1183_v36 = vmax.f32 %v828_v47, 0.0 }
 0x211   : > { %v4540_v57 = vpop.f32.mrf.mxu0  ;;  %v4542_v61 = vpop.f32.mrf.mxu1  ;;  %1602 = vmatpush1.msra.mxu0 %v1207_v33  ;;  %1673 = vmatpush1.msra.mxu1 %v1209_v38 }
 0x212   : > { %1603 = vmatprep.subr.mxu0 %v1200_v23  ;;  %1674 = vmatprep.subr.mxu1 %v1202_v26 }
 0x213   : > { %v4544_v7 = vpop.f32.mrf.mxu0  ;;  %v4546_v1 = vpop.f32.mrf.mxu1  ;;  %1604 = vmatpush1.msra.mxu0 %v1199_v9  ;;  %1675 = vmatpush1.msra.mxu1 %v1201_v5 }
 0x214   : > { %1605 = vmatprep.subr.mxu0 %v1192_v4  ;;  %1676 = vmatprep.subr.mxu1 %v1194_v58 }
 0x215   : > { %v4548_v63 = vpop.f32.mrf.mxu0  ;;  %v4550_v39 = vpop.f32.mrf.mxu1  ;;  %1606 = vmatpush1.msra.mxu0 %v1191_v24  ;;  %1677 = vmatpush1.msra.mxu1 %v1193_v62 }
 0x216   : > { %1607 = vmatprep.subr.mxu0 %v1184_v54  ;;  %1678 = vmatprep.subr.mxu1 %v1186_v59 }
 0x217   : > { %v4552_v37 = vpop.f32.mrf.mxu0  ;;  %v4554_v27 = vpop.f32.mrf.mxu1  ;;  %1608 = vmatpush1.msra.mxu0 %v1183_v36  ;;  %1679 = vmatpush1.msra.mxu1 %v1185_v22 }
 0x219   : > { %v4556_v48 = vpop.f32.mrf.mxu0  ;;  %v4558_v51 = vpop.f32.mrf.mxu1 }
 0x21b   : > { %v4560_v15 = vpop.f32.mrf.mxu0  ;;  %v4562_v3 = vpop.f32.mrf.mxu1 }
 0x21d   : > { %v4564_v33 = vpop.f32.mrf.mxu0  ;;  %v4566_v38 = vpop.f32.mrf.mxu1 }
 0x21f   : > { %v959_v13 = vpop.f32.mrf.mxu0  ;;  %v1152_v25 = vpop.f32.mrf.mxu1 }
 0x221   : > { %v961_v32 = vpop.f32.mrf.mxu0  ;;  %v1154_v55 = vpop.f32.mrf.mxu1 }
 0x223   : > { %v963_v23 = vpop.f32.mrf.mxu0  ;;  %v1156_v26 = vpop.f32.mrf.mxu1 }
 0x225   : > { %v967_v45 = vpop.f32.mrf.mxu0  ;;  %v1160_v47 = vpop.f32.mrf.mxu1 }
 0x227   : > { %v969_v21 = vpop.f32.mrf.mxu0  ;;  %v1162_v42 = vpop.f32.mrf.mxu1 }
 0x229   : > { %v971_v9 = vpop.f32.mrf.mxu0  ;;  %v1164_v5 = vpop.f32.mrf.mxu1 }
 0x22a   : > { %v972_v35 = vadd.f32 %v971_v9, %v4366_v49  ;;  %v964_v9 = vadd.f32 %v963_v23, %v4370_v41 }
 0x22b   : > { %v973_v4 = vpop.f32.mrf.mxu0  ;;  %v1166_v58 = vpop.f32.mrf.mxu1 }
 0x22c   : > { %v974_v16 = vadd.f32 %v973_v4, %v4370_v41  ;;  %v968_v4 = vadd.f32 %v967_v45, %v4366_v49 }
 0x22d   : > { %v977_v24 = vpop.f32.mrf.mxu0  ;;  %v1170_v62 = vpop.f32.mrf.mxu1 }
 0x22e   : > { %v978_v20 = vadd.f32 %v977_v24, %v4366_v49  ;;  %v1171_v60 = vadd.f32 %v1170_v62, %v4368_v52 }
 0x22f   : > { %v979_v54 = vpop.f32.mrf.mxu0  ;;  %v1172_v59 = vpop.f32.mrf.mxu1 }
 0x230   : > { %v980_v30 = vadd.f32 %v979_v54, %v4370_v41  ;;  %v1173_v44 = vadd.f32 %v1172_v59, %v4372_v18  ;;  %v1165_v54 = vadd.f32 %v1164_v5, %v4368_v52 }
 0x231   : > { %v981_v36 = vpop.f32.mrf.mxu0  ;;  %v1174_v22 = vpop.f32.mrf.mxu1 }
 0x232   : > { %v982_v19 = vadd.f32 %v981_v36, %v4366_v49  ;;  %v1175_v8 = vadd.f32 %v1174_v22, %v4368_v52  ;;  %v1167_v36 = vadd.f32 %v1166_v58, %v4372_v18  ;;  %v1424_v28 = vmax.f32 %v980_v30, 0.0 }
 0x233   : > { %v983_v2 = vpop.f32.mrf.mxu0  ;;  %v1176_v46 = vpop.f32.mrf.mxu1  ;;  %v1426_v24 = vmax.f32 %v1173_v44, 0.0  ;;  %v1161_v58 = vadd.f32 %v1160_v47, %v4368_v52  ;;  %v962_v44 = vadd.f32 %v961_v32, %v4366_v49  ;;  %v1155_v30 = vadd.f32 %v1154_v55, %v4368_v52 }
 0x234   : > { %v984_v50 = vadd.f32 %v983_v2, %v4370_v41  ;;  %v1177_v53 = vadd.f32 %v1176_v46, %v4372_v18  ;;  %v1431_v29 = vmax.f32 %v982_v19, 0.0  ;;  %v1433_v59 = vmax.f32 %v1175_v8, 0.0 }
 0x235   : > { %v970_v2 = vadd.f32 %v969_v21, %v4370_v41  ;;  %v1163_v46 = vadd.f32 %v1162_v42, %v4372_v18  ;;  %v1157_v8 = vadd.f32 %v1156_v26, %v4372_v18  ;;  %v1416_v19 = vmax.f32 %v974_v16, 0.0 }
 0x236   : > { %v1432_v14 = vmax.f32 %v984_v50, 0.0  ;;  %v1434_v22 = vmax.f32 %v1177_v53, 0.0  ;;  %v1423_v50 = vmax.f32 %v978_v20, 0.0  ;;  %v1425_v53 = vmax.f32 %v1171_v60, 0.0 }
 0x237   : > { %v1418_v21 = vmax.f32 %v1167_v36, 0.0  ;;  %v1417_v45 = vmax.f32 %v1165_v54, 0.0  ;;  %v960_v60 = vadd.f32 %v959_v13, %v4370_v41  ;;  %v1153_v20 = vadd.f32 %v1152_v25, %v4372_v18 }
 0x238   : > { %1609 = vmatprep.subr.mxu0 %v1432_v14  ;;  %1680 = vmatprep.subr.mxu1 %v1434_v22  ;;  %v1415_v14 = vmax.f32 %v972_v35, 0.0  ;;  %v1410_v23 = vmax.f32 %v1163_v46, 0.0  ;;  %v958_v16 = vadd.f32 %v4564_v33, %v4366_v49  ;;  %v1407_v32 = vmax.f32 %v968_v4, 0.0 }
 0x239   : > { %1610 = vmatpush2.msra.mxu0 %v1431_v29  ;;  %1681 = vmatpush2.msra.mxu1 %v1433_v59  ;;  %v1408_v29 = vmax.f32 %v970_v2, 0.0  ;;  %v1409_v55 = vmax.f32 %v1161_v58, 0.0  ;;  %v954_v35 = vadd.f32 %v4560_v15, %v4370_v41  ;;  %v1147_v13 = vadd.f32 %v4562_v3, %v4372_v18 }
 0x23a   : > { %1611 = vmatprep.subr.mxu0 %v1424_v28  ;;  %1682 = vmatprep.subr.mxu1 %v1426_v24  ;;  %v1151_v28 = vadd.f32 %v4566_v38, %v4368_v52  ;;  %v1400_v25 = vmax.f32 %v964_v9, 0.0  ;;  %v1402_v26 = vmax.f32 %v1157_v8, 0.0  ;;  %v952_v33 = vadd.f32 %v4556_v48, %v4366_v49 }
 0x23b   : > { %1612 = vmatpush2.msra.mxu0 %v1423_v50  ;;  %1683 = vmatpush2.msra.mxu1 %v1425_v53  ;;  %v1145_v38 = vadd.f32 %v4558_v51, %v4368_v52  ;;  %v1399_v47 = vmax.f32 %v962_v44, 0.0  ;;  %v1401_v42 = vmax.f32 %v1155_v30, 0.0  ;;  %v950_v15 = vadd.f32 %v4552_v37, %v4370_v41  ;;  %v5909_v30 = vld [vmem:[#allocation53_spill] sm:$0xff] }
 0x23c   : > { %1613 = vmatprep.subr.mxu0 %v1416_v19  ;;  %1684 = vmatprep.subr.mxu1 %v1418_v21  ;;  %v1143_v3 = vadd.f32 %v4554_v27, %v4372_v18  ;;  %v1392_v5 = vmax.f32 %v960_v60, 0.0  ;;  %v1394_v62 = vmax.f32 %v1153_v20, 0.0  ;;  %v948_v48 = vadd.f32 %v4548_v63, %v4366_v49  ;;  %v5910_v60 = vld [vmem:[#allocation51_spill] sm:$0xff]  ;;  %v5911_v20 = vld [vmem:[#allocation52_spill] sm:$0xff] }
 0x23d   : > { %1614 = vmatpush2.msra.mxu0 %v1415_v14  ;;  %1685 = vmatpush2.msra.mxu1 %v1417_v45  ;;  %v1141_v51 = vadd.f32 %v4550_v39, %v4368_v52  ;;  %v1391_v36 = vmax.f32 %v958_v16, 0.0  ;;  %v1393_v22 = vmax.f32 %v1151_v28, 0.0  ;;  %v944_v37 = vadd.f32 %v4544_v7, %v4370_v41  ;;  %v5912_v16 = vld [vmem:[#allocation34_spill] sm:$0xff]  ;;  %v5913_v28 = vld [vmem:[#allocation28_spill] sm:$0xff] }
 0x23e   : > { %1615 = vmatprep.subr.mxu0 %v1408_v29  ;;  %1686 = vmatprep.subr.mxu1 %v1410_v23  ;;  %v1137_v27 = vadd.f32 %v4546_v1, %v4372_v18  ;;  %v1384_v54 = vmax.f32 %v954_v35, 0.0  ;;  %v1386_v59 = vmax.f32 %v1147_v13, 0.0  ;;  %v942_v63 = vadd.f32 %v4540_v57, %v4366_v49  ;;  %v5914_v13 = vld [vmem:[#allocation36_spill] sm:$0xff] }
 0x23f   : > { %1616 = vmatpush2.msra.mxu0 %v1407_v32  ;;  %1687 = vmatpush2.msra.mxu1 %v1409_v55  ;;  %v1135_v39 = vadd.f32 %v4542_v61, %v4368_v52  ;;  %v1383_v2 = vmax.f32 %v952_v33, 0.0  ;;  %v1385_v46 = vmax.f32 %v1145_v38, 0.0  ;;  %v940_v7 = vadd.f32 %v4528_v56, %v4370_v41 }
 0x240   : > { %1617 = vmatprep.subr.mxu0 %v1400_v25  ;;  %1688 = vmatprep.subr.mxu1 %v1402_v26  ;;  %v1133_v1 = vadd.f32 %v4530_v12, %v4372_v18  ;;  %v1376_v24 = vmax.f32 %v950_v15, 0.0  ;;  %v1378_v4 = vmax.f32 %v1143_v3, 0.0  ;;  %v938_v57 = vadd.f32 %v4516_v43, %v4366_v49  ;;  %v5915_v26 = vld [vmem:[#allocation33_spill] sm:$0xff]  ;;  %v5917_v3 = vld [vmem:[#allocation35_spill] sm:$0xff] }
 0x241   : > { %1618 = vmatpush2.msra.mxu0 %v1399_v47  ;;  %1689 = vmatpush2.msra.mxu1 %v1401_v42  ;;  %v1131_v61 = vadd.f32 %v4518_v31, %v4368_v52  ;;  %v1375_v58 = vmax.f32 %v948_v48, 0.0  ;;  %v1377_v50 = vmax.f32 %v1141_v51, 0.0  ;;  %v934_v56 = vadd.f32 %v4504_v6, %v4370_v41  ;;  %v5916_v42 = vld [vmem:[#allocation38_spill] sm:$0xff]  ;;  %v5918_v51 = vld [vmem:[#allocation40_spill] sm:$0xff] }
 0x242   : > { %1619 = vmatprep.subr.mxu0 %v1392_v5  ;;  %1690 = vmatprep.subr.mxu1 %v1394_v62  ;;  %v1127_v12 = vadd.f32 %v4506_v17, %v4372_v18  ;;  %v1368_v53 = vmax.f32 %v944_v37, 0.0  ;;  %v1370_v9 = vmax.f32 %v1137_v27, 0.0  ;;  %v932_v43 = vadd.f32 %v4492_v0, %v4366_v49 }
 0x243   : > { %1620 = vmatpush2.msra.mxu0 %v1391_v36  ;;  %1691 = vmatpush2.msra.mxu1 %v1393_v22  ;;  %v1125_v31 = vadd.f32 %v4494_v10, %v4368_v52  ;;  %v1367_v8 = vmax.f32 %v942_v63, 0.0  ;;  %v1369_v19 = vmax.f32 %v1135_v39, 0.0  ;;  %v930_v6 = vadd.f32 %v4480_v11, %v4370_v41  ;;  %v5919_v22 = vld [vmem:[#allocation37_spill] sm:$0xff]  ;;  %v5921_v39 = vld [vmem:[#allocation39_spill] sm:$0xff] }
 0x244   : > { %1621 = vmatprep.subr.mxu0 %v1384_v54  ;;  %1692 = vmatprep.subr.mxu1 %v1386_v59  ;;  %v1123_v17 = vadd.f32 %v4482_v34, %v4372_v18  ;;  %v1360_v21 = vmax.f32 %v940_v7, 0.0  ;;  %v1362_v44 = vmax.f32 %v1133_v1, 0.0  ;;  %v928_v0 = vadd.f32 %v4468_v40, %v4366_v49  ;;  %v5920_v59 = vld [vmem:[#allocation42_spill] sm:$0xff]  ;;  %v5922_v1 = vld [vmem:[#allocation44_spill] sm:$0xff] }
 0x245   : > { %1622 = vmatpush2.msra.mxu0 %v1383_v2  ;;  %1693 = vmatpush2.msra.mxu1 %v1385_v46  ;;  %v1121_v10 = vadd.f32 %v5909_v30, %v4368_v52  ;;  %v1359_v14 = vmax.f32 %v938_v57, 0.0  ;;  %v1361_v45 = vmax.f32 %v1131_v61, 0.0  ;;  %v924_v11 = vadd.f32 %v5910_v60, %v4370_v41  ;;  %v5930_v60 = vld [vmem:[#allocation5_spill] sm:$0xff] }
 0x246   : > { %1623 = vmatprep.subr.mxu0 %v1376_v24  ;;  %1694 = vmatprep.subr.mxu1 %v1378_v4  ;;  %v1117_v34 = vadd.f32 %v5911_v20, %v4372_v18  ;;  %v1352_v29 = vmax.f32 %v934_v56, 0.0  ;;  %v1354_v23 = vmax.f32 %v1127_v12, 0.0  ;;  %v922_v40 = vadd.f32 %v5912_v16, %v4366_v49  ;;  %v5923_v4 = vld [vmem:[#allocation41_spill] sm:$0xff]  ;;  %v5925_v12 = vld [vmem:[#allocation43_spill] sm:$0xff] }
 0x247   : > { %1624 = vmatpush2.msra.mxu0 %v1375_v58  ;;  %1695 = vmatpush2.msra.mxu1 %v1377_v50  ;;  %v1115_v32 = vadd.f32 %v5913_v28, %v4368_v52  ;;  %v1351_v55 = vmax.f32 %v932_v43, 0.0  ;;  %v1353_v35 = vmax.f32 %v1125_v31, 0.0  ;;  %v920_v25 = vadd.f32 %v5914_v13, %v4370_v41  ;;  %v5924_v50 = vld [vmem:[#allocation46_spill] sm:$0xff]  ;;  %v5935_v16 = vld [vmem:[#allocation7_spill] sm:$0xff] }
 0x248   : > { %1625 = vmatprep.subr.mxu0 %v1368_v53  ;;  %1696 = vmatprep.subr.mxu1 %v1370_v9  ;;  %v1113_v33 = vadd.f32 %v5915_v26, %v4372_v18  ;;  %v1344_v38 = vmax.f32 %v930_v6, 0.0  ;;  %v1346_v47 = vmax.f32 %v1123_v17, 0.0  ;;  %v918_v15 = vadd.f32 %v5916_v42, %v4366_v49 }
 0x249   : > { %1626 = vmatpush2.msra.mxu0 %v1367_v8  ;;  %1697 = vmatpush2.msra.mxu1 %v1369_v19  ;;  %v1111_v5 = vadd.f32 %v5917_v3, %v4368_v52  ;;  %v1343_v62 = vmax.f32 %v928_v0, 0.0  ;;  %v1345_v48 = vmax.f32 %v1121_v10, 0.0  ;;  %v914_v36 = vadd.f32 %v5918_v51, %v4370_v41  ;;  %v5927_v10 = vld [vmem:[#allocation8_spill] sm:$0xff] }
 0x24a   : > { %1627 = vmatprep.subr.mxu0 %v1360_v21  ;;  %1698 = vmatprep.subr.mxu1 %v1362_v44  ;;  %v1107_v37 = vadd.f32 %v5919_v22, %v4372_v18  ;;  %v1336_v27 = vmax.f32 %v924_v11, 0.0  ;;  %v1338_v54 = vmax.f32 %v1117_v34, 0.0  ;;  %v912_v63 = vadd.f32 %v5920_v59, %v4366_v49  ;;  %v4680_v11 = vpop.trf.xlu1  ;;  %v5932_v34 = vld [vmem:[#allocation10_spill] sm:$0xff] }
 0x24b   : > { %1628 = vmatpush2.msra.mxu0 %v1359_v14  ;;  %1699 = vmatpush2.msra.mxu1 %v1361_v45  ;;  %v1105_v2 = vadd.f32 %v5921_v39, %v4368_v52  ;;  %v1335_v46 = vmax.f32 %v922_v40, 0.0  ;;  %v1337_v7 = vmax.f32 %v1115_v32, 0.0  ;;  %v910_v24 = vadd.f32 %v5922_v1, %v4370_v41  ;;  %v5928_v14 = vld [vmem:[#allocation9_spill] sm:$0xff]  ;;  %v5929_v45 = vld [vmem:[#allocation4_spill] sm:$0xff] }
 0x24c   : > { %1629 = vmatprep.subr.mxu0 %v1352_v29  ;;  %1700 = vmatprep.subr.mxu1 %v1354_v23  ;;  %v1103_v57 = vadd.f32 %v5923_v4, %v4372_v18  ;;  %v1328_v61 = vmax.f32 %v920_v25, 0.0  ;;  %v1330_v58 = vmax.f32 %v1113_v33, 0.0  ;;  %v908_v56 = vadd.f32 %v5924_v50, %v4366_v49  ;;  %v5933_v29 = vld [vmem:[#allocation11_spill] sm:$0xff]  ;;  %v5934_v23 = vld [vmem:[#allocation6_spill] sm:$0xff] }
 0x24d   : > { %1630 = vmatpush2.msra.mxu0 %v1351_v55  ;;  %1701 = vmatpush2.msra.mxu1 %v1353_v35  ;;  %v1101_v53 = vadd.f32 %v5925_v12, %v4368_v52  ;;  %v1327_v9 = vmax.f32 %v918_v15, 0.0  ;;  %v1329_v43 = vmax.f32 %v1111_v5, 0.0  ;;  %v1320_v31 = vmax.f32 %v914_v36, 0.0 }
 0x24e   : > { %1631 = vmatprep.subr.mxu0 %v1344_v38  ;;  %1702 = vmatprep.subr.mxu1 %v1346_v47  ;;  %v1322_v8 = vmax.f32 %v1107_v37, 0.0  ;;  %v1319_v19 = vmax.f32 %v912_v63, 0.0  ;;  %v1321_v6 = vmax.f32 %v1105_v2, 0.0  ;;  %v1312_v17 = vmax.f32 %v910_v24, 0.0  ;;  %v4694_v40 = vpop.trf.xlu1  ;;  %v5936_v63 = vld [vmem:[#allocation3_spill] sm:$0xff] }
 0x24f   : > { %1632 = vmatpush2.msra.mxu0 %v1343_v62  ;;  %1703 = vmatpush2.msra.mxu1 %v1345_v48  ;;  %v1314_v21 = vmax.f32 %v1103_v57, 0.0  ;;  %v1311_v44 = vmax.f32 %v908_v56, 0.0  ;;  %v1313_v0 = vmax.f32 %v1101_v53, 0.0  ;;  %v5926_v30 = vmov 1.0  }
 0x250   : > { %1633 = vmatprep.subr.mxu0 %v1336_v27  ;;  %1704 = vmatprep.subr.mxu1 %v1338_v54  ;;  %v5931_v20 = vmov 0   ;;  %v3530_v33 = vmov 0.0   ;;  %v3531_v48 = vmov 1966171168  }
 0x251   : > { %1634 = vmatpush2.msra.mxu0 %v1335_v46  ;;  %1705 = vmatpush2.msra.mxu1 %v1337_v7  ;;  %204 = vst [vmem:[#allocation2] sm:$0xff] %v3530_v33  ;;  %205 = vst [vmem:[#allocation2 + $0x8] sm:$0xff] %v3530_v33  ;;  %v1733_v51 = vunpack.c.l.s4 %v3531_v48 }
 0x252   : > { %1635 = vmatprep.subr.mxu0 %v1328_v61  ;;  %1706 = vmatprep.subr.mxu1 %v1330_v58  ;;  %v4702_v28 = vpop.trf.xlu1 }
 0x253   : > { %1636 = vmatpush2.msra.mxu0 %v1327_v9  ;;  %1707 = vmatpush2.msra.mxu1 %v1329_v43  ;;  %v1734_v37 = vunpack.c.0.s8 %v1733_v51 }
 0x254   : > { %1637 = vmatprep.subr.mxu0 %v1320_v31  ;;  %1708 = vmatprep.subr.mxu1 %v1322_v8 }
 0x255   : > { %1638 = vmatpush2.msra.mxu0 %v1319_v19  ;;  %1709 = vmatpush2.msra.mxu1 %v1321_v6  ;;  %v4857_v39 = vsub.s32 %v1734_v37, %v5936_v63 }
 0x256   : > { %1639 = vmatprep.subr.mxu0 %v1312_v17  ;;  %1710 = vmatprep.subr.mxu1 %v1314_v21  ;;  %v4710_v32 = vpop.trf.xlu1 }
 0x257   : > { %1640 = vmatpush2.msra.mxu0 %v1311_v44  ;;  %1711 = vmatpush2.msra.mxu1 %v1313_v0  ;;  %5937 = vst [vmem:[#allocation50_spill] sm:$0xff] %v4857_v39 }
 0x258   : > { %1642 = vmatmul.mubr.f32.vlgmr.msra.gmra.mxu0 %v5926_v30  ;;  %1713 = vmatmul.mubr.f32.vlgmr.msra.gmra.mxu1 %v5926_v30  ;;  %v1719_v44 = vld [vmem:[#allocation2] ss:$2 sm:$0xff] }
 0x259   : > { %1887 = vmatprep.subr.bf16.mxu0 %v5927_v10  ;;  %2080 = vmatprep.subr.bf16.mxu1 %v5928_v14 }
 0x25a   : > { %1888 = vmatpush1.bf16.msra.mxu0 %v5929_v45  ;;  %2081 = vmatpush1.bf16.msra.mxu1 %v5930_v60  ;;  %v4718_v55 = vpop.trf.xlu1 }
 0x25b   : > { %1905 = vmatprep.mubr.bf16.mxu0 %v5931_v20  ;;  %2098 = vmatprep.mubr.bf16.mxu1 %v5931_v20 }
 0x25c   : > { %2273 = vmatprep.subr.bf16.mxu0 %v5932_v34  ;;  %2466 = vmatprep.subr.bf16.mxu1 %v5933_v29 }
 0x25d   : > { %3401 = vmatmul.mubr.msk.bf16.vlgmr.msra.gmra.mxu0 %vm330_vm2, %v4680_v11  ;;  %3417 = vmatmul.mubr.msk.bf16.vlgmr.msra.gmra.mxu1 %vm330_vm2, %v4680_v11 }
 0x25e   : > { %2274 = vmatpush1.bf16.msra.mxu0 %v5934_v23  ;;  %2467 = vmatpush1.bf16.msra.mxu1 %v5935_v16  ;;  %v4726_v35 = vpop.trf.xlu1 }
 0x25f   : > { %1915 = vmatprep.mubr.bf16.mxu0 %v5931_v20  ;;  %2108 = vmatprep.mubr.bf16.mxu1 %v5931_v20 }
 0x262   : > { %v4734_v13 = vpop.trf.xlu1 }
 0x265   : > { %3402 = vmatmul.mubr.msk.bf16.gmra.mxu0 %vm330_vm2, %v4694_v40  ;;  %3418 = vmatmul.mubr.msk.bf16.gmra.mxu1 %vm330_vm2, %v4694_v40 }
 0x266   : > { %1925 = vmatprep.mubr.bf16.mxu0 %v5931_v20  ;;  %2118 = vmatprep.mubr.bf16.mxu1 %v5931_v20  ;;  %v4742_v25 = vpop.trf.xlu1 }
 0x26a   : > { %v4750_v26 = vpop.trf.xlu1 }
 0x26d   : > { %3403 = vmatmul.mubr.msk.bf16.gmra.mxu0 %vm330_vm2, %v4702_v28  ;;  %3419 = vmatmul.mubr.msk.bf16.gmra.mxu1 %vm330_vm2, %v4702_v28 }
 0x26e   : > { %1935 = vmatprep.mubr.bf16.mxu0 %v5931_v20  ;;  %2128 = vmatprep.mubr.bf16.mxu1 %v5931_v20  ;;  %v4758_v38 = vpop.trf.xlu1 }
 0x272   : > { %v4766_v47 = vpop.trf.xlu1 }
 0x275   : > { %3404 = vmatmul.mubr.msk.bf16.gmra.mxu0 %vm330_vm2, %v4710_v32  ;;  %3420 = vmatmul.mubr.msk.bf16.gmra.mxu1 %vm330_vm2, %v4710_v32 }
 0x276   : > { %1945 = vmatprep.mubr.bf16.mxu0 %v5931_v20  ;;  %2138 = vmatprep.mubr.bf16.mxu1 %v5931_v20  ;;  %v4774_v42 = vpop.trf.xlu1 }
 0x27a   : > { %v4782_v15 = vpop.trf.xlu1 }
 0x27d   : > { %3405 = vmatmul.mubr.msk.bf16.gmra.mxu0 %vm330_vm2, %v4718_v55  ;;  %3421 = vmatmul.mubr.msk.bf16.gmra.mxu1 %vm330_vm2, %v4718_v55 }
 0x27e   : > { %1955 = vmatprep.mubr.bf16.mxu0 %v5931_v20  ;;  %2148 = vmatprep.mubr.bf16.mxu1 %v5931_v20  ;;  %v4790_v3 = vpop.trf.xlu1 }
 0x282   : > { %v4798_v5 = vpop.trf.xlu1 }
 0x285   : > { %3406 = vmatmul.mubr.msk.bf16.gmra.mxu0 %vm330_vm2, %v4726_v35  ;;  %3422 = vmatmul.mubr.msk.bf16.gmra.mxu1 %vm330_vm2, %v4726_v35 }
 0x286   : > { %1965 = vmatprep.mubr.bf16.mxu0 %v5931_v20  ;;  %2158 = vmatprep.mubr.bf16.mxu1 %v5931_v20  ;;  %v4806_v62 = vpop.trf.xlu1 }
 0x28d   : > { %3407 = vmatmul.mubr.msk.bf16.gmra.mxu0 %vm330_vm2, %v4734_v13  ;;  %3423 = vmatmul.mubr.msk.bf16.gmra.mxu1 %vm330_vm2, %v4734_v13 }
 0x28e   : > { %1975 = vmatprep.mubr.bf16.mxu0 %v5931_v20  ;;  %2168 = vmatprep.mubr.bf16.mxu1 %v5931_v20 }
 0x295   : > { %3408 = vmatmul.mubr.msk.bf16.gmra.mxu0 %vm330_vm2, %v4742_v25  ;;  %3424 = vmatmul.mubr.msk.bf16.gmra.mxu1 %vm330_vm2, %v4742_v25 }
 0x296   : > { %1985 = vmatprep.mubr.bf16.mxu0 %v5931_v20  ;;  %2178 = vmatprep.mubr.bf16.mxu1 %v5931_v20 }
 0x298   : > { %v1501_v36 = vpop.f32.mrf.mxu0  ;;  %v1572_v22 = vpop.f32.mrf.mxu1 }
 0x29a   : > { %v1503_v27 = vpop.f32.mrf.mxu0  ;;  %v1574_v54 = vpop.f32.mrf.mxu1 }
 0x29b   : > { %v1728_v59 = vcombine.low %v1501_v36, %v1503_v27  ;;  %v1729_v2 = vcombine.low %v1572_v22, %v1574_v54 }
 0x29d   : > { %3409 = vmatmul.mubr.msk.bf16.gmra.mxu0 %vm330_vm2, %v4750_v26  ;;  %3425 = vmatmul.mubr.msk.bf16.gmra.mxu1 %vm330_vm2, %v4750_v26  ;;  %v1738_v1 = vrot.slane %v1728_v59, %v4857_v39  ;;  %v1745_v24 = vrot.slane %v1729_v2, %v4857_v39 }
 0x29e   : > { %1995 = vmatprep.mubr.bf16.mxu0 %v5931_v20  ;;  %2188 = vmatprep.mubr.bf16.mxu1 %v5931_v20 }
 0x29f   : > { %v1760_v50 = vcombine.low %v1738_v1, %v1745_v24 }
 0x2a1   : > { %v1768_v19 = vrot.slane %v1760_v50, %v4857_v39 }
 0x2a5   : > { %3410 = vmatmul.mubr.msk.bf16.gmra.mxu0 %vm330_vm2, %v4758_v38  ;;  %3426 = vmatmul.mubr.msk.bf16.gmra.mxu1 %vm330_vm2, %v4758_v38 }
 0x2a6   : > { %2005 = vmatprep.mubr.bf16.mxu0 %v5931_v20  ;;  %2198 = vmatprep.mubr.bf16.mxu1 %v5931_v20 }
 0x2ad   : > { %3411 = vmatmul.mubr.msk.bf16.gmra.mxu0 %vm330_vm2, %v4766_v47  ;;  %3427 = vmatmul.mubr.msk.bf16.gmra.mxu1 %vm330_vm2, %v4766_v47 }
 0x2ae   : > { %2015 = vmatprep.mubr.bf16.mxu0 %v5931_v20  ;;  %2208 = vmatprep.mubr.bf16.mxu1 %v5931_v20 }
 0x2b5   : > { %3412 = vmatmul.mubr.msk.bf16.gmra.mxu0 %vm330_vm2, %v4774_v42  ;;  %3428 = vmatmul.mubr.msk.bf16.gmra.mxu1 %vm330_vm2, %v4774_v42 }
 0x2b6   : > { %2025 = vmatprep.mubr.bf16.mxu0 %v5931_v20  ;;  %2218 = vmatprep.mubr.bf16.mxu1 %v5931_v20 }
 0x2bd   : > { %3413 = vmatmul.mubr.msk.bf16.gmra.mxu0 %vm330_vm2, %v4782_v15  ;;  %3429 = vmatmul.mubr.msk.bf16.gmra.mxu1 %vm330_vm2, %v4782_v15 }
 0x2be   : > { %2035 = vmatprep.mubr.bf16.mxu0 %v5931_v20  ;;  %2228 = vmatprep.mubr.bf16.mxu1 %v5931_v20 }
 0x2c5   : > { %3414 = vmatmul.mubr.msk.bf16.gmra.mxu0 %vm330_vm2, %v4790_v3  ;;  %3430 = vmatmul.mubr.msk.bf16.gmra.mxu1 %vm330_vm2, %v4790_v3 }
 0x2c6   : > { %2045 = vmatprep.mubr.bf16.mxu0 %v5931_v20  ;;  %2238 = vmatprep.mubr.bf16.mxu1 %v5931_v20 }
 0x2cd   : > { %3415 = vmatmul.mubr.msk.bf16.gmra.mxu0 %vm330_vm2, %v4798_v5  ;;  %3431 = vmatmul.mubr.msk.bf16.gmra.mxu1 %vm330_vm2, %v4798_v5 }
 0x2ce   : > { %2055 = vmatprep.mubr.bf16.mxu0 %v5931_v20  ;;  %2248 = vmatprep.mubr.bf16.mxu1 %v5931_v20 }
 0x2d5   : > { %3416 = vmatmul.mubr.msk.bf16.gmra.mxu0 %vm330_vm2, %v4806_v62  ;;  %3432 = vmatmul.mubr.msk.bf16.gmra.mxu1 %vm330_vm2, %v4806_v62 }
 0x2d6   : > { %2291 = vmatprep.mubr.bf16.mxu0 %v5931_v20  ;;  %2484 = vmatprep.mubr.bf16.mxu1 %v5931_v20 }
 0x2dd   : > { %3433 = vmatmul.mubr.msk.bf16.vlgmr.msra.gmra.mxu0 %vm330_vm2, %v4680_v11  ;;  %3449 = vmatmul.mubr.msk.bf16.vlgmr.msra.gmra.mxu1 %vm330_vm2, %v4680_v11 }
 0x2de   : > { %2301 = vmatprep.mubr.bf16.mxu0 %v5931_v20  ;;  %2494 = vmatprep.mubr.bf16.mxu1 %v5931_v20 }
 0x2e5   : > { %3434 = vmatmul.mubr.msk.bf16.gmra.mxu0 %vm330_vm2, %v4694_v40  ;;  %3450 = vmatmul.mubr.msk.bf16.gmra.mxu1 %vm330_vm2, %v4694_v40 }
 0x2e6   : > { %2311 = vmatprep.mubr.bf16.mxu0 %v5931_v20  ;;  %2504 = vmatprep.mubr.bf16.mxu1 %v5931_v20 }
 0x2ed   : > { %3435 = vmatmul.mubr.msk.bf16.gmra.mxu0 %vm330_vm2, %v4702_v28  ;;  %3451 = vmatmul.mubr.msk.bf16.gmra.mxu1 %vm330_vm2, %v4702_v28 }
 0x2ee   : > { %2321 = vmatprep.mubr.bf16.mxu0 %v5931_v20  ;;  %2514 = vmatprep.mubr.bf16.mxu1 %v5931_v20 }
 0x2f5   : > { %3436 = vmatmul.mubr.msk.bf16.gmra.mxu0 %vm330_vm2, %v4710_v32  ;;  %3452 = vmatmul.mubr.msk.bf16.gmra.mxu1 %vm330_vm2, %v4710_v32 }
 0x2f6   : > { %2331 = vmatprep.mubr.bf16.mxu0 %v5931_v20  ;;  %2524 = vmatprep.mubr.bf16.mxu1 %v5931_v20 }
 0x2fd   : > { %3437 = vmatmul.mubr.msk.bf16.gmra.mxu0 %vm330_vm2, %v4718_v55  ;;  %3453 = vmatmul.mubr.msk.bf16.gmra.mxu1 %vm330_vm2, %v4718_v55 }
 0x2fe   : > { %2341 = vmatprep.mubr.bf16.mxu0 %v5931_v20  ;;  %2534 = vmatprep.mubr.bf16.mxu1 %v5931_v20 }
 0x305   : > { %3438 = vmatmul.mubr.msk.bf16.gmra.mxu0 %vm330_vm2, %v4726_v35  ;;  %3454 = vmatmul.mubr.msk.bf16.gmra.mxu1 %vm330_vm2, %v4726_v35 }
 0x306   : > { %2351 = vmatprep.mubr.bf16.mxu0 %v5931_v20  ;;  %2544 = vmatprep.mubr.bf16.mxu1 %v5931_v20 }
 0x30d   : > { %3439 = vmatmul.mubr.msk.bf16.gmra.mxu0 %vm330_vm2, %v4734_v13  ;;  %3455 = vmatmul.mubr.msk.bf16.gmra.mxu1 %vm330_vm2, %v4734_v13 }
 0x30e   : > { %2361 = vmatprep.mubr.bf16.mxu0 %v5931_v20  ;;  %2554 = vmatprep.mubr.bf16.mxu1 %v5931_v20 }
 0x315   : > { %3440 = vmatmul.mubr.msk.bf16.gmra.mxu0 %vm330_vm2, %v4742_v25  ;;  %3456 = vmatmul.mubr.msk.bf16.gmra.mxu1 %vm330_vm2, %v4742_v25 }
 0x316   : > { %2371 = vmatprep.mubr.bf16.mxu0 %v5931_v20  ;;  %2564 = vmatprep.mubr.bf16.mxu1 %v5931_v20 }
 0x318   : > { %v1643_v46 = vpop.f32.mrf.mxu0  ;;  %v1714_v7 = vpop.f32.mrf.mxu1 }
 0x31a   : > { %v1645_v4 = vpop.f32.mrf.mxu0  ;;  %v1716_v57 = vpop.f32.mrf.mxu1 }
 0x31b   : > { %v1730_v61 = vcombine.low %v1643_v46, %v1645_v4  ;;  %v1731_v58 = vcombine.low %v1714_v7, %v1716_v57 }
 0x31d   : > { %v1752_v56 = vrot.slane %v1730_v61, %v4857_v39  ;;  %v1759_v12 = vrot.slane %v1731_v58, %v4857_v39  ;;  %v4869_v53 = vpop.f32.mrf.mxu0  ;;  %v4871_v9 = vpop.f32.mrf.mxu1  ;;  %3441 = vmatmul.mubr.msk.bf16.gmra.mxu0 %vm330_vm2, %v4750_v26  ;;  %3457 = vmatmul.mubr.msk.bf16.gmra.mxu1 %vm330_vm2, %v4750_v26 }
 0x31e   : > { %5938 = vst [vmem:[#allocation12_spill] sm:$0xff] %v4869_v53  ;;  %5939 = vst [vmem:[#allocation13_spill] sm:$0xff] %v4871_v9  ;;  %2381 = vmatprep.mubr.bf16.mxu0 %v5931_v20  ;;  %2574 = vmatprep.mubr.bf16.mxu1 %v5931_v20  ;;  %v5955_v9 = vld [vmem:[#allocation29_spill] sm:$0xff] }
 0x31f   : > { %v1761_v43 = vcombine.low %v1752_v56, %v1759_v12  ;;  %v4879_v31 = vpop.f32.mrf.mxu0  ;;  %v4881_v8 = vpop.f32.mrf.mxu1 }
 0x320   : > { %5940 = vst [vmem:[#allocation14_spill] sm:$0xff] %v4879_v31  ;;  %5941 = vst [vmem:[#allocation15_spill] sm:$0xff] %v4881_v8  ;;  %v5956_v8 = vld [vmem:[#allocation30_spill] sm:$0xff] }
 0x321   : > { %v1775_v6 = vrot.slane %v1761_v43, %v4857_v39  ;;  %v4885_v17 = vpop.f32.mrf.mxu0  ;;  %v4887_v21 = vpop.f32.mrf.mxu1 }
 0x322   : > { %5942 = vst [vmem:[#allocation16_spill] sm:$0xff] %v4885_v17  ;;  %5943 = vst [vmem:[#allocation17_spill] sm:$0xff] %v4887_v21 }
 0x323   : > { %v1776_v0 = vcombine.low %v1768_v19, %v1775_v6  ;;  %v4889_v10 = vpop.f32.mrf.mxu0  ;;  %v4891_v14 = vpop.f32.mrf.mxu1 }
 0x324   : > { %5944 = vst [vmem:[#allocation18_spill] sm:$0xff] %v4889_v10  ;;  %5945 = vst [vmem:[#allocation19_spill] sm:$0xff] %v4891_v14  ;;  %v5957_v14 = vld [vmem:[#allocation31_spill] sm:$0xff] }
 0x325   : > { %v1778_v45 = vadd.f32 %v1776_v0, %v1719_v44  ;;  %v4893_v60 = vpop.f32.mrf.mxu0  ;;  %v4895_v11 = vpop.f32.mrf.mxu1  ;;  %3442 = vmatmul.mubr.msk.bf16.gmra.mxu0 %vm330_vm2, %v4758_v38  ;;  %3458 = vmatmul.mubr.msk.bf16.gmra.mxu1 %vm330_vm2, %v4758_v38 }
 0x326   : > { %5946 = vst [vmem:[#allocation20_spill] sm:$0xff] %v4893_v60  ;;  %5947 = vst [vmem:[#allocation21_spill] sm:$0xff] %v4895_v11  ;;  %2391 = vmatprep.mubr.bf16.mxu0 %v5931_v20  ;;  %2584 = vmatprep.mubr.bf16.mxu1 %v5931_v20  ;;  %v5958_v11 = vld [vmem:[#allocation32_spill] sm:$0xff] }
 0x327   : > { %1779 = vst [vmem:[#allocation2] ss:$2 sm:$0xff] %v1778_v45  ;;  %v4903_v34 = vpop.f32.mrf.mxu0  ;;  %v4905_v29 = vpop.f32.mrf.mxu1 }
 0x328   : > { %5948 = vst [vmem:[#allocation22_spill] sm:$0xff] %v4903_v34  ;;  %5949 = vst [vmem:[#allocation23_spill] sm:$0xff] %v4905_v29 }
 0x329   : > { %v4907_v23 = vpop.f32.mrf.mxu0  ;;  %v4909_v16 = vpop.f32.mrf.mxu1 }
 0x32a   : > { %5950 = vst [vmem:[#allocation24_spill] sm:$0xff] %v4907_v23  ;;  %5951 = vst [vmem:[#allocation25_spill] sm:$0xff] %v4909_v16 }
 0x32b   : > { %v4911_v40 = vpop.f32.mrf.mxu0  ;;  %v4913_v28 = vpop.f32.mrf.mxu1 }
 0x32c   : > { %5952 = vst [vmem:[#allocation26_spill] sm:$0xff] %v4911_v40  ;;  %5953 = vst [vmem:[#allocation27_spill] sm:$0xff] %v4913_v28 }
 0x32d   : > { %v4915_v32 = vpop.f32.mrf.mxu0  ;;  %v4917_v55 = vpop.f32.mrf.mxu1  ;;  %3443 = vmatmul.mubr.msk.bf16.gmra.mxu0 %vm330_vm2, %v4766_v47  ;;  %3459 = vmatmul.mubr.msk.bf16.gmra.mxu1 %vm330_vm2, %v4766_v47 }
 0x32e   : > { %5954 = vst [vmem:[#allocation53_spill] sm:$0xff] %v4917_v55  ;;  %2401 = vmatprep.mubr.bf16.mxu0 %v5931_v20  ;;  %2594 = vmatprep.mubr.bf16.mxu1 %v5931_v20 }
 0x32f   : > { %v4925_v35 = vpop.f32.mrf.mxu0  ;;  %v4927_v13 = vpop.f32.mrf.mxu1 }
 0x331   : > { %v4929_v25 = vpop.f32.mrf.mxu0  ;;  %v4931_v26 = vpop.f32.mrf.mxu1 }
 0x333   : > { %v4933_v33 = vpop.f32.mrf.mxu0  ;;  %v4935_v38 = vpop.f32.mrf.mxu1 }
 0x335   : > { %v4937_v48 = vpop.f32.mrf.mxu0  ;;  %v4939_v51 = vpop.f32.mrf.mxu1  ;;  %3444 = vmatmul.mubr.msk.bf16.gmra.mxu0 %vm330_vm2, %v4774_v42  ;;  %3460 = vmatmul.mubr.msk.bf16.gmra.mxu1 %vm330_vm2, %v4774_v42 }
 0x336   : > { %2411 = vmatprep.mubr.bf16.mxu0 %v5931_v20  ;;  %2604 = vmatprep.mubr.bf16.mxu1 %v5931_v20 }
 0x337   : > { %v4947_v47 = vpop.f32.mrf.mxu0  ;;  %v4949_v36 = vpop.f32.mrf.mxu1 }
 0x339   : > { %v4951_v22 = vpop.f32.mrf.mxu0  ;;  %v4953_v37 = vpop.f32.mrf.mxu1 }
 0x33b   : > { %v4955_v27 = vpop.f32.mrf.mxu0  ;;  %v4957_v54 = vpop.f32.mrf.mxu1 }
 0x33d   : > { %v4959_v59 = vpop.f32.mrf.mxu0  ;;  %v4961_v63 = vpop.f32.mrf.mxu1  ;;  %3445 = vmatmul.mubr.msk.bf16.gmra.mxu0 %vm330_vm2, %v4782_v15  ;;  %3461 = vmatmul.mubr.msk.bf16.gmra.mxu1 %vm330_vm2, %v4782_v15 }
 0x33e   : > { %2421 = vmatprep.mubr.bf16.mxu0 %v5931_v20  ;;  %2614 = vmatprep.mubr.bf16.mxu1 %v5931_v20 }
 0x33f   : > { %v4969_v42 = vpop.f32.mrf.mxu0  ;;  %v4971_v2 = vpop.f32.mrf.mxu1 }
 0x341   : > { %v4973_v46 = vpop.f32.mrf.mxu0  ;;  %v4975_v7 = vpop.f32.mrf.mxu1 }
 0x343   : > { %v4977_v1 = vpop.f32.mrf.mxu0  ;;  %v4979_v24 = vpop.f32.mrf.mxu1 }
 0x345   : > { %v4981_v4 = vpop.f32.mrf.mxu0  ;;  %v4983_v57 = vpop.f32.mrf.mxu1  ;;  %3446 = vmatmul.mubr.msk.bf16.gmra.mxu0 %vm330_vm2, %v4790_v3  ;;  %3462 = vmatmul.mubr.msk.bf16.gmra.mxu1 %vm330_vm2, %v4790_v3 }
 0x346   : > { %2431 = vmatprep.mubr.bf16.mxu0 %v5931_v20  ;;  %2624 = vmatprep.mubr.bf16.mxu1 %v5931_v20 }
 0x347   : > { %v4991_v15 = vpop.f32.mrf.mxu0  ;;  %v4993_v61 = vpop.f32.mrf.mxu1 }
 0x349   : > { %v4995_v58 = vpop.f32.mrf.mxu0  ;;  %v4997_v50 = vpop.f32.mrf.mxu1 }
 0x34b   : > { %v1963_v56 = vpop.f32.mrf.mxu0  ;;  %v2156_v12 = vpop.f32.mrf.mxu1 }
 0x34d   : > { %v1967_v43 = vpop.f32.mrf.mxu0  ;;  %v2160_v19 = vpop.f32.mrf.mxu1  ;;  %3447 = vmatmul.mubr.msk.bf16.gmra.mxu0 %vm330_vm2, %v4798_v5  ;;  %3463 = vmatmul.mubr.msk.bf16.gmra.mxu1 %vm330_vm2, %v4798_v5 }
 0x34e   : > { %2441 = vmatprep.mubr.bf16.mxu0 %v5931_v20  ;;  %2634 = vmatprep.mubr.bf16.mxu1 %v5931_v20 }
 0x34f   : > { %v1969_v3 = vpop.f32.mrf.mxu0  ;;  %v2162_v6 = vpop.f32.mrf.mxu1 }
 0x351   : > { %v1971_v44 = vpop.f32.mrf.mxu0  ;;  %v2164_v0 = vpop.f32.mrf.mxu1 }
 0x353   : > { %v1973_v45 = vpop.f32.mrf.mxu0  ;;  %v2166_v39 = vpop.f32.mrf.mxu1 }
 0x355   : > { %v1977_v18 = vpop.f32.mrf.mxu0  ;;  %v2170_v41 = vpop.f32.mrf.mxu1  ;;  %3448 = vmatmul.mubr.msk.bf16.gmra.mxu0 %vm330_vm2, %v4806_v62  ;;  %3464 = vmatmul.mubr.msk.bf16.gmra.mxu1 %vm330_vm2, %v4806_v62 }
 0x356   : > { %2965 = vmatprep.mubr.f32.mxu0 %v5926_v30  ;;  %3036 = vmatprep.mubr.f32.mxu1 %v5926_v30  ;;  %v1978_v30 = vadd.f32 %v1977_v18, %v5955_v9  ;;  %v2171_v34 = vadd.f32 %v2170_v41, %v5956_v8  ;;  %v1970_v41 = vadd.f32 %v1969_v3, %v5957_v14 }
 0x357   : > { %v1979_v5 = vpop.f32.mrf.mxu0  ;;  %v2172_v20 = vpop.f32.mrf.mxu1  ;;  %v1964_v3 = vadd.f32 %v1963_v56, %v5957_v14  ;;  %v1960_v56 = vadd.f32 %v4991_v15, %v5957_v14  ;;  %v1954_v15 = vadd.f32 %v4977_v1, %v5957_v14  ;;  %v1950_v1 = vadd.f32 %v4969_v42, %v5957_v14 }
 0x358   : > { %v1980_v10 = vadd.f32 %v1979_v5, %v5957_v14  ;;  %v2173_v60 = vadd.f32 %v2172_v20, %v5958_v11  ;;  %v1972_v20 = vadd.f32 %v1971_v44, %v5955_v9  ;;  %v2757_v44 = vmax.f32 %v1978_v30, 0.0 }
 0x359   : > { %v1981_v52 = vpop.f32.mrf.mxu0  ;;  %v2174_v49 = vpop.f32.mrf.mxu1  ;;  %v2155_v30 = vadd.f32 %v4997_v50, %v5956_v8  ;;  %v2151_v50 = vadd.f32 %v4983_v57, %v5956_v8  ;;  %v2145_v57 = vadd.f32 %v4975_v7, %v5956_v8  ;;  %v2141_v7 = vadd.f32 %v4961_v63, %v5956_v8 }
 0x35a   : > { %v1982_v53 = vadd.f32 %v1981_v52, %v5955_v9  ;;  %v2175_v31 = vadd.f32 %v2174_v49, %v5956_v8  ;;  %v1974_v52 = vadd.f32 %v1973_v45, %v5957_v14  ;;  %v2167_v49 = vadd.f32 %v2166_v39, %v5958_v11 }
 0x35b   : > { %v1983_v21 = vpop.f32.mrf.mxu0  ;;  %v2176_v17 = vpop.f32.mrf.mxu1  ;;  %v2760_v45 = vmax.f32 %v2173_v60, 0.0  ;;  %v1968_v39 = vadd.f32 %v1967_v43, %v5955_v9  ;;  %v1944_v42 = vadd.f32 %v4955_v27, %v5957_v14  ;;  %v2135_v63 = vadd.f32 %v4953_v37, %v5956_v8 }
 0x35c   : > { %v1984_v62 = vadd.f32 %v1983_v21, %v5957_v14  ;;  %v2177_v29 = vadd.f32 %v2176_v17, %v5958_v11  ;;  %v2165_v21 = vadd.f32 %v2164_v0, %v5956_v8  ;;  %v2765_v40 = vmax.f32 %v1982_v53, 0.0 }
 0x35d   : > { %v5019_v16 = vpop.f32.mrf.mxu0  ;;  %v5021_v23 = vpop.f32.mrf.mxu1  ;;  %v2767_v17 = vmax.f32 %v2175_v31, 0.0  ;;  %v2759_v0 = vmax.f32 %v2171_v34, 0.0  ;;  %v2752_v60 = vmax.f32 %v2167_v49, 0.0  ;;  %v2749_v34 = vmax.f32 %v1972_v20, 0.0 }
 0x35e   : > { %5959 = vst [vmem:[#allocation51_spill] sm:$0xff] %v5019_v16  ;;  %5960 = vst [vmem:[#allocation52_spill] sm:$0xff] %v5021_v23  ;;  %v2766_v28 = vmax.f32 %v1984_v62, 0.0  ;;  %v2768_v5 = vmax.f32 %v2177_v29, 0.0  ;;  %v2163_v23 = vadd.f32 %v2162_v6, %v5958_v11  ;;  %v2758_v16 = vmax.f32 %v1980_v10, 0.0 }
 0x35f   : > { %v5027_v55 = vpop.f32.mrf.mxu0  ;;  %v5029_v18 = vpop.f32.mrf.mxu1  ;;  %v2161_v29 = vadd.f32 %v2160_v19, %v5956_v8  ;;  %v2157_v6 = vadd.f32 %v2156_v12, %v5958_v11  ;;  %v2750_v10 = vmax.f32 %v1974_v52, 0.0  ;;  %v2751_v43 = vmax.f32 %v2165_v21, 0.0 }
 0x360   : > { %5961 = vst [vmem:[#allocation34_spill] sm:$0xff] %v5027_v55  ;;  %5962 = vst [vmem:[#allocation28_spill] sm:$0xff] %v5029_v18  ;;  %2901 = vmatprep.subr.mxu0 %v2766_v28  ;;  %2972 = vmatprep.subr.mxu1 %v2768_v5  ;;  %v1962_v28 = vadd.f32 %v4995_v58, %v5955_v9  ;;  %v2742_v12 = vmax.f32 %v1970_v41, 0.0  ;;  %v2744_v62 = vmax.f32 %v2163_v23, 0.0  ;;  %v2741_v52 = vmax.f32 %v1968_v39, 0.0 }
 0x361   : > { %v5035_v53 = vpop.f32.mrf.mxu0  ;;  %v5037_v31 = vpop.f32.mrf.mxu1  ;;  %2902 = vmatpush1.msra.mxu0 %v2765_v40  ;;  %2973 = vmatpush1.msra.mxu1 %v2767_v17  ;;  %v1958_v58 = vadd.f32 %v4981_v4, %v5955_v9  ;;  %v2743_v49 = vmax.f32 %v2161_v29, 0.0  ;;  %v2147_v23 = vadd.f32 %v4979_v24, %v5958_v11  ;;  %v2736_v21 = vmax.f32 %v2157_v6, 0.0 }
 0x362   : > { %5963 = vst [vmem:[#allocation36_spill] sm:$0xff] %v5035_v53  ;;  %5964 = vst [vmem:[#allocation33_spill] sm:$0xff] %v5037_v31  ;;  %2903 = vmatprep.subr.mxu0 %v2758_v16  ;;  %2974 = vmatprep.subr.mxu1 %v2760_v45  ;;  %v2153_v16 = vadd.f32 %v4993_v61, %v5958_v11  ;;  %v2734_v61 = vmax.f32 %v1964_v3, 0.0  ;;  %v1952_v4 = vadd.f32 %v4973_v46, %v5955_v9 }
 0x363   : > { %v5045_v19 = vpop.f32.mrf.mxu0  ;;  %v5047_v40 = vpop.f32.mrf.mxu1  ;;  %2904 = vmatpush1.msra.mxu0 %v2757_v44  ;;  %2975 = vmatpush1.msra.mxu1 %v2759_v0  ;;  %v2733_v17 = vmax.f32 %v1962_v28, 0.0  ;;  %v2735_v41 = vmax.f32 %v2155_v30, 0.0  ;;  %v2143_v24 = vadd.f32 %v4971_v2, %v5958_v11  ;;  %v2726_v29 = vmax.f32 %v1960_v56, 0.0 }
 0x364   : > { %5965 = vst [vmem:[#allocation38_spill] sm:$0xff] %v5045_v19  ;;  %5966 = vst [vmem:[#allocation35_spill] sm:$0xff] %v5047_v40  ;;  %2905 = vmatprep.subr.mxu0 %v2750_v10  ;;  %2976 = vmatprep.subr.mxu1 %v2752_v60  ;;  %v2728_v44 = vmax.f32 %v2153_v16, 0.0  ;;  %v1948_v46 = vadd.f32 %v4959_v59, %v5955_v9  ;;  %v2725_v0 = vmax.f32 %v1958_v58, 0.0  ;;  %v2727_v3 = vmax.f32 %v2151_v50, 0.0 }
 0x365   : > { %v5057_v5 = vpop.f32.mrf.mxu0  ;;  %v5059_v20 = vpop.f32.mrf.mxu1  ;;  %2906 = vmatpush1.msra.mxu0 %v2749_v34  ;;  %2977 = vmatpush1.msra.mxu1 %v2751_v43  ;;  %v2137_v2 = vadd.f32 %v4957_v54, %v5958_v11  ;;  %v2718_v60 = vmax.f32 %v1954_v15, 0.0  ;;  %v2720_v28 = vmax.f32 %v2147_v23, 0.0  ;;  %v1942_v59 = vadd.f32 %v4951_v22, %v5955_v9 }
 0x366   : > { %5967 = vst [vmem:[#allocation40_spill] sm:$0xff] %v5057_v5  ;;  %5968 = vst [vmem:[#allocation37_spill] sm:$0xff] %v5059_v20  ;;  %2907 = vmatprep.subr.mxu0 %v2742_v12  ;;  %2978 = vmatprep.subr.mxu1 %v2744_v62  ;;  %v2717_v30 = vmax.f32 %v1952_v4, 0.0  ;;  %v2719_v34 = vmax.f32 %v2145_v57, 0.0  ;;  %v1940_v27 = vadd.f32 %v4947_v47, %v5957_v14  ;;  %v2710_v16 = vmax.f32 %v1950_v1, 0.0 }
 0x367   : > { %v5069_v45 = vpop.f32.mrf.mxu0  ;;  %v5071_v39 = vpop.f32.mrf.mxu1  ;;  %2908 = vmatpush1.msra.mxu0 %v2741_v52  ;;  %2979 = vmatpush1.msra.mxu1 %v2743_v49  ;;  %v2133_v54 = vadd.f32 %v4949_v36, %v5958_v11  ;;  %v2712_v12 = vmax.f32 %v2143_v24, 0.0  ;;  %v1938_v22 = vadd.f32 %v4937_v48, %v5955_v9  ;;  %v2131_v37 = vadd.f32 %v4939_v51, %v5956_v8 }
 0x368   : > { %5969 = vst [vmem:[#allocation42_spill] sm:$0xff] %v5069_v45  ;;  %5970 = vst [vmem:[#allocation39_spill] sm:$0xff] %v5071_v39  ;;  %2909 = vmatprep.subr.mxu0 %v2734_v61  ;;  %2980 = vmatprep.subr.mxu1 %v2736_v21  ;;  %v2709_v62 = vmax.f32 %v1948_v46, 0.0  ;;  %v2711_v58 = vmax.f32 %v2141_v7, 0.0  ;;  %v1934_v47 = vadd.f32 %v4933_v33, %v5957_v14  ;;  %v2702_v49 = vmax.f32 %v1944_v42, 0.0  ;;  %v5978_v46 = vld [vmem:[#allocation27_spill] sm:$0xff] }
 0x369   : > { %v5081_v6 = vpop.f32.mrf.mxu0  ;;  %v5083_v10 = vpop.f32.mrf.mxu1  ;;  %2910 = vmatpush1.msra.mxu0 %v2733_v17  ;;  %2981 = vmatpush1.msra.mxu1 %v2735_v41  ;;  %v2127_v36 = vadd.f32 %v4935_v38, %v5958_v11  ;;  %v2704_v15 = vmax.f32 %v2137_v2, 0.0  ;;  %v1932_v48 = vadd.f32 %v4929_v25, %v5955_v9  ;;  %v2125_v51 = vadd.f32 %v4931_v26, %v5956_v8  ;;  %v5976_v26 = vld [vmem:[#allocation53_spill] sm:$0xff] }
 0x36a   : > { %5971 = vst [vmem:[#allocation44_spill] sm:$0xff] %v5081_v6  ;;  %5972 = vst [vmem:[#allocation41_spill] sm:$0xff] %v5083_v10  ;;  %2911 = vmatprep.subr.mxu0 %v2726_v29  ;;  %2982 = vmatprep.subr.mxu1 %v2728_v44  ;;  %v2701_v23 = vmax.f32 %v1942_v59, 0.0  ;;  %v2703_v61 = vmax.f32 %v2135_v63, 0.0  ;;  %v1930_v33 = vadd.f32 %v4925_v35, %v5957_v14  ;;  %v2694_v57 = vmax.f32 %v1940_v27, 0.0  ;;  %v5977_v35 = vld [vmem:[#allocation26_spill] sm:$0xff] }
 0x36b   : > { %v5093_v43 = vpop.f32.mrf.mxu0  ;;  %v5095_v56 = vpop.f32.mrf.mxu1  ;;  %2912 = vmatpush1.msra.mxu0 %v2725_v0  ;;  %2983 = vmatpush1.msra.mxu1 %v2727_v3  ;;  %v2123_v38 = vadd.f32 %v4927_v13, %v5958_v11  ;;  %v2696_v17 = vmax.f32 %v2133_v54, 0.0  ;;  %v1928_v25 = vadd.f32 %v4915_v32, %v5955_v9  ;;  %v2121_v41 = vadd.f32 %v5976_v26, %v5956_v8  ;;  %v5979_v32 = vld [vmem:[#allocation24_spill] sm:$0xff]  ;;  %v5980_v2 = vld [vmem:[#allocation25_spill] sm:$0xff]  ;;  %v5982_v54 = vld [vmem:[#allocation23_spill] sm:$0xff] }
 0x36c   : > { %5973 = vst [vmem:[#allocation46_spill] sm:$0xff] %v5093_v43  ;;  %5974 = vst [vmem:[#allocation43_spill] sm:$0xff] %v5095_v56  ;;  %2913 = vmatprep.subr.mxu0 %v2718_v60  ;;  %2984 = vmatprep.subr.mxu1 %v2720_v28  ;;  %v2693_v1 = vmax.f32 %v1938_v22, 0.0  ;;  %v2695_v24 = vmax.f32 %v2131_v37, 0.0  ;;  %v1924_v13 = vadd.f32 %v5977_v35, %v5957_v14  ;;  %v2686_v0 = vmax.f32 %v1934_v47, 0.0  ;;  %v5983_v37 = vld [vmem:[#allocation20_spill] sm:$0xff] }
 0x36d   : > { %v5105_v50 = vpop.f32.mrf.mxu0  ;;  %v5107_v52 = vpop.f32.mrf.mxu1  ;;  %2914 = vmatpush1.msra.mxu0 %v2717_v30  ;;  %2985 = vmatpush1.msra.mxu1 %v2719_v34  ;;  %v2117_v7 = vadd.f32 %v5978_v46, %v5958_v11  ;;  %v2688_v3 = vmax.f32 %v2127_v36, 0.0  ;;  %v1922_v42 = vadd.f32 %v5979_v32, %v5955_v9  ;;  %v2115_v60 = vadd.f32 %v5980_v2, %v5956_v8  ;;  %v5981_v34 = vld [vmem:[#allocation22_spill] sm:$0xff]  ;;  %v5988_v26 = vld [vmem:[#allocation17_spill] sm:$0xff] }
 0x36e   : > { %5975 = vst [vmem:[#allocation8_spill] sm:$0xff] %v5107_v52  ;;  %2915 = vmatprep.subr.mxu0 %v2710_v16  ;;  %2986 = vmatprep.subr.mxu1 %v2712_v12  ;;  %v2685_v28 = vmax.f32 %v1932_v48, 0.0  ;;  %v2687_v59 = vmax.f32 %v2125_v51, 0.0  ;;  %v1920_v27 = vadd.f32 %v5981_v34, %v5957_v14  ;;  %v2113_v16 = vadd.f32 %v5982_v54, %v5958_v11  ;;  %v5985_v51 = vld [vmem:[#allocation18_spill] sm:$0xff] }
 0x36f   : > { %v5117_v21 = vpop.f32.mrf.mxu0  ;;  %v5119_v4 = vpop.f32.mrf.mxu1  ;;  %2916 = vmatpush1.msra.mxu0 %v2709_v62  ;;  %2987 = vmatpush1.msra.mxu1 %v2711_v58  ;;  %v2678_v12 = vmax.f32 %v1930_v33, 0.0  ;;  %v2680_v22 = vmax.f32 %v2123_v38, 0.0  ;;  %v1918_v62 = vadd.f32 %v5983_v37, %v5955_v9  ;;  %v5984_v58 = vld [vmem:[#allocation21_spill] sm:$0xff]  ;;  %v2677_v36 = vmax.f32 %v1928_v25, 0.0 }
 0x370   : > { %2917 = vmatprep.subr.mxu0 %v2702_v49  ;;  %2988 = vmatprep.subr.mxu1 %v2704_v15  ;;  %v2111_v47 = vadd.f32 %v5984_v58, %v5956_v8  ;;  %v2679_v49 = vmax.f32 %v2121_v41, 0.0  ;;  %v2670_v38 = vmax.f32 %v1924_v13, 0.0  ;;  %v2105_v41 = vadd.f32 %v5988_v26, %v5956_v8 }
 0x371   : > { %v5129_v29 = vpop.f32.mrf.mxu0  ;;  %v5131_v44 = vpop.f32.mrf.mxu1  ;;  %2918 = vmatpush1.msra.mxu0 %v2701_v23  ;;  %2989 = vmatpush1.msra.mxu1 %v2703_v61  ;;  %v1914_v23 = vadd.f32 %v5985_v51, %v5957_v14  ;;  %v5986_v61 = vld [vmem:[#allocation19_spill] sm:$0xff]  ;;  %v2662_v32 = vmax.f32 %v1920_v27, 0.0  ;;  %v2664_v2 = vmax.f32 %v2113_v16, 0.0  ;;  %v2661_v34 = vmax.f32 %v1918_v62, 0.0 }
 0x372   : > { %2919 = vmatprep.subr.mxu0 %v2694_v57  ;;  %2990 = vmatprep.subr.mxu1 %v2696_v17  ;;  %v2107_v33 = vadd.f32 %v5986_v61, %v5958_v11  ;;  %v2672_v57 = vmax.f32 %v2117_v7, 0.0  ;;  %v5987_v17 = vld [vmem:[#allocation16_spill] sm:$0xff]  ;;  %v5990_v7 = vld [vmem:[#allocation15_spill] sm:$0xff]  ;;  %v2663_v54 = vmax.f32 %v2111_v47, 0.0  ;;  %v2655_v16 = vmax.f32 %v2105_v41, 0.0 }
 0x373   : > { %v5141_v63 = vpop.f32.mrf.mxu0  ;;  %v5143_v30 = vpop.f32.mrf.mxu1  ;;  %2920 = vmatpush1.msra.mxu0 %v2693_v1  ;;  %2991 = vmatpush1.msra.mxu1 %v2695_v24  ;;  %v1912_v25 = vadd.f32 %v5987_v17, %v5955_v9  ;;  %v2669_v1 = vmax.f32 %v1922_v42, 0.0  ;;  %v2671_v24 = vmax.f32 %v2115_v60, 0.0  ;;  %v5992_v60 = vld [vmem:[#allocation13_spill] sm:$0xff]  ;;  %v2654_v37 = vmax.f32 %v1914_v23, 0.0 }
 0x374   : > { %2921 = vmatprep.subr.mxu0 %v2686_v0  ;;  %2992 = vmatprep.subr.mxu1 %v2688_v3  ;;  %v5989_v0 = vld [vmem:[#allocation14_spill] sm:$0xff]  ;;  %v2103_v3 = vadd.f32 %v5990_v7, %v5958_v11  ;;  %v2656_v58 = vmax.f32 %v2107_v33, 0.0 }
 0x375   : > { %v5153_v15 = vpop.f32.mrf.mxu0  ;;  %v5155_v48 = vpop.f32.mrf.mxu1  ;;  %2922 = vmatpush1.msra.mxu0 %v2685_v28  ;;  %2993 = vmatpush1.msra.mxu1 %v2687_v59  ;;  %v1910_v13 = vadd.f32 %v5989_v0, %v5957_v14  ;;  %v5991_v28 = vld [vmem:[#allocation12_spill] sm:$0xff]  ;;  %v2101_v59 = vadd.f32 %v5992_v60, %v5956_v8  ;;  %v2653_v27 = vmax.f32 %v1912_v25, 0.0 }
 0x376   : > { %2923 = vmatprep.subr.mxu0 %v2678_v12  ;;  %2994 = vmatprep.subr.mxu1 %v2680_v22  ;;  %v1908_v42 = vadd.f32 %v5991_v28, %v5955_v9  ;;  %v2648_v47 = vmax.f32 %v2103_v3, 0.0 }
 0x377   : > { %v5165_v35 = vpop.f32.mrf.mxu0  ;;  %v5167_v46 = vpop.f32.mrf.mxu1  ;;  %2924 = vmatpush1.msra.mxu0 %v2677_v36  ;;  %2995 = vmatpush1.msra.mxu1 %v2679_v49  ;;  %v2646_v62 = vmax.f32 %v1910_v13, 0.0  ;;  %v2647_v61 = vmax.f32 %v2101_v59, 0.0 }
 0x378   : > { %2925 = vmatprep.subr.mxu0 %v2670_v38  ;;  %2996 = vmatprep.subr.mxu1 %v2672_v57  ;;  %v2645_v51 = vmax.f32 %v1908_v42, 0.0 }
 0x379   : > { %v5177_v12 = vpop.f32.mrf.mxu0  ;;  %v5179_v22 = vpop.f32.mrf.mxu1  ;;  %2926 = vmatpush1.msra.mxu0 %v2669_v1  ;;  %2997 = vmatpush1.msra.mxu1 %v2671_v24 }
 0x37a   : > { %2927 = vmatprep.subr.mxu0 %v2662_v32  ;;  %2998 = vmatprep.subr.mxu1 %v2664_v2 }
 0x37b   : > { %v5181_v36 = vpop.f32.mrf.mxu0  ;;  %v5183_v49 = vpop.f32.mrf.mxu1  ;;  %2928 = vmatpush1.msra.mxu0 %v2661_v34  ;;  %2999 = vmatpush1.msra.mxu1 %v2663_v54 }
 0x37c   : > { %2929 = vmatprep.subr.mxu0 %v2654_v37  ;;  %3000 = vmatprep.subr.mxu1 %v2656_v58 }
 0x37d   : > { %v5185_v38 = vpop.f32.mrf.mxu0  ;;  %v5187_v23 = vpop.f32.mrf.mxu1  ;;  %2930 = vmatpush1.msra.mxu0 %v2653_v27  ;;  %3001 = vmatpush1.msra.mxu1 %v2655_v16 }
 0x37e   : > { %2931 = vmatprep.subr.mxu0 %v2646_v62  ;;  %3002 = vmatprep.subr.mxu1 %v2648_v47 }
 0x37f   : > { %v5189_v33 = vpop.f32.mrf.mxu0  ;;  %v5191_v57 = vpop.f32.mrf.mxu1  ;;  %2932 = vmatpush1.msra.mxu0 %v2645_v51  ;;  %3003 = vmatpush1.msra.mxu1 %v2647_v61 }
 0x381   : > { %v5193_v17 = vpop.f32.mrf.mxu0  ;;  %v5195_v25 = vpop.f32.mrf.mxu1 }
 0x383   : > { %v5197_v26 = vpop.f32.mrf.mxu0  ;;  %v5199_v41 = vpop.f32.mrf.mxu1 }
 0x385   : > { %v5201_v1 = vpop.f32.mrf.mxu0  ;;  %v5203_v24 = vpop.f32.mrf.mxu1 }
 0x387   : > { %v5205_v0 = vpop.f32.mrf.mxu0  ;;  %v5207_v13 = vpop.f32.mrf.mxu1 }
 0x389   : > { %v2041_v7 = vpop.f32.mrf.mxu0  ;;  %v2234_v3 = vpop.f32.mrf.mxu1 }
 0x38b   : > { %v2043_v32 = vpop.f32.mrf.mxu0  ;;  %v2236_v2 = vpop.f32.mrf.mxu1 }
 0x38d   : > { %v2047_v28 = vpop.f32.mrf.mxu0  ;;  %v2240_v42 = vpop.f32.mrf.mxu1 }
 0x38f   : > { %v2049_v60 = vpop.f32.mrf.mxu0  ;;  %v2242_v59 = vpop.f32.mrf.mxu1 }
 0x391   : > { %v2051_v34 = vpop.f32.mrf.mxu0  ;;  %v2244_v54 = vpop.f32.mrf.mxu1 }
 0x393   : > { %v2053_v37 = vpop.f32.mrf.mxu0  ;;  %v2246_v58 = vpop.f32.mrf.mxu1 }
 0x395   : > { %v2057_v27 = vpop.f32.mrf.mxu0  ;;  %v2250_v16 = vpop.f32.mrf.mxu1 }
 0x396   : > { %v2058_v39 = vadd.f32 %v2057_v27, %v5955_v9  ;;  %v2251_v45 = vadd.f32 %v2250_v16, %v5956_v8  ;;  %v2050_v16 = vadd.f32 %v2049_v60, %v5957_v14  ;;  %v2044_v60 = vadd.f32 %v2043_v32, %v5957_v14 }
 0x397   : > { %v2059_v62 = vpop.f32.mrf.mxu0  ;;  %v2252_v47 = vpop.f32.mrf.mxu1  ;;  %v2233_v32 = vadd.f32 %v5207_v13, %v5958_v11 }
 0x398   : > { %v2060_v40 = vadd.f32 %v2059_v62, %v5957_v14  ;;  %v2253_v19 = vadd.f32 %v2252_v47, %v5958_v11  ;;  %v2052_v47 = vadd.f32 %v2051_v34, %v5955_v9  ;;  %v2885_v34 = vmax.f32 %v2058_v39, 0.0 }
 0x399   : > { %v2061_v51 = vpop.f32.mrf.mxu0  ;;  %v2254_v61 = vpop.f32.mrf.mxu1  ;;  %v2862_v13 = vmax.f32 %v2044_v60, 0.0 }
 0x39a   : > { %v2062_v18 = vadd.f32 %v2061_v51, %v5955_v9  ;;  %v2255_v55 = vadd.f32 %v2254_v61, %v5956_v8  ;;  %v2054_v51 = vadd.f32 %v2053_v37, %v5957_v14  ;;  %v2247_v61 = vadd.f32 %v2246_v58, %v5958_v11 }
 0x39b   : > { %v2063_v31 = vpop.f32.mrf.mxu0  ;;  %v2256_v53 = vpop.f32.mrf.mxu1  ;;  %v2888_v37 = vmax.f32 %v2253_v19, 0.0  ;;  %v2877_v39 = vmax.f32 %v2052_v47, 0.0 }
 0x39c   : > { %v2064_v20 = vadd.f32 %v2063_v31, %v5957_v14  ;;  %v2257_v5 = vadd.f32 %v2256_v53, %v5958_v11  ;;  %v2245_v31 = vadd.f32 %v2244_v54, %v5956_v8  ;;  %v2893_v43 = vmax.f32 %v2062_v18, 0.0 }
 0x39d   : > { %v5217_v10 = vpop.f32.mrf.mxu0  ;;  %v5219_v6 = vpop.f32.mrf.mxu1  ;;  %v2895_v53 = vmax.f32 %v2255_v55, 0.0  ;;  %v2887_v54 = vmax.f32 %v2251_v45, 0.0  ;;  %v2880_v19 = vmax.f32 %v2247_v61, 0.0 }
 0x39e   : > { %5993 = vst [vmem:[#allocation9_spill] sm:$0xff] %v5217_v10  ;;  %5994 = vst [vmem:[#allocation4_spill] sm:$0xff] %v5219_v6  ;;  %v2894_v56 = vmax.f32 %v2064_v20, 0.0  ;;  %v2896_v62 = vmax.f32 %v2257_v5, 0.0  ;;  %v2243_v6 = vadd.f32 %v2242_v59, %v5958_v11  ;;  %v2886_v10 = vmax.f32 %v2060_v40, 0.0 }
 0x39f   : > { %v5225_v52 = vpop.f32.mrf.mxu0  ;;  %v5227_v27 = vpop.f32.mrf.mxu1  ;;  %v2048_v5 = vadd.f32 %v2047_v28, %v5955_v9  ;;  %v2241_v20 = vadd.f32 %v2240_v42, %v5956_v8  ;;  %v2237_v59 = vadd.f32 %v2236_v2, %v5958_v11  ;;  %v2878_v40 = vmax.f32 %v2054_v51, 0.0 }
 0x3a0   : > { %5995 = vst [vmem:[#allocation5_spill] sm:$0xff] %v5225_v52  ;;  %5996 = vst [vmem:[#allocation10_spill] sm:$0xff] %v5227_v27  ;;  %2933 = vmatprep.subr.mxu0 %v2894_v56  ;;  %3004 = vmatprep.subr.mxu1 %v2896_v62  ;;  %v2042_v56 = vadd.f32 %v2041_v7, %v5955_v9  ;;  %v2235_v28 = vadd.f32 %v2234_v3, %v5956_v8  ;;  %v2879_v45 = vmax.f32 %v2245_v31, 0.0 }
 0x3a1   : > { %v5233_v18 = vpop.f32.mrf.mxu0  ;;  %v5235_v55 = vpop.f32.mrf.mxu1  ;;  %2934 = vmatpush2.msra.mxu0 %v2893_v43  ;;  %3005 = vmatpush2.msra.mxu1 %v2895_v53  ;;  %v2040_v43 = vadd.f32 %v5205_v0, %v5957_v14  ;;  %v2872_v2 = vmax.f32 %v2243_v6, 0.0  ;;  %v2038_v7 = vadd.f32 %v5201_v1, %v5955_v9  ;;  %v2231_v3 = vadd.f32 %v5203_v24, %v5956_v8 }
 0x3a2   : > { %5997 = vst [vmem:[#allocation11_spill] sm:$0xff] %v5233_v18  ;;  %5998 = vst [vmem:[#allocation6_spill] sm:$0xff] %v5235_v55  ;;  %2935 = vmatprep.subr.mxu0 %v2886_v10  ;;  %3006 = vmatprep.subr.mxu1 %v2888_v37  ;;  %v2870_v10 = vmax.f32 %v2050_v16, 0.0  ;;  %v2869_v51 = vmax.f32 %v2048_v5, 0.0  ;;  %v2871_v61 = vmax.f32 %v2241_v20, 0.0  ;;  %v2034_v0 = vadd.f32 %v5197_v26, %v5957_v14  ;;  %v6030_v55 = vld [vmem:[#allocation48_spill] sm:$0xff] }
 0x3a3   : > { %v5241_v42 = vpop.f32.mrf.mxu0  ;;  %v5243_v58 = vpop.f32.mrf.mxu1  ;;  %2936 = vmatpush2.msra.mxu0 %v2885_v34  ;;  %3007 = vmatpush2.msra.mxu1 %v2887_v54  ;;  %v2227_v6 = vadd.f32 %v5199_v41, %v5958_v11  ;;  %v2864_v31 = vmax.f32 %v2237_v59, 0.0  ;;  %v2032_v1 = vadd.f32 %v5193_v17, %v5955_v9  ;;  %v2225_v24 = vadd.f32 %v5195_v25, %v5956_v8 }
 0x3a4   : > { %5999 = vst [vmem:[#allocation7_spill] sm:$0xff] %v5241_v42  ;;  %6000 = vst [vmem:[#allocation3_spill] sm:$0xff] %v5243_v58  ;;  %2937 = vmatprep.subr.mxu0 %v2878_v40  ;;  %3008 = vmatprep.subr.mxu1 %v2880_v19  ;;  %v2861_v53 = vmax.f32 %v2042_v56, 0.0  ;;  %v2863_v16 = vmax.f32 %v2235_v28, 0.0  ;;  %v2030_v26 = vadd.f32 %v5189_v33, %v5957_v14  ;;  %v2854_v20 = vmax.f32 %v2040_v43, 0.0  ;;  %v6031_v58 = vld [vmem:[#allocation45_spill] sm:$0xff] }
 0x3a5   : > { %v5253_v62 = vpop.f32.mrf.mxu0  ;;  %v5255_v47 = vpop.f32.mrf.mxu1  ;;  %2938 = vmatpush2.msra.mxu0 %v2877_v39  ;;  %3009 = vmatpush2.msra.mxu1 %v2879_v45  ;;  %v2223_v41 = vadd.f32 %v5191_v57, %v5958_v11  ;;  %v2856_v34 = vmax.f32 %v2233_v32, 0.0  ;;  %v2028_v17 = vadd.f32 %v5185_v38, %v5955_v9  ;;  %v2221_v25 = vadd.f32 %v5187_v23, %v5956_v8 }
 0x3a6   : > { %6001 = vst [vmem:[#allocation29_spill] sm:$0xff] %v5253_v62  ;;  %6002 = vst [vmem:[#allocation30_spill] sm:$0xff] %v5255_v47  ;;  %2939 = vmatprep.subr.mxu0 %v2870_v10  ;;  %3010 = vmatprep.subr.mxu1 %v2872_v2  ;;  %v2853_v54 = vmax.f32 %v2038_v7, 0.0  ;;  %v2855_v60 = vmax.f32 %v2231_v3, 0.0  ;;  %v2024_v33 = vadd.f32 %v5181_v36, %v5957_v14  ;;  %v2846_v19 = vmax.f32 %v2034_v0, 0.0 }
 0x3a7   : > { %v5265_v37 = vpop.f32.mrf.mxu0  ;;  %v5267_v5 = vpop.f32.mrf.mxu1  ;;  %2940 = vmatpush2.msra.mxu0 %v2869_v51  ;;  %3011 = vmatpush2.msra.mxu1 %v2871_v61  ;;  %v2217_v57 = vadd.f32 %v5183_v49, %v5958_v11  ;;  %v2848_v56 = vmax.f32 %v2227_v6, 0.0  ;;  %v2022_v38 = vadd.f32 %v5177_v12, %v5955_v9  ;;  %v2215_v23 = vadd.f32 %v5179_v22, %v5956_v8 }
 0x3a8   : > { %6003 = vst [vmem:[#allocation31_spill] sm:$0xff] %v5265_v37  ;;  %6004 = vst [vmem:[#allocation32_spill] sm:$0xff] %v5267_v5  ;;  %2941 = vmatprep.subr.mxu0 %v2862_v13  ;;  %3012 = vmatprep.subr.mxu1 %v2864_v31  ;;  %v2845_v28 = vmax.f32 %v2032_v1, 0.0  ;;  %v2847_v39 = vmax.f32 %v2225_v24, 0.0  ;;  %v2020_v36 = vadd.f32 %v5165_v35, %v5957_v14  ;;  %v2838_v32 = vmax.f32 %v2030_v26, 0.0 }
 0x3a9   : > { %v5277_v59 = vpop.f32.mrf.mxu0  ;;  %v5279_v40 = vpop.f32.mrf.mxu1  ;;  %2942 = vmatpush2.msra.mxu0 %v2861_v53  ;;  %3013 = vmatpush2.msra.mxu1 %v2863_v16  ;;  %v2213_v49 = vadd.f32 %v5167_v46, %v5958_v11  ;;  %v2840_v10 = vmax.f32 %v2223_v41, 0.0  ;;  %v2018_v12 = vadd.f32 %v5153_v15, %v5955_v9  ;;  %v2211_v22 = vadd.f32 %v5155_v48, %v5956_v8 }
 0x3aa   : > { %6005 = vst [vmem:[#allocation53_spill] sm:$0xff] %v5277_v59  ;;  %6006 = vst [vmem:[#allocation26_spill] sm:$0xff] %v5279_v40  ;;  %2943 = vmatprep.subr.mxu0 %v2854_v20  ;;  %3014 = vmatprep.subr.mxu1 %v2856_v34  ;;  %v2837_v2 = vmax.f32 %v2028_v17, 0.0  ;;  %v2839_v7 = vmax.f32 %v2221_v25, 0.0  ;;  %v2014_v35 = vadd.f32 %v5141_v63, %v5957_v14  ;;  %v2830_v61 = vmax.f32 %v2024_v33, 0.0  ;;  %v6012_v17 = vld [vmem:[#allocation43_spill] sm:$0xff] }
 0x3ab   : > { %v5289_v45 = vpop.f32.mrf.mxu0  ;;  %v5291_v43 = vpop.f32.mrf.mxu1  ;;  %2944 = vmatpush2.msra.mxu0 %v2853_v54  ;;  %3015 = vmatpush2.msra.mxu1 %v2855_v60  ;;  %v2207_v46 = vadd.f32 %v5143_v30, %v5958_v11  ;;  %v2832_v0 = vmax.f32 %v2217_v57, 0.0  ;;  %v2012_v15 = vadd.f32 %v5129_v29, %v5955_v9  ;;  %v2205_v48 = vadd.f32 %v5131_v44, %v5956_v8  ;;  %v6010_v44 = vld [vmem:[#allocation8_spill] sm:$0xff]  ;;  %v6014_v57 = vld [vmem:[#allocation41_spill] sm:$0xff] }
 0x3ac   : > { %6007 = vst [vmem:[#allocation27_spill] sm:$0xff] %v5289_v45  ;;  %6008 = vst [vmem:[#allocation24_spill] sm:$0xff] %v5291_v43  ;;  %2945 = vmatprep.subr.mxu0 %v2846_v19  ;;  %3016 = vmatprep.subr.mxu1 %v2848_v56  ;;  %v2829_v6 = vmax.f32 %v2022_v38, 0.0  ;;  %v2831_v13 = vmax.f32 %v2215_v23, 0.0  ;;  %v2010_v63 = vadd.f32 %v5117_v21, %v5957_v14  ;;  %v2822_v24 = vmax.f32 %v2020_v36, 0.0  ;;  %v6011_v21 = vld [vmem:[#allocation46_spill] sm:$0xff] }
 0x3ad   : > { %v5301_v3 = vpop.f32.mrf.mxu0  ;;  %v5303_v51 = vpop.f32.mrf.mxu1  ;;  %2946 = vmatpush2.msra.mxu0 %v2845_v28  ;;  %3017 = vmatpush2.msra.mxu1 %v2847_v39  ;;  %v2203_v30 = vadd.f32 %v5119_v4, %v5958_v11  ;;  %v2824_v53 = vmax.f32 %v2213_v49, 0.0  ;;  %v2008_v29 = vadd.f32 %v5105_v50, %v5955_v9  ;;  %v2201_v16 = vadd.f32 %v6010_v44, %v5956_v8  ;;  %v6013_v50 = vld [vmem:[#allocation44_spill] sm:$0xff]  ;;  %v6015_v39 = vld [vmem:[#allocation42_spill] sm:$0xff]  ;;  %v6016_v49 = vld [vmem:[#allocation39_spill] sm:$0xff] }
 0x3ae   : > { %6009 = vst [vmem:[#allocation25_spill] sm:$0xff] %v5303_v51  ;;  %2947 = vmatprep.subr.mxu0 %v2838_v32  ;;  %3018 = vmatprep.subr.mxu1 %v2840_v10  ;;  %v2821_v26 = vmax.f32 %v2018_v12, 0.0  ;;  %v2823_v41 = vmax.f32 %v2211_v22, 0.0  ;;  %v2004_v4 = vadd.f32 %v6011_v21, %v5957_v14  ;;  %v2197_v25 = vadd.f32 %v6012_v17, %v5958_v11  ;;  %v6017_v22 = vld [vmem:[#allocation40_spill] sm:$0xff]  ;;  %v6022_v44 = vld [vmem:[#allocation33_spill] sm:$0xff] }
 0x3af   : > { %v5313_v31 = vpop.f32.mrf.mxu0  ;;  %v5315_v1 = vpop.f32.mrf.mxu1  ;;  %2948 = vmatpush2.msra.mxu0 %v2837_v2  ;;  %3019 = vmatpush2.msra.mxu1 %v2839_v7  ;;  %v2814_v54 = vmax.f32 %v2014_v35, 0.0  ;;  %v2816_v60 = vmax.f32 %v2207_v46, 0.0  ;;  %v2002_v33 = vadd.f32 %v6013_v50, %v5955_v9  ;;  %v2195_v19 = vadd.f32 %v6014_v57, %v5956_v8  ;;  %v6018_v7 = vld [vmem:[#allocation37_spill] sm:$0xff] }
 0x3b0   : > { %2949 = vmatprep.subr.mxu0 %v2830_v61  ;;  %3020 = vmatprep.subr.mxu1 %v2832_v0  ;;  %v2813_v56 = vmax.f32 %v2012_v15, 0.0  ;;  %v2815_v38 = vmax.f32 %v2205_v48, 0.0  ;;  %v2000_v36 = vadd.f32 %v6015_v39, %v5957_v14  ;;  %v2193_v32 = vadd.f32 %v6016_v49, %v5958_v11  ;;  %v6019_v48 = vld [vmem:[#allocation38_spill] sm:$0xff] }
 0x3b1   : > { %v5325_v20 = vpop.f32.mrf.mxu0  ;;  %v5327_v34 = vpop.f32.mrf.mxu1  ;;  %2950 = vmatpush2.msra.mxu0 %v2829_v6  ;;  %3021 = vmatpush2.msra.mxu1 %v2831_v13  ;;  %v2806_v10 = vmax.f32 %v2010_v63, 0.0  ;;  %v2808_v12 = vmax.f32 %v2203_v30, 0.0  ;;  %v1998_v2 = vadd.f32 %v6017_v22, %v5955_v9  ;;  %v2191_v35 = vadd.f32 %v6018_v7, %v5956_v8  ;;  %v6020_v13 = vld [vmem:[#allocation35_spill] sm:$0xff] }
 0x3b2   : > { %2951 = vmatprep.subr.mxu0 %v2822_v24  ;;  %3022 = vmatprep.subr.mxu1 %v2824_v53  ;;  %v2805_v46 = vmax.f32 %v2008_v29, 0.0  ;;  %v2807_v61 = vmax.f32 %v2201_v16, 0.0  ;;  %v1994_v6 = vadd.f32 %v6019_v48, %v5957_v14  ;;  %v2187_v63 = vadd.f32 %v6020_v13, %v5958_v11  ;;  %v6021_v53 = vld [vmem:[#allocation36_spill] sm:$0xff] }
 0x3b3   : > { %v5337_v23 = vpop.f32.mrf.mxu0  ;;  %v5339_v28 = vpop.f32.mrf.mxu1  ;;  %2952 = vmatpush2.msra.mxu0 %v2821_v26  ;;  %3023 = vmatpush2.msra.mxu1 %v2823_v41  ;;  %v2798_v30 = vmax.f32 %v2004_v4, 0.0  ;;  %v2800_v24 = vmax.f32 %v2197_v25, 0.0  ;;  %v1992_v29 = vadd.f32 %v6021_v53, %v5955_v9  ;;  %v2185_v16 = vadd.f32 %v6022_v44, %v5956_v8  ;;  %v6024_v25 = vld [vmem:[#allocation28_spill] sm:$0xff] }
 0x3b4   : > { %2953 = vmatprep.subr.mxu0 %v2814_v54  ;;  %3024 = vmatprep.subr.mxu1 %v2816_v60  ;;  %v2797_v26 = vmax.f32 %v2002_v33, 0.0  ;;  %v2799_v41 = vmax.f32 %v2195_v19, 0.0  ;;  %v6023_v54 = vld [vmem:[#allocation34_spill] sm:$0xff]  ;;  %v2183_v60 = vadd.f32 %v6024_v25, %v5958_v11  ;;  %v2790_v50 = vmax.f32 %v2000_v36, 0.0  ;;  %v6026_v19 = vld [vmem:[#allocation52_spill] sm:$0xff] }
 0x3b5   : > { %v5349_v0 = vpop.f32.mrf.mxu0  ;;  %v5351_v15 = vpop.f32.mrf.mxu1  ;;  %2954 = vmatpush2.msra.mxu0 %v2813_v56  ;;  %3025 = vmatpush2.msra.mxu1 %v2815_v38  ;;  %v1990_v4 = vadd.f32 %v6023_v54, %v5957_v14  ;;  %v2792_v57 = vmax.f32 %v2193_v32, 0.0  ;;  %v6025_v56 = vld [vmem:[#allocation51_spill] sm:$0xff]  ;;  %v2181_v38 = vadd.f32 %v6026_v19, %v5956_v8  ;;  %v2789_v39 = vmax.f32 %v1998_v2, 0.0 }
 0x3b6   : > { %2955 = vmatprep.subr.mxu0 %v2806_v10  ;;  %3026 = vmatprep.subr.mxu1 %v2808_v12  ;;  %v1988_v33 = vadd.f32 %v6025_v56, %v5955_v9  ;;  %v2791_v49 = vmax.f32 %v2191_v35, 0.0  ;;  %v2782_v14 = vmax.f32 %v1994_v6, 0.0  ;;  %v2784_v11 = vmax.f32 %v2187_v63, 0.0 }
 0x3b7   : > { %v5361_v21 = vpop.f32.mrf.mxu0  ;;  %v5363_v17 = vpop.f32.mrf.mxu1  ;;  %2956 = vmatpush2.msra.mxu0 %v2805_v46  ;;  %3027 = vmatpush2.msra.mxu1 %v2807_v61  ;;  %v2781_v36 = vmax.f32 %v1992_v29, 0.0  ;;  %v2783_v32 = vmax.f32 %v2185_v16, 0.0  ;;  %v2774_v8 = vmax.f32 %v1990_v4, 0.0  ;;  %v2776_v2 = vmax.f32 %v2183_v60, 0.0 }
 0x3b8   : > { %2957 = vmatprep.subr.mxu0 %v2798_v30  ;;  %3028 = vmatprep.subr.mxu1 %v2800_v24  ;;  %v2773_v7 = vmax.f32 %v1988_v33, 0.0  ;;  %v2775_v35 = vmax.f32 %v2181_v38, 0.0  ;;  %v6027_v13 = vmov 1.0  }
 0x3b9   : > { %v5373_v10 = vpop.f32.mrf.mxu0  ;;  %v5375_v12 = vpop.f32.mrf.mxu1  ;;  %2958 = vmatpush2.msra.mxu0 %v2797_v26  ;;  %3029 = vmatpush2.msra.mxu1 %v2799_v41 }
 0x3ba   : > { %2959 = vmatprep.subr.mxu0 %v2790_v50  ;;  %3030 = vmatprep.subr.mxu1 %v2792_v57 }
 0x3bb   : > { %v5377_v22 = vpop.f32.mrf.mxu0  ;;  %v5379_v9 = vpop.f32.mrf.mxu1  ;;  %2960 = vmatpush2.msra.mxu0 %v2789_v39  ;;  %3031 = vmatpush2.msra.mxu1 %v2791_v49 }
 0x3bc   : > { %2961 = vmatprep.subr.mxu0 %v2782_v14  ;;  %3032 = vmatprep.subr.mxu1 %v2784_v11 }
 0x3bd   : > { %v5381_v46 = vpop.f32.mrf.mxu0  ;;  %v5383_v61 = vpop.f32.mrf.mxu1  ;;  %2962 = vmatpush2.msra.mxu0 %v2781_v36  ;;  %3033 = vmatpush2.msra.mxu1 %v2783_v32 }
 0x3be   : > { %2963 = vmatprep.subr.mxu0 %v2774_v8  ;;  %3034 = vmatprep.subr.mxu1 %v2776_v2  ;;  %v6028_v2 = vld [vmem:[#allocation49_spill] sm:$0xff] }
 0x3bf   : > { %v5385_v48 = vpop.f32.mrf.mxu0  ;;  %v5387_v6 = vpop.f32.mrf.mxu1  ;;  %2964 = vmatpush2.msra.mxu0 %v2773_v7  ;;  %3035 = vmatpush2.msra.mxu1 %v2775_v35  ;;  %v6029_v35 = vld [vmem:[#allocation47_spill] sm:$0xff] }
 0x3c0   : > { %2966 = vmatmul.mubr.f32.vlgmr.msra.gmra.mxu0 %v6027_v13  ;;  %3037 = vmatmul.mubr.f32.vlgmr.msra.gmra.mxu1 %v6027_v13 }
 0x3c1   : > { %v5391_v63 = vpop.f32.mrf.mxu0  ;;  %v5393_v30 = vpop.f32.mrf.mxu1  ;;  %3107 = vmatprep.mubr.f32.mxu0 %v6027_v13  ;;  %3178 = vmatprep.mubr.f32.mxu1 %v6027_v13 }
 0x3c3   : > { %v5397_v24 = vpop.f32.mrf.mxu0  ;;  %v5399_v53 = vpop.f32.mrf.mxu1 }
 0x3c5   : > { %v5401_v29 = vpop.f32.mrf.mxu0  ;;  %v5403_v44 = vpop.f32.mrf.mxu1 }
 0x3c7   : > { %v5405_v16 = vpop.f32.mrf.mxu0  ;;  %v5407_v26 = vpop.f32.mrf.mxu1 }
 0x3c9   : > { %v2347_v41 = vpop.f32.mrf.mxu0  ;;  %v2540_v54 = vpop.f32.mrf.mxu1 }
 0x3cb   : > { %v2349_v4 = vpop.f32.mrf.mxu0  ;;  %v2542_v25 = vpop.f32.mrf.mxu1 }
 0x3cd   : > { %v2353_v60 = vpop.f32.mrf.mxu0  ;;  %v2546_v50 = vpop.f32.mrf.mxu1 }
 0x3cf   : > { %v2355_v57 = vpop.f32.mrf.mxu0  ;;  %v2548_v56 = vpop.f32.mrf.mxu1 }
 0x3d1   : > { %v2357_v33 = vpop.f32.mrf.mxu0  ;;  %v2550_v19 = vpop.f32.mrf.mxu1 }
 0x3d3   : > { %v2359_v38 = vpop.f32.mrf.mxu0  ;;  %v2552_v39 = vpop.f32.mrf.mxu1 }
 0x3d5   : > { %v2363_v49 = vpop.f32.mrf.mxu0  ;;  %v2556_v14 = vpop.f32.mrf.mxu1 }
 0x3d6   : > { %v2364_v5 = vadd.f32 %v2363_v49, %v6028_v2  ;;  %v2557_v37 = vadd.f32 %v2556_v14, %v6029_v35  ;;  %v2356_v14 = vadd.f32 %v2355_v57, %v6030_v55  ;;  %v2350_v57 = vadd.f32 %v2349_v4, %v6030_v55 }
 0x3d7   : > { %v2365_v11 = vpop.f32.mrf.mxu0  ;;  %v2558_v36 = vpop.f32.mrf.mxu1  ;;  %v2539_v4 = vadd.f32 %v5407_v26, %v6031_v58 }
 0x3d8   : > { %v2366_v18 = vadd.f32 %v2365_v11, %v6030_v55  ;;  %v2559_v42 = vadd.f32 %v2558_v36, %v6031_v58  ;;  %v2358_v36 = vadd.f32 %v2357_v33, %v6028_v2  ;;  %v2761_v33 = vmax.f32 %v2364_v5, 0.0 }
 0x3d9   : > { %v2367_v32 = vpop.f32.mrf.mxu0  ;;  %v2560_v8 = vpop.f32.mrf.mxu1  ;;  %v2738_v26 = vmax.f32 %v2350_v57, 0.0 }
 0x3da   : > { %v2368_v7 = vadd.f32 %v2367_v32, %v6028_v2  ;;  %v2561_v13 = vadd.f32 %v2560_v8, %v6029_v35  ;;  %v2360_v32 = vadd.f32 %v2359_v38, %v6030_v55  ;;  %v2553_v8 = vadd.f32 %v2552_v39, %v6031_v58 }
 0x3db   : > { %v2369_v27 = vpop.f32.mrf.mxu0  ;;  %v2562_v52 = vpop.f32.mrf.mxu1  ;;  %v2764_v38 = vmax.f32 %v2559_v42, 0.0  ;;  %v2753_v5 = vmax.f32 %v2358_v36, 0.0 }
 0x3dc   : > { %v2370_v47 = vadd.f32 %v2369_v27, %v6030_v55  ;;  %v2563_v62 = vadd.f32 %v2562_v52, %v6031_v58  ;;  %v2551_v27 = vadd.f32 %v2550_v19, %v6029_v35  ;;  %v2769_v45 = vmax.f32 %v2368_v7, 0.0 }
 0x3dd   : > { %v5417_v40 = vpop.f32.mrf.mxu0  ;;  %v5419_v59 = vpop.f32.mrf.mxu1  ;;  %v2771_v52 = vmax.f32 %v2561_v13, 0.0  ;;  %v2763_v19 = vmax.f32 %v2557_v37, 0.0  ;;  %v2756_v42 = vmax.f32 %v2553_v8, 0.0 }
 0x3de   : > { %6032 = vst [vmem:[#allocation22_spill] sm:$0xff] %v5417_v40  ;;  %6033 = vst [vmem:[#allocation23_spill] sm:$0xff] %v5419_v59  ;;  %v2770_v43 = vmax.f32 %v2370_v47, 0.0  ;;  %v2772_v11 = vmax.f32 %v2563_v62, 0.0  ;;  %v2549_v59 = vadd.f32 %v2548_v56, %v6031_v58  ;;  %v2762_v40 = vmax.f32 %v2366_v18, 0.0 }
 0x3df   : > { %v5425_v51 = vpop.f32.mrf.mxu0  ;;  %v5427_v49 = vpop.f32.mrf.mxu1  ;;  %v2354_v62 = vadd.f32 %v2353_v60, %v6028_v2  ;;  %v2547_v47 = vadd.f32 %v2546_v50, %v6029_v35  ;;  %v2543_v56 = vadd.f32 %v2542_v25, %v6031_v58  ;;  %v2754_v18 = vmax.f32 %v2360_v32, 0.0 }
 0x3e0   : > { %6034 = vst [vmem:[#allocation20_spill] sm:$0xff] %v5425_v51  ;;  %6035 = vst [vmem:[#allocation21_spill] sm:$0xff] %v5427_v49  ;;  %3043 = vmatprep.subr.mxu0 %v2770_v43  ;;  %3114 = vmatprep.subr.mxu1 %v2772_v11  ;;  %v2348_v43 = vadd.f32 %v2347_v41, %v6028_v2  ;;  %v2541_v60 = vadd.f32 %v2540_v54, %v6029_v35  ;;  %v2755_v37 = vmax.f32 %v2551_v27, 0.0 }
 0x3e1   : > { %v5433_v39 = vpop.f32.mrf.mxu0  ;;  %v5435_v13 = vpop.f32.mrf.mxu1  ;;  %3044 = vmatpush1.msra.mxu0 %v2769_v45  ;;  %3115 = vmatpush1.msra.mxu1 %v2771_v52  ;;  %v2346_v45 = vadd.f32 %v5405_v16, %v6030_v55  ;;  %v2748_v25 = vmax.f32 %v2549_v59, 0.0  ;;  %v2344_v41 = vadd.f32 %v5401_v29, %v6028_v2  ;;  %v2537_v54 = vadd.f32 %v5403_v44, %v6029_v35 }
 0x3e2   : > { %6036 = vst [vmem:[#allocation18_spill] sm:$0xff] %v5433_v39  ;;  %6037 = vst [vmem:[#allocation19_spill] sm:$0xff] %v5435_v13  ;;  %3045 = vmatprep.subr.mxu0 %v2762_v40  ;;  %3116 = vmatprep.subr.mxu1 %v2764_v38  ;;  %v2746_v40 = vmax.f32 %v2356_v14, 0.0  ;;  %v2745_v32 = vmax.f32 %v2354_v62, 0.0  ;;  %v2747_v8 = vmax.f32 %v2547_v47, 0.0  ;;  %v2340_v16 = vadd.f32 %v5397_v24, %v6030_v55 }
 0x3e3   : > { %v5441_v50 = vpop.f32.mrf.mxu0  ;;  %v5443_v7 = vpop.f32.mrf.mxu1  ;;  %3046 = vmatpush1.msra.mxu0 %v2761_v33  ;;  %3117 = vmatpush1.msra.mxu1 %v2763_v19  ;;  %v2533_v59 = vadd.f32 %v5399_v53, %v6031_v58  ;;  %v2740_v27 = vmax.f32 %v2543_v56, 0.0  ;;  %v2338_v29 = vadd.f32 %v5391_v63, %v6028_v2  ;;  %v2531_v44 = vadd.f32 %v5393_v30, %v6029_v35 }
 0x3e4   : > { %6038 = vst [vmem:[#allocation16_spill] sm:$0xff] %v5441_v50  ;;  %6039 = vst [vmem:[#allocation17_spill] sm:$0xff] %v5443_v7  ;;  %3047 = vmatprep.subr.mxu0 %v2754_v18  ;;  %3118 = vmatprep.subr.mxu1 %v2756_v42  ;;  %v2737_v52 = vmax.f32 %v2348_v43, 0.0  ;;  %v2739_v14 = vmax.f32 %v2541_v60, 0.0  ;;  %v2336_v24 = vadd.f32 %v5385_v48, %v6030_v55  ;;  %v2730_v47 = vmax.f32 %v2346_v45, 0.0 }
 0x3e5   : > { %v5453_v11 = vpop.f32.mrf.mxu0  ;;  %v5455_v36 = vpop.f32.mrf.mxu1  ;;  %3048 = vmatpush1.msra.mxu0 %v2753_v5  ;;  %3119 = vmatpush1.msra.mxu1 %v2755_v37  ;;  %v2529_v53 = vadd.f32 %v5387_v6, %v6031_v58  ;;  %v2732_v33 = vmax.f32 %v2539_v4, 0.0  ;;  %v2334_v63 = vadd.f32 %v5381_v46, %v6028_v2  ;;  %v2527_v30 = vadd.f32 %v5383_v61, %v6029_v35 }
 0x3e6   : > { %6040 = vst [vmem:[#allocation14_spill] sm:$0xff] %v5453_v11  ;;  %6041 = vst [vmem:[#allocation15_spill] sm:$0xff] %v5455_v36  ;;  %3049 = vmatprep.subr.mxu0 %v2746_v40  ;;  %3120 = vmatprep.subr.mxu1 %v2748_v25  ;;  %v2729_v19 = vmax.f32 %v2344_v41, 0.0  ;;  %v2731_v57 = vmax.f32 %v2537_v54, 0.0  ;;  %v2330_v48 = vadd.f32 %v5377_v22, %v6030_v55  ;;  %v2722_v42 = vmax.f32 %v2340_v16, 0.0 }
 0x3e7   : > { %v5465_v38 = vpop.f32.mrf.mxu0  ;;  %v5467_v62 = vpop.f32.mrf.mxu1  ;;  %3050 = vmatpush1.msra.mxu0 %v2745_v32  ;;  %3121 = vmatpush1.msra.mxu1 %v2747_v8  ;;  %v2523_v6 = vadd.f32 %v5379_v9, %v6031_v58  ;;  %v2724_v43 = vmax.f32 %v2533_v59, 0.0  ;;  %v2328_v46 = vadd.f32 %v5373_v10, %v6028_v2  ;;  %v2521_v61 = vadd.f32 %v5375_v12, %v6029_v35 }
 0x3e8   : > { %6042 = vst [vmem:[#allocation12_spill] sm:$0xff] %v5465_v38  ;;  %6043 = vst [vmem:[#allocation13_spill] sm:$0xff] %v5467_v62  ;;  %3051 = vmatprep.subr.mxu0 %v2738_v26  ;;  %3122 = vmatprep.subr.mxu1 %v2740_v27  ;;  %v2721_v60 = vmax.f32 %v2338_v29, 0.0  ;;  %v2723_v5 = vmax.f32 %v2531_v44, 0.0  ;;  %v2326_v22 = vadd.f32 %v5361_v21, %v6030_v55  ;;  %v2714_v4 = vmax.f32 %v2336_v24, 0.0 }
 0x3e9   : > { %v5477_v56 = vpop.f32.mrf.mxu0  ;;  %v5479_v18 = vpop.f32.mrf.mxu1  ;;  %3052 = vmatpush1.msra.mxu0 %v2737_v52  ;;  %3123 = vmatpush1.msra.mxu1 %v2739_v14  ;;  %v2519_v9 = vadd.f32 %v5363_v17, %v6031_v58  ;;  %v2716_v40 = vmax.f32 %v2529_v53, 0.0  ;;  %v2324_v10 = vadd.f32 %v5349_v0, %v6028_v2  ;;  %v2517_v12 = vadd.f32 %v5351_v15, %v6029_v35 }
 0x3ea   : > { %6044 = vst [vmem:[#allocation8_spill] sm:$0xff] %v5477_v56  ;;  %6045 = vst [vmem:[#allocation46_spill] sm:$0xff] %v5479_v18  ;;  %3053 = vmatprep.subr.mxu0 %v2730_v47  ;;  %3124 = vmatprep.subr.mxu1 %v2732_v33  ;;  %v2713_v25 = vmax.f32 %v2334_v63, 0.0  ;;  %v2715_v41 = vmax.f32 %v2527_v30, 0.0  ;;  %v2320_v21 = vadd.f32 %v5337_v23, %v6030_v55  ;;  %v2706_v8 = vmax.f32 %v2330_v48, 0.0  ;;  %v6051_v63 = vld [vmem:[#allocation24_spill] sm:$0xff] }
 0x3eb   : > { %v5489_v37 = vpop.f32.mrf.mxu0  ;;  %v5491_v45 = vpop.f32.mrf.mxu1  ;;  %3054 = vmatpush1.msra.mxu0 %v2729_v19  ;;  %3125 = vmatpush1.msra.mxu1 %v2731_v57  ;;  %v2513_v17 = vadd.f32 %v5339_v28, %v6031_v58  ;;  %v2708_v16 = vmax.f32 %v2523_v6, 0.0  ;;  %v2318_v0 = vadd.f32 %v5325_v20, %v6028_v2  ;;  %v2511_v15 = vadd.f32 %v5327_v34, %v6029_v35  ;;  %v6049_v34 = vld [vmem:[#allocation25_spill] sm:$0xff]  ;;  %v6053_v6 = vld [vmem:[#allocation26_spill] sm:$0xff] }
 0x3ec   : > { %6046 = vst [vmem:[#allocation43_spill] sm:$0xff] %v5489_v37  ;;  %6047 = vst [vmem:[#allocation44_spill] sm:$0xff] %v5491_v45  ;;  %3055 = vmatprep.subr.mxu0 %v2722_v42  ;;  %3126 = vmatprep.subr.mxu1 %v2724_v43  ;;  %v2705_v59 = vmax.f32 %v2328_v46, 0.0  ;;  %v2707_v26 = vmax.f32 %v2521_v61, 0.0  ;;  %v2316_v23 = vadd.f32 %v5313_v31, %v6030_v55  ;;  %v2698_v44 = vmax.f32 %v2326_v22, 0.0  ;;  %v6050_v31 = vld [vmem:[#allocation27_spill] sm:$0xff] }
 0x3ed   : > { %v5501_v54 = vpop.f32.mrf.mxu0  ;;  %v5503_v32 = vpop.f32.mrf.mxu1  ;;  %3056 = vmatpush1.msra.mxu0 %v2721_v60  ;;  %3127 = vmatpush1.msra.mxu1 %v2723_v5  ;;  %v2509_v28 = vadd.f32 %v5315_v1, %v6031_v58  ;;  %v2700_v52 = vmax.f32 %v2519_v9, 0.0  ;;  %v2314_v20 = vadd.f32 %v5301_v3, %v6028_v2  ;;  %v2507_v14 = vadd.f32 %v6049_v34, %v6029_v35  ;;  %v6052_v3 = vld [vmem:[#allocation53_spill] sm:$0xff]  ;;  %v6054_v5 = vld [vmem:[#allocation31_spill] sm:$0xff]  ;;  %v6055_v9 = vld [vmem:[#allocation32_spill] sm:$0xff] }
 0x3ee   : > { %6048 = vst [vmem:[#allocation41_spill] sm:$0xff] %v5503_v32  ;;  %3057 = vmatprep.subr.mxu0 %v2714_v4  ;;  %3128 = vmatprep.subr.mxu1 %v2716_v40  ;;  %v2697_v24 = vmax.f32 %v2324_v10, 0.0  ;;  %v2699_v53 = vmax.f32 %v2517_v12, 0.0  ;;  %v2310_v1 = vadd.f32 %v6050_v31, %v6030_v55  ;;  %v2503_v30 = vadd.f32 %v6051_v63, %v6031_v58  ;;  %v6056_v12 = vld [vmem:[#allocation29_spill] sm:$0xff]  ;;  %v6061_v34 = vld [vmem:[#allocation6_spill] sm:$0xff] }
 0x3ef   : > { %v5513_v27 = vpop.f32.mrf.mxu0  ;;  %v5515_v29 = vpop.f32.mrf.mxu1  ;;  %3058 = vmatpush1.msra.mxu0 %v2713_v25  ;;  %3129 = vmatpush1.msra.mxu1 %v2715_v41  ;;  %v2690_v19 = vmax.f32 %v2320_v21, 0.0  ;;  %v2692_v57 = vmax.f32 %v2513_v17, 0.0  ;;  %v2308_v48 = vadd.f32 %v6052_v3, %v6028_v2  ;;  %v2501_v42 = vadd.f32 %v6053_v6, %v6029_v35  ;;  %v6057_v41 = vld [vmem:[#allocation30_spill] sm:$0xff] }
 0x3f0   : > { %3059 = vmatprep.subr.mxu0 %v2706_v8  ;;  %3130 = vmatprep.subr.mxu1 %v2708_v16  ;;  %v2689_v43 = vmax.f32 %v2318_v0, 0.0  ;;  %v2691_v46 = vmax.f32 %v2511_v15, 0.0  ;;  %v2306_v22 = vadd.f32 %v6054_v5, %v6030_v55  ;;  %v2499_v4 = vadd.f32 %v6055_v9, %v6031_v58  ;;  %v6058_v15 = vld [vmem:[#allocation7_spill] sm:$0xff] }
 0x3f1   : > { %v5525_v47 = vpop.f32.mrf.mxu0  ;;  %v5527_v33 = vpop.f32.mrf.mxu1  ;;  %3060 = vmatpush1.msra.mxu0 %v2705_v59  ;;  %3131 = vmatpush1.msra.mxu1 %v2707_v26  ;;  %v2682_v40 = vmax.f32 %v2316_v23, 0.0  ;;  %v2684_v10 = vmax.f32 %v2509_v28, 0.0  ;;  %v2304_v25 = vadd.f32 %v6056_v12, %v6028_v2  ;;  %v2497_v21 = vadd.f32 %v6057_v41, %v6029_v35  ;;  %v6059_v26 = vld [vmem:[#allocation3_spill] sm:$0xff] }
 0x3f2   : > { %3061 = vmatprep.subr.mxu0 %v2698_v44  ;;  %3132 = vmatprep.subr.mxu1 %v2700_v52  ;;  %v2681_v17 = vmax.f32 %v2314_v20, 0.0  ;;  %v2683_v8 = vmax.f32 %v2507_v14, 0.0  ;;  %v2300_v59 = vadd.f32 %v6058_v15, %v6030_v55  ;;  %v2493_v23 = vadd.f32 %v6059_v26, %v6031_v58  ;;  %v6060_v52 = vld [vmem:[#allocation11_spill] sm:$0xff] }
 0x3f3   : > { %v5537_v61 = vpop.f32.mrf.mxu0  ;;  %v5539_v60 = vpop.f32.mrf.mxu1  ;;  %3062 = vmatpush1.msra.mxu0 %v2697_v24  ;;  %3133 = vmatpush1.msra.mxu1 %v2699_v53  ;;  %v2674_v28 = vmax.f32 %v2310_v1, 0.0  ;;  %v2676_v44 = vmax.f32 %v2503_v30, 0.0  ;;  %v2298_v20 = vadd.f32 %v6060_v52, %v6028_v2  ;;  %v2491_v14 = vadd.f32 %v6061_v34, %v6029_v35  ;;  %v6063_v30 = vld [vmem:[#allocation10_spill] sm:$0xff] }
 0x3f4   : > { %3063 = vmatprep.subr.mxu0 %v2690_v19  ;;  %3134 = vmatprep.subr.mxu1 %v2692_v57  ;;  %v2673_v24 = vmax.f32 %v2308_v48, 0.0  ;;  %v2675_v53 = vmax.f32 %v2501_v42, 0.0  ;;  %v6062_v19 = vld [vmem:[#allocation5_spill] sm:$0xff]  ;;  %v2489_v57 = vadd.f32 %v6063_v30, %v6031_v58  ;;  %v2666_v3 = vmax.f32 %v2306_v22, 0.0  ;;  %v6065_v42 = vld [vmem:[#allocation4_spill] sm:$0xff] }
 0x3f5   : > { %v5549_v16 = vpop.f32.mrf.mxu0  ;;  %v5551_v0 = vpop.f32.mrf.mxu1  ;;  %3064 = vmatpush1.msra.mxu0 %v2689_v43  ;;  %3135 = vmatpush1.msra.mxu1 %v2691_v46  ;;  %v2296_v1 = vadd.f32 %v6062_v19, %v6030_v55  ;;  %v2668_v6 = vmax.f32 %v2499_v4, 0.0  ;;  %v6064_v43 = vld [vmem:[#allocation9_spill] sm:$0xff]  ;;  %v2487_v46 = vadd.f32 %v6065_v42, %v6029_v35  ;;  %v2665_v5 = vmax.f32 %v2304_v25, 0.0 }
 0x3f6   : > { %3065 = vmatprep.subr.mxu0 %v2682_v40  ;;  %3136 = vmatprep.subr.mxu1 %v2684_v10  ;;  %v2294_v48 = vadd.f32 %v6064_v43, %v6028_v2  ;;  %v2667_v9 = vmax.f32 %v2497_v21, 0.0  ;;  %v2658_v12 = vmax.f32 %v2300_v59, 0.0  ;;  %v2660_v41 = vmax.f32 %v2493_v23, 0.0 }
 0x3f7   : > { %v5561_v31 = vpop.f32.mrf.mxu0  ;;  %v5563_v63 = vpop.f32.mrf.mxu1  ;;  %3066 = vmatpush1.msra.mxu0 %v2681_v17  ;;  %3137 = vmatpush1.msra.mxu1 %v2683_v8  ;;  %v2657_v22 = vmax.f32 %v2298_v20, 0.0  ;;  %v2659_v4 = vmax.f32 %v2491_v14, 0.0  ;;  %v2650_v25 = vmax.f32 %v2296_v1, 0.0  ;;  %v2652_v21 = vmax.f32 %v2489_v57, 0.0 }
 0x3f8   : > { %3067 = vmatprep.subr.mxu0 %v2674_v28  ;;  %3138 = vmatprep.subr.mxu1 %v2676_v44  ;;  %v2649_v15 = vmax.f32 %v2294_v48, 0.0  ;;  %v2651_v26 = vmax.f32 %v2487_v46, 0.0 }
 0x3f9   : > { %v5573_v40 = vpop.f32.mrf.mxu0  ;;  %v5575_v10 = vpop.f32.mrf.mxu1  ;;  %3068 = vmatpush1.msra.mxu0 %v2673_v24  ;;  %3139 = vmatpush1.msra.mxu1 %v2675_v53 }
 0x3fa   : > { %3069 = vmatprep.subr.mxu0 %v2666_v3  ;;  %3140 = vmatprep.subr.mxu1 %v2668_v6 }
 0x3fb   : > { %v5577_v17 = vpop.f32.mrf.mxu0  ;;  %v5579_v8 = vpop.f32.mrf.mxu1  ;;  %3070 = vmatpush1.msra.mxu0 %v2665_v5  ;;  %3141 = vmatpush1.msra.mxu1 %v2667_v9 }
 0x3fc   : > { %3071 = vmatprep.subr.mxu0 %v2658_v12  ;;  %3142 = vmatprep.subr.mxu1 %v2660_v41 }
 0x3fd   : > { %v5581_v28 = vpop.f32.mrf.mxu0  ;;  %v5583_v59 = vpop.f32.mrf.mxu1  ;;  %3072 = vmatpush1.msra.mxu0 %v2657_v22  ;;  %3143 = vmatpush1.msra.mxu1 %v2659_v4 }
 0x3fe   : > { %3073 = vmatprep.subr.mxu0 %v2650_v25  ;;  %3144 = vmatprep.subr.mxu1 %v2652_v21 }
 0x3ff   : > { %v5585_v23 = vpop.f32.mrf.mxu0  ;;  %v5587_v44 = vpop.f32.mrf.mxu1  ;;  %3074 = vmatpush1.msra.mxu0 %v2649_v15  ;;  %3145 = vmatpush1.msra.mxu1 %v2651_v26 }
 0x401   : > { %v5589_v52 = vpop.f32.mrf.mxu0  ;;  %v5591_v20 = vpop.f32.mrf.mxu1 }
 0x403   : > { %v5593_v34 = vpop.f32.mrf.mxu0  ;;  %v5595_v14 = vpop.f32.mrf.mxu1 }
 0x405   : > { %v5597_v24 = vpop.f32.mrf.mxu0  ;;  %v5599_v53 = vpop.f32.mrf.mxu1 }
 0x407   : > { %v2425_v19 = vpop.f32.mrf.mxu0  ;;  %v2618_v1 = vpop.f32.mrf.mxu1 }
 0x409   : > { %v2427_v30 = vpop.f32.mrf.mxu0  ;;  %v2620_v57 = vpop.f32.mrf.mxu1 }
 0x40b   : > { %v2429_v3 = vpop.f32.mrf.mxu0  ;;  %v2622_v6 = vpop.f32.mrf.mxu1 }
 0x40d   : > { %v2433_v43 = vpop.f32.mrf.mxu0  ;;  %v2626_v48 = vpop.f32.mrf.mxu1 }
 0x40f   : > { %v2435_v42 = vpop.f32.mrf.mxu0  ;;  %v2628_v46 = vpop.f32.mrf.mxu1 }
 0x411   : > { %v2437_v5 = vpop.f32.mrf.mxu0  ;;  %v2630_v9 = vpop.f32.mrf.mxu1 }
 0x412   : > { %v2438_v45 = vadd.f32 %v2437_v5, %v6028_v2  ;;  %v2430_v5 = vadd.f32 %v2429_v3, %v6030_v55 }
 0x413   : > { %v2439_v12 = vpop.f32.mrf.mxu0  ;;  %v2632_v41 = vpop.f32.mrf.mxu1 }
 0x414   : > { %v2440_v18 = vadd.f32 %v2439_v12, %v6030_v55  ;;  %v2434_v12 = vadd.f32 %v2433_v43, %v6028_v2 }
 0x415   : > { %v2443_v22 = vpop.f32.mrf.mxu0  ;;  %v2636_v4 = vpop.f32.mrf.mxu1 }
 0x416   : > { %v2444_v62 = vadd.f32 %v2443_v22, %v6028_v2  ;;  %v2637_v38 = vadd.f32 %v2636_v4, %v6029_v35 }
 0x417   : > { %v2445_v25 = vpop.f32.mrf.mxu0  ;;  %v2638_v21 = vpop.f32.mrf.mxu1 }
 0x418   : > { %v2446_v7 = vadd.f32 %v2445_v25, %v6030_v55  ;;  %v2639_v50 = vadd.f32 %v2638_v21, %v6031_v58  ;;  %v2631_v25 = vadd.f32 %v2630_v9, %v6029_v35 }
 0x419   : > { %v2447_v15 = vpop.f32.mrf.mxu0  ;;  %v2640_v26 = vpop.f32.mrf.mxu1 }
 0x41a   : > { %v2448_v49 = vadd.f32 %v2447_v15, %v6028_v2  ;;  %v2641_v51 = vadd.f32 %v2640_v26, %v6029_v35  ;;  %v2633_v15 = vadd.f32 %v2632_v41, %v6031_v58  ;;  %v2890_v32 = vmax.f32 %v2446_v7, 0.0 }
 0x41b   : > { %v2449_v13 = vpop.f32.mrf.mxu0  ;;  %v2642_v39 = vpop.f32.mrf.mxu1  ;;  %v2892_v22 = vmax.f32 %v2639_v50, 0.0  ;;  %v2627_v41 = vadd.f32 %v2626_v48, %v6029_v35  ;;  %v2428_v50 = vadd.f32 %v2427_v30, %v6028_v2  ;;  %v2621_v7 = vadd.f32 %v2620_v57, %v6029_v35 }
 0x41c   : > { %v2450_v36 = vadd.f32 %v2449_v13, %v6030_v55  ;;  %v2643_v11 = vadd.f32 %v2642_v39, %v6031_v58  ;;  %v2897_v37 = vmax.f32 %v2448_v49, 0.0  ;;  %v2899_v21 = vmax.f32 %v2641_v51, 0.0 }
 0x41d   : > { %v2436_v13 = vadd.f32 %v2435_v42, %v6030_v55  ;;  %v2629_v39 = vadd.f32 %v2628_v46, %v6031_v58  ;;  %v2623_v51 = vadd.f32 %v2622_v6, %v6031_v58  ;;  %v2882_v49 = vmax.f32 %v2440_v18, 0.0 }
 0x41e   : > { %v2898_v56 = vmax.f32 %v2450_v36, 0.0  ;;  %v2900_v26 = vmax.f32 %v2643_v11, 0.0  ;;  %v2889_v36 = vmax.f32 %v2444_v62, 0.0  ;;  %v2891_v11 = vmax.f32 %v2637_v38, 0.0 }
 0x41f   : > { %v2884_v42 = vmax.f32 %v2633_v15, 0.0  ;;  %v2883_v43 = vmax.f32 %v2631_v25, 0.0  ;;  %v2426_v38 = vadd.f32 %v2425_v19, %v6030_v55  ;;  %v2619_v62 = vadd.f32 %v2618_v1, %v6031_v58 }
 0x420   : > { %3075 = vmatprep.subr.mxu0 %v2898_v56  ;;  %3146 = vmatprep.subr.mxu1 %v2900_v26  ;;  %v2881_v56 = vmax.f32 %v2438_v45, 0.0  ;;  %v2876_v3 = vmax.f32 %v2629_v39, 0.0  ;;  %v2424_v18 = vadd.f32 %v5597_v24, %v6028_v2  ;;  %v2873_v30 = vmax.f32 %v2434_v12, 0.0 }
 0x421   : > { %3076 = vmatpush2.msra.mxu0 %v2897_v37  ;;  %3147 = vmatpush2.msra.mxu1 %v2899_v21  ;;  %v2874_v37 = vmax.f32 %v2436_v13, 0.0  ;;  %v2875_v57 = vmax.f32 %v2627_v41, 0.0  ;;  %v2420_v45 = vadd.f32 %v5593_v34, %v6030_v55  ;;  %v2613_v19 = vadd.f32 %v5595_v14, %v6031_v58 }
 0x422   : > { %3077 = vmatprep.subr.mxu0 %v2890_v32  ;;  %3148 = vmatprep.subr.mxu1 %v2892_v22  ;;  %v2617_v32 = vadd.f32 %v5599_v53, %v6029_v35  ;;  %v2866_v1 = vmax.f32 %v2430_v5, 0.0  ;;  %v2868_v6 = vmax.f32 %v2623_v51, 0.0  ;;  %v2418_v24 = vadd.f32 %v5589_v52, %v6028_v2 }
 0x423   : > { %3078 = vmatpush2.msra.mxu0 %v2889_v36  ;;  %3149 = vmatpush2.msra.mxu1 %v2891_v11  ;;  %v2611_v53 = vadd.f32 %v5591_v20, %v6029_v35  ;;  %v2865_v48 = vmax.f32 %v2428_v50, 0.0  ;;  %v2867_v46 = vmax.f32 %v2621_v7, 0.0  ;;  %v2416_v34 = vadd.f32 %v5585_v23, %v6030_v55  ;;  %v6066_v7 = vld [vmem:[#allocation41_spill] sm:$0xff] }
 0x424   : > { %3079 = vmatprep.subr.mxu0 %v2882_v49  ;;  %3150 = vmatprep.subr.mxu1 %v2884_v42  ;;  %v2609_v14 = vadd.f32 %v5587_v44, %v6031_v58  ;;  %v2858_v9 = vmax.f32 %v2426_v38, 0.0  ;;  %v2860_v4 = vmax.f32 %v2619_v62, 0.0  ;;  %v2414_v52 = vadd.f32 %v5581_v28, %v6028_v2  ;;  %v6067_v38 = vld [vmem:[#allocation43_spill] sm:$0xff]  ;;  %v6068_v62 = vld [vmem:[#allocation44_spill] sm:$0xff] }
 0x425   : > { %3080 = vmatpush2.msra.mxu0 %v2881_v56  ;;  %3151 = vmatpush2.msra.mxu1 %v2883_v43  ;;  %v2607_v20 = vadd.f32 %v5583_v59, %v6029_v35  ;;  %v2857_v15 = vmax.f32 %v2424_v18, 0.0  ;;  %v2859_v26 = vmax.f32 %v2617_v32, 0.0  ;;  %v2410_v23 = vadd.f32 %v5577_v17, %v6030_v55  ;;  %v6069_v18 = vld [vmem:[#allocation8_spill] sm:$0xff]  ;;  %v6070_v32 = vld [vmem:[#allocation46_spill] sm:$0xff] }
 0x426   : > { %3081 = vmatprep.subr.mxu0 %v2874_v37  ;;  %3152 = vmatprep.subr.mxu1 %v2876_v3  ;;  %v2603_v44 = vadd.f32 %v5579_v8, %v6031_v58  ;;  %v2850_v25 = vmax.f32 %v2420_v45, 0.0  ;;  %v2852_v21 = vmax.f32 %v2613_v19, 0.0  ;;  %v2408_v28 = vadd.f32 %v5573_v40, %v6028_v2  ;;  %v6071_v19 = vld [vmem:[#allocation12_spill] sm:$0xff] }
 0x427   : > { %3082 = vmatpush2.msra.mxu0 %v2873_v30  ;;  %3153 = vmatpush2.msra.mxu1 %v2875_v57  ;;  %v2601_v59 = vadd.f32 %v5575_v10, %v6029_v35  ;;  %v2849_v13 = vmax.f32 %v2418_v24, 0.0  ;;  %v2851_v39 = vmax.f32 %v2611_v53, 0.0  ;;  %v2406_v17 = vadd.f32 %v5561_v31, %v6030_v55 }
 0x428   : > { %3083 = vmatprep.subr.mxu0 %v2866_v1  ;;  %3154 = vmatprep.subr.mxu1 %v2868_v6  ;;  %v2599_v8 = vadd.f32 %v5563_v63, %v6031_v58  ;;  %v2842_v22 = vmax.f32 %v2416_v34, 0.0  ;;  %v2844_v12 = vmax.f32 %v2609_v14, 0.0  ;;  %v2404_v40 = vadd.f32 %v5549_v16, %v6028_v2  ;;  %v6072_v6 = vld [vmem:[#allocation13_spill] sm:$0xff]  ;;  %v6074_v14 = vld [vmem:[#allocation15_spill] sm:$0xff] }
 0x429   : > { %3084 = vmatpush2.msra.mxu0 %v2865_v48  ;;  %3155 = vmatpush2.msra.mxu1 %v2867_v46  ;;  %v2597_v10 = vadd.f32 %v5551_v0, %v6029_v35  ;;  %v2841_v41 = vmax.f32 %v2414_v52, 0.0  ;;  %v2843_v36 = vmax.f32 %v2607_v20, 0.0  ;;  %v2400_v31 = vadd.f32 %v5537_v61, %v6030_v55  ;;  %v6073_v46 = vld [vmem:[#allocation14_spill] sm:$0xff]  ;;  %v6075_v20 = vld [vmem:[#allocation16_spill] sm:$0xff] }
 0x42a   : > { %3085 = vmatprep.subr.mxu0 %v2858_v9  ;;  %3156 = vmatprep.subr.mxu1 %v2860_v4  ;;  %v2593_v63 = vadd.f32 %v5539_v60, %v6031_v58  ;;  %v2834_v11 = vmax.f32 %v2410_v23, 0.0  ;;  %v2836_v5 = vmax.f32 %v2603_v44, 0.0  ;;  %v2398_v16 = vadd.f32 %v5525_v47, %v6028_v2 }
 0x42b   : > { %3086 = vmatpush2.msra.mxu0 %v2857_v15  ;;  %3157 = vmatpush2.msra.mxu1 %v2859_v26  ;;  %v2591_v0 = vadd.f32 %v5527_v33, %v6029_v35  ;;  %v2833_v51 = vmax.f32 %v2408_v28, 0.0  ;;  %v2835_v49 = vmax.f32 %v2601_v59, 0.0  ;;  %v2396_v61 = vadd.f32 %v5513_v27, %v6030_v55  ;;  %v6076_v26 = vld [vmem:[#allocation17_spill] sm:$0xff]  ;;  %v6078_v59 = vld [vmem:[#allocation19_spill] sm:$0xff] }
 0x42c   : > { %3087 = vmatprep.subr.mxu0 %v2850_v25  ;;  %3158 = vmatprep.subr.mxu1 %v2852_v21  ;;  %v2589_v60 = vadd.f32 %v5515_v29, %v6031_v58  ;;  %v2826_v42 = vmax.f32 %v2406_v17, 0.0  ;;  %v2828_v50 = vmax.f32 %v2599_v8, 0.0  ;;  %v2394_v47 = vadd.f32 %v5501_v54, %v6028_v2  ;;  %v6077_v21 = vld [vmem:[#allocation18_spill] sm:$0xff]  ;;  %v6079_v8 = vld [vmem:[#allocation20_spill] sm:$0xff] }
 0x42d   : > { %3088 = vmatpush2.msra.mxu0 %v2849_v13  ;;  %3159 = vmatpush2.msra.mxu1 %v2851_v39  ;;  %v2587_v33 = vadd.f32 %v6066_v7, %v6029_v35  ;;  %v2825_v56 = vmax.f32 %v2404_v40, 0.0  ;;  %v2827_v43 = vmax.f32 %v2597_v10, 0.0  ;;  %v2390_v27 = vadd.f32 %v6067_v38, %v6030_v55 }
 0x42e   : > { %3089 = vmatprep.subr.mxu0 %v2842_v22  ;;  %3160 = vmatprep.subr.mxu1 %v2844_v12  ;;  %v2583_v29 = vadd.f32 %v6068_v62, %v6031_v58  ;;  %v2818_v37 = vmax.f32 %v2400_v31, 0.0  ;;  %v2820_v3 = vmax.f32 %v2593_v63, 0.0  ;;  %v2388_v54 = vadd.f32 %v6069_v18, %v6028_v2  ;;  %v6080_v12 = vld [vmem:[#allocation21_spill] sm:$0xff]  ;;  %v6082_v63 = vld [vmem:[#allocation23_spill] sm:$0xff] }
 0x42f   : > { %3090 = vmatpush2.msra.mxu0 %v2841_v41  ;;  %3161 = vmatpush2.msra.mxu1 %v2843_v36  ;;  %v2581_v30 = vadd.f32 %v6070_v32, %v6029_v35  ;;  %v2817_v57 = vmax.f32 %v2398_v16, 0.0  ;;  %v2819_v45 = vmax.f32 %v2591_v0, 0.0  ;;  %v2386_v1 = vadd.f32 %v6071_v19, %v6030_v55  ;;  %v6081_v36 = vld [vmem:[#allocation22_spill] sm:$0xff] }
 0x430   : > { %3091 = vmatprep.subr.mxu0 %v2834_v11  ;;  %3162 = vmatprep.subr.mxu1 %v2836_v5  ;;  %v2579_v24 = vadd.f32 %v6072_v6, %v6031_v58  ;;  %v2810_v53 = vmax.f32 %v2396_v61, 0.0  ;;  %v2812_v48 = vmax.f32 %v2589_v60, 0.0  ;;  %v2384_v34 = vadd.f32 %v6073_v46, %v6028_v2  ;;  %v3186_v6 = vld [vmem:[#allocation2 + $0x1] ss:$2 sm:$0xff] }
 0x431   : > { %3092 = vmatpush2.msra.mxu0 %v2833_v51  ;;  %3163 = vmatpush2.msra.mxu1 %v2835_v49  ;;  %v2577_v9 = vadd.f32 %v6074_v14, %v6029_v35  ;;  %v2809_v4 = vmax.f32 %v2394_v47, 0.0  ;;  %v2811_v52 = vmax.f32 %v2587_v33, 0.0  ;;  %v2380_v15 = vadd.f32 %v6075_v20, %v6030_v55 }
 0x432   : > { %3093 = vmatprep.subr.mxu0 %v2826_v42  ;;  %3164 = vmatprep.subr.mxu1 %v2828_v50  ;;  %v2573_v23 = vadd.f32 %v6076_v26, %v6031_v58  ;;  %v2802_v44 = vmax.f32 %v2390_v27, 0.0  ;;  %v2804_v25 = vmax.f32 %v2583_v29, 0.0  ;;  %v2378_v28 = vadd.f32 %v6077_v21, %v6028_v2  ;;  %v6084_v27 = vld [vmem:[#allocation50_spill] sm:$0xff] }
 0x433   : > { %3094 = vmatpush2.msra.mxu0 %v2825_v56  ;;  %3165 = vmatpush2.msra.mxu1 %v2827_v43  ;;  %v2571_v13 = vadd.f32 %v6078_v59, %v6029_v35  ;;  %v2801_v39 = vmax.f32 %v2388_v54, 0.0  ;;  %v2803_v17 = vmax.f32 %v2581_v30, 0.0  ;;  %v2376_v22 = vadd.f32 %v6079_v8, %v6030_v55 }
 0x434   : > { %3095 = vmatprep.subr.mxu0 %v2818_v37  ;;  %3166 = vmatprep.subr.mxu1 %v2820_v3  ;;  %v2569_v40 = vadd.f32 %v6080_v12, %v6031_v58  ;;  %v2794_v10 = vmax.f32 %v2386_v1, 0.0  ;;  %v2796_v41 = vmax.f32 %v2579_v24, 0.0  ;;  %v2374_v31 = vadd.f32 %v6081_v36, %v6028_v2 }
 0x435   : > { %3096 = vmatpush2.msra.mxu0 %v2817_v57  ;;  %3167 = vmatpush2.msra.mxu1 %v2819_v45  ;;  %v2567_v11 = vadd.f32 %v6082_v63, %v6029_v35  ;;  %v2793_v5 = vmax.f32 %v2384_v34, 0.0  ;;  %v2795_v16 = vmax.f32 %v2577_v9, 0.0  ;;  %v2786_v0 = vmax.f32 %v2380_v15, 0.0 }
 0x436   : > { %3097 = vmatprep.subr.mxu0 %v2810_v53  ;;  %3168 = vmatprep.subr.mxu1 %v2812_v48  ;;  %v2788_v51 = vmax.f32 %v2573_v23, 0.0  ;;  %v2785_v55 = vmax.f32 %v2378_v28, 0.0  ;;  %v2787_v58 = vmax.f32 %v2571_v13, 0.0  ;;  %v2778_v49 = vmax.f32 %v2376_v22, 0.0 }
 0x437   : > { %3098 = vmatpush2.msra.mxu0 %v2809_v4  ;;  %3169 = vmatpush2.msra.mxu1 %v2811_v52  ;;  %v2780_v61 = vmax.f32 %v2569_v40, 0.0  ;;  %v2777_v2 = vmax.f32 %v2374_v31, 0.0  ;;  %v2779_v60 = vmax.f32 %v2567_v11, 0.0  ;;  %v6083_v35 = vmov 1.0  }
 0x438   : > { %3099 = vmatprep.subr.mxu0 %v2802_v44  ;;  %3170 = vmatprep.subr.mxu1 %v2804_v25 }
 0x439   : > { %3100 = vmatpush2.msra.mxu0 %v2801_v39  ;;  %3171 = vmatpush2.msra.mxu1 %v2803_v17 }
 0x43a   : > { %3101 = vmatprep.subr.mxu0 %v2794_v10  ;;  %3172 = vmatprep.subr.mxu1 %v2796_v41 }
 0x43b   : > { %3102 = vmatpush2.msra.mxu0 %v2793_v5  ;;  %3173 = vmatpush2.msra.mxu1 %v2795_v16 }
 0x43c   : > { %3103 = vmatprep.subr.mxu0 %v2786_v0  ;;  %3174 = vmatprep.subr.mxu1 %v2788_v51 }
 0x43d   : > { %3104 = vmatpush2.msra.mxu0 %v2785_v55  ;;  %3175 = vmatpush2.msra.mxu1 %v2787_v58 }
 0x43e   : > { %3105 = vmatprep.subr.mxu0 %v2778_v49  ;;  %3176 = vmatprep.subr.mxu1 %v2780_v61 }
 0x43f   : > { %3106 = vmatpush2.msra.mxu0 %v2777_v2  ;;  %3177 = vmatpush2.msra.mxu1 %v2779_v60 }
 0x440   : > { %3108 = vmatmul.mubr.f32.vlgmr.msra.gmra.mxu0 %v6083_v35  ;;  %3179 = vmatmul.mubr.f32.vlgmr.msra.gmra.mxu1 %v6083_v35 }
 0x480   : > { %v2967_v42 = vpop.f32.mrf.mxu0  ;;  %v3038_v50 = vpop.f32.mrf.mxu1 }
 0x482   : > { %v2969_v47 = vpop.f32.mrf.mxu0  ;;  %v3040_v7 = vpop.f32.mrf.mxu1 }
 0x483   : > { %v3195_v33 = vcombine.low %v2967_v42, %v2969_v47  ;;  %v3196_v56 = vcombine.low %v3038_v50, %v3040_v7 }
 0x485   : > { %v3205_v62 = vrot.slane %v3195_v33, %v6084_v27  ;;  %v3212_v29 = vrot.slane %v3196_v56, %v6084_v27 }
 0x487   : > { %v3227_v32 = vcombine.low %v3205_v62, %v3212_v29 }
 0x489   : > { %v3235_v19 = vrot.slane %v3227_v32, %v6084_v27 }
 0x500   : > { %v3109_v43 = vpop.f32.mrf.mxu0  ;;  %v3180_v38 = vpop.f32.mrf.mxu1 }
 0x502   : > { %v3111_v37 = vpop.f32.mrf.mxu0  ;;  %v3182_v3 = vpop.f32.mrf.mxu1 }
 0x503   : > { %v3197_v18 = vcombine.low %v3109_v43, %v3111_v37  ;;  %v3198_v54 = vcombine.low %v3180_v38, %v3182_v3 }
 0x505   : > { %v3219_v30 = vrot.slane %v3197_v18, %v6084_v27  ;;  %v3226_v57 = vrot.slane %v3198_v54, %v6084_v27 }
 0x507   : > { %v3228_v45 = vcombine.low %v3219_v30, %v3226_v57 }
 0x509   : > { %v3242_v1 = vrot.slane %v3228_v45, %v6084_v27 }
 0x50b   : > { %v3243_v24 = vcombine.low %v3235_v19, %v3242_v1 }
 0x50d   : > { %v3245_v53 = vadd.f32 %v3243_v24, %v3186_v6 }
 0x50f   : > { %3246 = vst [vmem:[#allocation2 + $0x1] ss:$2 sm:$0xff] %v3245_v53 }
 0x516   : > { %v3250_v48 = vld [vmem:[#allocation2] sm:$0xff]  ;;  %v3251_v46 = vld [vmem:[#allocation2 + $0x8] sm:$0xff] }
 0x517   : > { %v3252_v34 = vmul.f32 0.00390625, %v3250_v48  ;;  %v3253_v14 = vmul.f32 0.00390625, %v3251_v46 }
 0x519   : > { %3254 = vst [vmem:[%s198_s4] sm:$0xff] %v3252_v34  ;;  %3255 = vst [vmem:[%s198_s4 + $0x8] sm:$0xff] %v3253_v14 }
 0x51a PF: > { %s13_s14 = sadd.s32 1, %s3524_s14   ;;  %s6085_s12 = smov %s3520_s13 }
 0x51b   : > { %p10_p5 = scmp.ge.s32.totalorder %s13_s14, 4   ;;  %s6086_s13 = smov %s6088_s15 }
 0x51d   :  { %12 = sbr.rel (!%p10_p5) target bundleno = 2 (0x2), region = 72 }

</bundles_post_ra>
